<compile_context>
chip_gen: v6e
topology: v6e:2x2x1
jax: 0.10.0
libtpu: 0.0.40
codegen_flags: <defaults>
</compile_context>

<pallas_src>
import functools

import numpy as np
import jax
import jax.numpy as jnp
from jax.experimental import pallas as pl
from jax.experimental.pallas import tpu as pltpu


# -----------------------------------------------------------------------------
# Tile-size heuristics (VMEM-budget aware; conservative enough for v7x)
# -----------------------------------------------------------------------------
def _round_up(x, m):
    return ((x + m - 1) // m) * m


def _pick_tile_m(K, N, M, budget_bytes=6 * 1024 * 1024):
    """Largest lane-dense (multiple-of-128) M tile whose double-buffered A/O fit."""
    per_col = 2 * (K * 2) + 2 * (N * 4)        # 2x bf16 A column + 2x f32 out column
    tm = budget_bytes // max(per_col, 1)
    tm = max(128, (tm // 128) * 128)
    tm = min(tm, 2048)
    tm = min(tm, _round_up(M, 128))
    return int(tm)


def _pick_tile_p(L, P, budget_bytes=8 * 1024 * 1024):
    per_col = 4 * (L * 4)                      # 2x f32 in + 2x f32 out column
    tp = budget_bytes // max(per_col, 1)
    tp = max(128, (tp // 128) * 128)
    tp = min(tp, 1024)
    tp = min(tp, _round_up(P, 128))
    return int(tp)


# -----------------------------------------------------------------------------
# Pallas kernels
# -----------------------------------------------------------------------------
def _apply_act(acc, act):
    if act == "relu":
        return jnp.maximum(acc, 0.0)
    if act == "elu":
        return jnp.where(acc > 0.0, acc, jnp.exp(jnp.minimum(acc, 0.0)) - 1.0)
    return acc


def matmul_bias_act_T(w, a, bias, act):
    """Lane-dense conv matmul: out(N, M) = act(w(N, K) @ a(K, M) + bias(N, 1)).

    The M axis (batch * spatial) sits on lanes; it is padded to a multiple of
    the M tile and tiled over a "parallel" grid axis.  bf16 operands, f32 acc.
    """
    N, K = w.shape
    M = a.shape[1]
    tm = _pick_tile_m(K, N, M)
    Mp = _round_up(M, tm)
    if Mp != M:
        a = jnp.pad(a, ((0, 0), (0, Mp - M)))
    bias2 = bias.reshape(N, 1).astype(jnp.float32)

    def kernel(w_ref, a_ref, b_ref, o_ref):
        acc = jnp.dot(w_ref[...], a_ref[...], preferred_element_type=jnp.float32)
        o_ref[...] = _apply_act(acc + b_ref[...], act)

    out = pl.pallas_call(
        kernel,
        out_shape=jax.ShapeDtypeStruct((N, Mp), jnp.float32),
        grid=(Mp // tm,),
        in_specs=[
            pl.BlockSpec((N, K), lambda m: (0, 0)),
            pl.BlockSpec((K, tm), lambda m: (0, m)),
            pl.BlockSpec((N, 1), lambda m: (0, 0)),
        ],
        out_specs=pl.BlockSpec((N, tm), lambda m: (0, m)),
        compiler_params=pltpu.CompilerParams(dimension_semantics=("parallel",)),
    )(w.astype(jnp.bfloat16), a.astype(jnp.bfloat16), bias2)
    return out[:, :M]


def bmm_lane_dense(w, a):
    """Batched lane-dense matmul: out(B, N, M) = w(B, N, K) @ a(B, K, M).

    Used for the contextual-attention matching conv and the patch deconv whose
    "weights" differ per batch element.  Grid = (batch, M tiles), both parallel.
    """
    B, N, K = w.shape
    M = a.shape[2]
    tm = _pick_tile_m(K, N, M)
    Mp = _round_up(M, tm)
    if Mp != M:
        a = jnp.pad(a, ((0, 0), (0, 0), (0, Mp - M)))

    def kernel(w_ref, a_ref, o_ref):
        o_ref[0] = jnp.dot(w_ref[0], a_ref[0], preferred_element_type=jnp.float32)

    out = pl.pallas_call(
        kernel,
        out_shape=jax.ShapeDtypeStruct((B, N, Mp), jnp.float32),
        grid=(B, Mp // tm),
        in_specs=[
            pl.BlockSpec((1, N, K), lambda b, m: (b, 0, 0)),
            pl.BlockSpec((1, K, tm), lambda b, m: (b, 0, m)),
        ],
        out_specs=pl.BlockSpec((1, N, tm), lambda b, m: (b, 0, m)),
        compiler_params=pltpu.CompilerParams(
            dimension_semantics=("parallel", "parallel")),
    )(w.astype(jnp.bfloat16), a.astype(jnp.bfloat16))
    return out[:, :, :M]


def masked_softmax(scores, mask_col, scale):
    """Batched masked/scaled softmax along L: softmax((s*m)*scale, axis=1) * m.

    scores:(B, L, P) f32, mask_col:(L, 1) f32.  The reduction is along L, so the
    P axis is tiled and the (batch, P-tile) grid is fully parallel.
    """
    B, L, P = scores.shape
    tp = _pick_tile_p(L, P)
    Pp = _round_up(P, tp)
    if Pp != P:
        scores = jnp.pad(scores, ((0, 0), (0, 0), (0, Pp - P)))

    def kernel(s_ref, m_ref, o_ref):
        m = m_ref[...]                                   # (L, 1)
        s = s_ref[0] * m * scale                         # (L, tp)
        e = jnp.exp(s - jnp.max(s, axis=0, keepdims=True))
        denom = jnp.sum(e, axis=0, keepdims=True)
        o_ref[0] = e * pl.reciprocal(denom, approx=True) * m

    out = pl.pallas_call(
        kernel,
        out_shape=jax.ShapeDtypeStruct((B, L, Pp), jnp.float32),
        grid=(B, Pp // tp),
        in_specs=[
            pl.BlockSpec((1, L, tp), lambda b, p: (b, 0, p)),
            pl.BlockSpec((L, 1), lambda b, p: (0, 0)),
        ],
        out_specs=pl.BlockSpec((1, L, tp), lambda b, p: (b, 0, p)),
        compiler_params=pltpu.CompilerParams(
            dimension_semantics=("parallel", "parallel")),
    )(scores.astype(jnp.float32), mask_col.astype(jnp.float32))
    return out[:, :, :P]


# -----------------------------------------------------------------------------
# Convolution wrappers (im2col glue in JAX, matmul in Pallas)
# -----------------------------------------------------------------------------
def conv2d(x, w, b, stride=1, padding=0, dilation=1, act="none"):
    """PyTorch-semantics Conv2d.  x:(N,Cin,H,W) w:(Cout,Cin,KH,KW) b:(Cout,) -> NCHW f32."""
    # TODO(synk): fully im2col-free conv (accumulating the KH*KW taps on an extra
    # grid axis via shifted-window index_maps) is not implemented; the patch
    # matrix is built transposed (K, M) in bf16 to halve its HBM footprint.
    N, Cin, H, W = x.shape
    Cout, _, KH, KW = w.shape
    x = x.astype(jnp.bfloat16)
    if padding:
        x = jnp.pad(x, ((0, 0), (0, 0), (padding, padding), (padding, padding)))
    Hp, Wp = x.shape[2], x.shape[3]
    Ho = (Hp - dilation * (KH - 1) - 1) // stride + 1
    Wo = (Wp - dilation * (KW - 1) - 1) // stride + 1
    cols = []
    for kh in range(KH):
        for kw in range(KW):
            h0, w0 = kh * dilation, kw * dilation
            cols.append(
                x[:, :, h0:h0 + (Ho - 1) * stride + 1:stride,
                        w0:w0 + (Wo - 1) * stride + 1:stride])
    pat = jnp.stack(cols, axis=0).reshape(KH, KW, N, Cin, Ho, Wo)
    # (K, M) with K ordered (Cin, KH, KW) to match w.reshape(Cout, Cin*KH*KW).
    patT = pat.transpose(3, 0, 1, 2, 4, 5).reshape(Cin * KH * KW, N * Ho * Wo)
    w_mat = w.reshape(Cout, Cin * KH * KW)
    out = matmul_bias_act_T(w_mat, patT, b, act)           # (Cout, N*Ho*Wo)
    return out.reshape(Cout, N, Ho, Wo).transpose(1, 0, 2, 3)


def batched_conv_transpose2d(y, w, stride, padding):
    """Batched conv_transpose2d with per-image kernels (no bias).

    y:(B,Cin,H,W)  w:(B,Cin,Cout,KH,KW)  (PyTorch conv_transpose weight layout).
    """
    B, Cin, H, W = y.shape
    _, _, Cout, KH, KW = w.shape
    Hd, Wd = (H - 1) * stride + 1, (W - 1) * stride + 1
    yd = jnp.zeros((B, Cin, Hd, Wd), jnp.float32).at[:, :, ::stride, ::stride].set(y)
    pad = KH - 1 - padding
    yd = jnp.pad(yd, ((0, 0), (0, 0), (pad, pad), (pad, pad)))
    Ho = Hd + 2 * pad - KH + 1
    Wo = Wd + 2 * pad - KW + 1
    # equivalent forward-conv weights: flip spatial, swap in/out channels
    w2 = jnp.transpose(jnp.flip(w, axis=(3, 4)), (0, 2, 1, 3, 4))   # (B,Cout,Cin,KH,KW)
    cols = []
    for kh in range(KH):
        for kw in range(KW):
            cols.append(yd[:, :, kh:kh + Ho, kw:kw + Wo])
    pat = jnp.stack(cols, axis=0).reshape(KH, KW, B, Cin, Ho, Wo)
    patT = pat.transpose(2, 3, 0, 1, 4, 5).reshape(B, Cin * KH * KW, Ho * Wo)
    w_mat = w2.reshape(B, Cout, Cin * KH * KW)
    out = bmm_lane_dense(w_mat, patT)                      # (B, Cout, Ho*Wo)
    return out.reshape(B, Cout, Ho, Wo)


def upsample_nearest(x, s):
    return jnp.repeat(jnp.repeat(x, s, axis=2), s, axis=3)


def same_padding(x, ksizes, strides, rates):
    N, C, rows, cols = x.shape
    out_rows = (rows + strides[0] - 1) // strides[0]
    out_cols = (cols + strides[1] - 1) // strides[1]
    eff_kr = (ksizes[0] - 1) * rates[0] + 1
    eff_kc = (ksizes[1] - 1) * rates[1] + 1
    pr = max(0, (out_rows - 1) * strides[0] + eff_kr - rows)
    pc = max(0, (out_cols - 1) * strides[1] + eff_kc - cols)
    pt, pb = pr // 2, pr - pr // 2
    pleft, pright = pc // 2, pc - pc // 2
    return jnp.pad(x, ((0, 0), (0, 0), (pt, pb), (pleft, pright)))


def extract_image_patches(x, ksize, stride):
    """torch Unfold with 'same' padding -> (N, L, C, k, k); only k*k slice ops."""
    x = same_padding(x, (ksize, ksize), (stride, stride), (1, 1))
    N, C, H, W = x.shape
    Ho = (H - ksize) // stride + 1
    Wo = (W - ksize) // stride + 1
    cols = []
    for i in range(ksize):
        for j in range(ksize):
            cols.append(x[:, :, i:i + (Ho - 1) * stride + 1:stride,
                              j:j + (Wo - 1) * stride + 1:stride])
    p = jnp.stack(cols, axis=0).reshape(ksize, ksize, N, C, Ho, Wo)
    return p.transpose(2, 4, 5, 3, 0, 1).reshape(N, Ho * Wo, C, ksize, ksize)


# -----------------------------------------------------------------------------
# flow_to_image (host-side NumPy visualization, identical to the original repo)
# -----------------------------------------------------------------------------
def make_color_wheel():
    RY, YG, GC, CB, BM, MR = 15, 6, 4, 11, 13, 6
    ncols = RY + YG + GC + CB + BM + MR
    cw = np.zeros([ncols, 3])
    col = 0
    cw[0:RY, 0] = 255
    cw[0:RY, 1] = np.floor(255 * np.arange(0, RY) / RY)
    col += RY
    cw[col:col + YG, 0] = 255 - np.floor(255 * np.arange(0, YG) / YG)
    cw[col:col + YG, 1] = 255
    col += YG
    cw[col:col + GC, 1] = 255
    cw[col:col + GC, 2] = np.floor(255 * np.arange(0, GC) / GC)
    col += GC
    cw[col:col + CB, 1] = 255 - np.floor(255 * np.arange(0, CB) / CB)
    cw[col:col + CB, 2] = 255
    col += CB
    cw[col:col + BM, 2] = 255
    cw[col:col + BM, 0] = np.floor(255 * np.arange(0, BM) / BM)
    col += BM
    cw[col:col + MR, 2] = 255 - np.floor(255 * np.arange(0, MR) / MR)
    cw[col:col + MR, 0] = 255
    return cw


def compute_color(u, v):
    h, w = u.shape
    img = np.zeros([h, w, 3])
    nanIdx = np.isnan(u) | np.isnan(v)
    u[nanIdx] = 0
    v[nanIdx] = 0
    colorwheel = make_color_wheel()
    ncols = colorwheel.shape[0]
    rad = np.sqrt(u ** 2 + v ** 2)
    a = np.arctan2(-v, -u) / np.pi
    fk = (a + 1) / 2 * (ncols - 1) + 1
    k0 = np.floor(fk).astype(int)
    k1 = k0 + 1
    k1[k1 == ncols + 1] = 1
    f = fk - k0
    for i in range(colorwheel.shape[1]):
        tmp = colorwheel[:, i]
        col0 = tmp[k0 - 1] / 255
        col1 = tmp[k1 - 1] / 255
        col = (1 - f) * col0 + f * col1
        idx = rad <= 1
        col[idx] = 1 - rad[idx] * (1 - col[idx])
        col[np.logical_not(idx)] *= 0.75
        img[:, :, i] = np.uint8(np.floor(255 * col * (1 - nanIdx)))
    return img


def flow_to_image(flow):
    out = []
    maxrad = -1.0
    for i in range(flow.shape[0]):
        u = np.array(flow[i, :, :, 0], dtype=np.float64)
        v = np.array(flow[i, :, :, 1], dtype=np.float64)
        idxunknow = (np.abs(u) > 1e7) | (np.abs(v) > 1e7)
        u[idxunknow] = 0
        v[idxunknow] = 0
        rad = np.sqrt(u ** 2 + v ** 2)
        maxrad = max(maxrad, rad.max())
        u = u / (maxrad + np.finfo(float).eps)
        v = v / (maxrad + np.finfo(float).eps)
        out.append(compute_color(u, v))
    return np.float32(np.uint8(out))


# -----------------------------------------------------------------------------
# Contextual attention (fully batched on device)
# -----------------------------------------------------------------------------
def _fuse_eye(y, k):
    """Equivalent to conv2d(y[:,None], eye(k)[None,None], stride=1) after 'same' pad."""
    B, R, Q = y.shape
    pt = (k - 1) // 2
    pb = (k - 1) - pt
    yp = jnp.pad(y, ((0, 0), (pt, pb), (pt, pb)))
    out = jnp.zeros_like(y)
    for d in range(k):
        out = out + yp[:, d:d + R, d:d + Q]
    return out


def contextual_attention(f, b, mask, ksize=3, stride=1, rate=2, fuse_k=3,
                         softmax_scale=10.0, fuse=True):
    """Batched contextual attention.  Returns (y, relative offsets on device)."""
    Bn = f.shape[0]
    kernel = 2 * rate
    raw_w = extract_image_patches(b, kernel, rate * stride)       # (B, Lr, C, 2r, 2r)
    f = f[:, :, ::rate, ::rate]                                   # nearest downsample
    b = b[:, :, ::rate, ::rate]
    int_fs, int_bs = f.shape, b.shape
    _, C, Hf, Wf = int_fs
    Hb, Wb = int_bs[2], int_bs[3]
    L = Hb * Wb

    w = extract_image_patches(b, ksize, stride)                   # (B, L, C, 3, 3)
    mask_s = mask[:, :, ::(4 * rate), ::(4 * rate)]
    m = extract_image_patches(mask_s, ksize, stride)              # (B, L, 1, 3, 3)
    m0 = m[0]
    mm = (jnp.mean(m0, axis=(1, 2, 3), keepdims=True) == 0.0).astype(jnp.float32)
    mask_col = mm.reshape(L, 1)

    # normalized matching filters (escape-NaN added per element, as in the reference)
    max_w = jnp.sqrt(jnp.sum(w * w + 1e-4, axis=(2, 3, 4), keepdims=True))
    w_normed = w / max_w                                          # (B, L, C, 3, 3)

    # batched matching conv as a lane-dense matmul
    f_pad = same_padding(f, (ksize, ksize), (1, 1), (1, 1))
    cols = []
    for kh in range(ksize):
        for kw in range(ksize):
            cols.append(f_pad[:, :, kh:kh + Hf, kw:kw + Wf])
    pat = jnp.stack(cols, axis=0).reshape(ksize, ksize, Bn, C, Hf, Wf)
    patT = pat.transpose(2, 3, 0, 1, 4, 5).reshape(Bn, C * ksize * ksize, Hf * Wf)
    w_mat = w_normed.reshape(Bn, L, C * ksize * ksize)
    yi = bmm_lane_dense(w_mat, patT)                              # (B, L, Hf*Wf)

    if fuse:
        k = fuse_k
        yi = _fuse_eye(yi, k)
        yi = yi.reshape(Bn, Hb, Wb, Hf, Wf).transpose(0, 2, 1, 4, 3)
        yi = yi.reshape(Bn, Wb * Hb, Wf * Hf)
        yi = _fuse_eye(yi, k)
        yi = yi.reshape(Bn, Wb, Hb, Wf, Hf).transpose(0, 2, 1, 4, 3)
        yi = yi.reshape(Bn, Hb * Wb, Hf * Wf)

    probs = masked_softmax(yi, mask_col, float(softmax_scale))    # (B, L, Hf*Wf)
    yi4 = probs.reshape(Bn, L, Hf, Wf)

    offset = jnp.argmax(yi4, axis=1)[:, None, :, :]               # (B, 1, Hf, Wf)
    if tuple(int_bs) != tuple(int_fs):
        times = float(Hf * Wf) / float(Hb * Wb)
        offset = (((offset + 1).astype(jnp.float32)) * times - 1.0).astype(jnp.int32)
    offset = jnp.concatenate([offset // Wf, offset % Wf], axis=1)  # (B, 2, Hf, Wf)

    y = batched_conv_transpose2d(yi4, raw_w, stride=rate, padding=1) / 4.0

    h_add = jnp.tile(jnp.arange(Hf).reshape(1, 1, Hf, 1), (Bn, 1, 1, Wf))
    w_add = jnp.tile(jnp.arange(Wf).reshape(1, 1, 1, Wf), (Bn, 1, Hf, 1))
    offsets_rel = offset - jnp.concatenate([h_add, w_add], axis=1)
    return y, offsets_rel


def offsets_to_flow(offsets_rel, rate):
    # TODO(synk): flow_to_image is a host-side NumPy visualization in the original
    # PyTorch code; it runs once here, after all device work has been dispatched,
    # so it never stalls the conv pipeline mid-forward.
    flow_np = flow_to_image(
        np.asarray(offsets_rel).transpose(0, 2, 3, 1).astype(np.float64)) / 255.0
    flow = jnp.asarray(flow_np).transpose(0, 3, 1, 2)
    if rate != 1:
        flow = upsample_nearest(flow, rate * 4)
    return flow


# -----------------------------------------------------------------------------
# Generator (coarse + fine) parameters and forward
# -----------------------------------------------------------------------------
def coarse_cfg(d, c):
    return [
        ("conv1", d + 2, c, 5, 1, 2, 1, "elu"),
        ("conv2_downsample", c, 2 * c, 3, 2, 1, 1, "elu"),
        ("conv3", 2 * c, 2 * c, 3, 1, 1, 1, "elu"),
        ("conv4_downsample", 2 * c, 4 * c, 3, 2, 1, 1, "elu"),
        ("conv5", 4 * c, 4 * c, 3, 1, 1, 1, "elu"),
        ("conv6", 4 * c, 4 * c, 3, 1, 1, 1, "elu"),
        ("conv7_atrous", 4 * c, 4 * c, 3, 1, 2, 2, "elu"),
        ("conv8_atrous", 4 * c, 4 * c, 3, 1, 4, 4, "elu"),
        ("conv9_atrous", 4 * c, 4 * c, 3, 1, 8, 8, "elu"),
        ("conv10_atrous", 4 * c, 4 * c, 3, 1, 16, 16, "elu"),
        ("conv11", 4 * c, 4 * c, 3, 1, 1, 1, "elu"),
        ("conv12", 4 * c, 4 * c, 3, 1, 1, 1, "elu"),
        ("conv13", 4 * c, 2 * c, 3, 1, 1, 1, "elu"),
        ("conv14", 2 * c, 2 * c, 3, 1, 1, 1, "elu"),
        ("conv15", 2 * c, c, 3, 1, 1, 1, "elu"),
        ("conv16", c, c // 2, 3, 1, 1, 1, "elu"),
        ("conv17", c // 2, d, 3, 1, 1, 1, "none"),
    ]


def fine_cfg(d, c):
    return [
        ("conv1", d + 2, c, 5, 1, 2, 1, "elu"),
        ("conv2_downsample", c, c, 3, 2, 1, 1, "elu"),
        ("conv3", c, 2 * c, 3, 1, 1, 1, "elu"),
        ("conv4_downsample", 2 * c, 2 * c, 3, 2, 1, 1, "elu"),
        ("conv5", 2 * c, 4 * c, 3, 1, 1, 1, "elu"),
        ("conv6", 4 * c, 4 * c, 3, 1, 1, 1, "elu"),
        ("conv7_atrous", 4 * c, 4 * c, 3, 1, 2, 2, "elu"),
        ("conv8_atrous", 4 * c, 4 * c, 3, 1, 4, 4, "elu"),
        ("conv9_atrous", 4 * c, 4 * c, 3, 1, 8, 8, "elu"),
        ("conv10_atrous", 4 * c, 4 * c, 3, 1, 16, 16, "elu"),
        ("pmconv1", d + 2, c, 5, 1, 2, 1, "elu"),
        ("pmconv2_downsample", c, c, 3, 2, 1, 1, "elu"),
        ("pmconv3", c, 2 * c, 3, 1, 1, 1, "elu"),
        ("pmconv4_downsample", 2 * c, 4 * c, 3, 2, 1, 1, "elu"),
        ("pmconv5", 4 * c, 4 * c, 3, 1, 1, 1, "elu"),
        ("pmconv6", 4 * c, 4 * c, 3, 1, 1, 1, "relu"),
        ("pmconv9", 4 * c, 4 * c, 3, 1, 1, 1, "elu"),
        ("pmconv10", 4 * c, 4 * c, 3, 1, 1, 1, "elu"),
        ("allconv11", 8 * c, 4 * c, 3, 1, 1, 1, "elu"),
        ("allconv12", 4 * c, 4 * c, 3, 1, 1, 1, "elu"),
        ("allconv13", 4 * c, 2 * c, 3, 1, 1, 1, "elu"),
        ("allconv14", 2 * c, 2 * c, 3, 1, 1, 1, "elu"),
        ("allconv15", 2 * c, c, 3, 1, 1, 1, "elu"),
        ("allconv16", c, c // 2, 3, 1, 1, 1, "elu"),
        ("allconv17", c // 2, d, 3, 1, 1, 1, "none"),
    ]


def init_params(key, cfg):
    params = {}
    keys = jax.random.split(key, len(cfg))
    for kk, (name, cin, cout, ks, _s, _p, _d, _a) in zip(keys, cfg):
        kw_, kb_ = jax.random.split(kk)
        fan_in = cin * ks * ks
        wgt = jax.random.normal(kw_, (cout, cin, ks, ks), jnp.float32) * (1.0 / fan_in) ** 0.5
        bias = jax.random.normal(kb_, (cout,), jnp.float32) * 0.01
        params[name] = (wgt, bias)
    return params


def blk(params, meta, name, x):
    wgt, bias = params[name]
    _cin, _cout, _ks, stride, pad, dil, act = meta[name]
    return conv2d(x, wgt, bias, stride=stride, padding=pad, dilation=dil, act=act)


def coarse_forward(p, meta, x, mask):
    B, _, H, W = x.shape
    ones = jnp.ones((B, 1, H, W), jnp.float32)
    x = blk(p, meta, "conv1", jnp.concatenate([x, ones, mask], axis=1))
    for name in ["conv2_downsample", "conv3", "conv4_downsample", "conv5", "conv6",
                 "conv7_atrous", "conv8_atrous", "conv9_atrous", "conv10_atrous",
                 "conv11", "conv12"]:
        x = blk(p, meta, name, x)
    x = upsample_nearest(x, 2)
    x = blk(p, meta, "conv13", x)
    x = blk(p, meta, "conv14", x)
    x = upsample_nearest(x, 2)
    x = blk(p, meta, "conv15", x)
    x = blk(p, meta, "conv16", x)
    x = blk(p, meta, "conv17", x)
    return jnp.clip(x, -1.0, 1.0)


def fine_forward(p, meta, xin, x_stage1, mask):
    x1_inpaint = x_stage1 * mask + xin * (1.0 - mask)
    B, _, H, W = xin.shape
    ones = jnp.ones((B, 1, H, W), jnp.float32)
    xnow = jnp.concatenate([x1_inpaint, ones, mask], axis=1)
    # hallucination branch
    x = blk(p, meta, "conv1", xnow)
    for name in ["conv2_downsample", "conv3", "conv4_downsample", "conv5", "conv6",
                 "conv7_atrous", "conv8_atrous", "conv9_atrous", "conv10_atrous"]:
        x = blk(p, meta, name, x)
    x_hallu = x
    # attention branch
    x = blk(p, meta, "pmconv1", xnow)
    for name in ["pmconv2_downsample", "pmconv3", "pmconv4_downsample", "pmconv5",
                 "pmconv6"]:
        x = blk(p, meta, name, x)
    x, offsets_rel = contextual_attention(x, x, mask, ksize=3, stride=1, rate=2,
                                          fuse_k=3, softmax_scale=10.0, fuse=True)
    x = blk(p, meta, "pmconv9", x)
    x = blk(p, meta, "pmconv10", x)
    pm = x
    x = jnp.concatenate([x_hallu, pm], axis=1)
    x = blk(p, meta, "allconv11", x)
    x = blk(p, meta, "allconv12", x)
    x = upsample_nearest(x, 2)
    x = blk(p, meta, "allconv13", x)
    x = blk(p, meta, "allconv14", x)
    x = upsample_nearest(x, 2)
    x = blk(p, meta, "allconv15", x)
    x = blk(p, meta, "allconv16", x)
    x = blk(p, meta, "allconv17", x)
    return jnp.clip(x, -1.0, 1.0), offsets_rel


@functools.partial(jax.jit, static_argnames=("input_dim", "cnum"))
def _device_forward(coarse_p, fine_p, x, mask, input_dim, cnum):
    cmeta = {e[0]: tuple(e[1:]) for e in coarse_cfg(input_dim, cnum)}
    fmeta = {e[0]: tuple(e[1:]) for e in fine_cfg(input_dim, cnum)}
    x_stage1 = coarse_forward(coarse_p, cmeta, x, mask)
    x_stage2, offsets_rel = fine_forward(fine_p, fmeta, x, x_stage1, mask)
    return x_stage1, x_stage2, offsets_rel


def generator_forward(coarse_p, fine_p, x, mask, input_dim, cnum, rate=2):
    x_stage1, x_stage2, offsets_rel = _device_forward(
        coarse_p, fine_p, x, mask, input_dim=input_dim, cnum=cnum)
    offset_flow = offsets_to_flow(offsets_rel, rate)
    return x_stage1, x_stage2, offset_flow


# -----------------------------------------------------------------------------
if __name__ == "__main__":
    input_dim, cnum = 3, 8        # config['netG']['input_dim'], config['netG']['ngf']
    B, H, W = 2, 16, 16

    key = jax.random.PRNGKey(0)
    kx, kp1, kp2 = jax.random.split(key, 3)
    x = jax.random.uniform(kx, (B, input_dim, H, W), jnp.float32, -1.0, 1.0)
    mask = jnp.zeros((B, 1, H, W), jnp.float32).at[:, :, 4:12, 4:12].set(1.0)

    coarse_params = init_params(kp1, coarse_cfg(input_dim, cnum))
    fine_params = init_params(kp2, fine_cfg(input_dim, cnum))

    x_stage1, x_stage2, offset_flow = generator_forward(
        coarse_params, fine_params, x, mask, input_dim, cnum)
    jax.block_until_ready((x_stage1, x_stage2, offset_flow))

    assert x_stage1.shape == (B, input_dim, H, W)
    assert x_stage2.shape == (B, input_dim, H, W)
    assert offset_flow.shape == (B, 3, H, W)
    assert bool(jnp.all(jnp.isfinite(x_stage1)))
    assert bool(jnp.all(jnp.isfinite(x_stage2)))
    print("KERNEL_OK")
</pallas_src>

<mosaic_0001>
module attributes {stable_mosaic.version = 11 : i64} {
  func.func @kernel(%arg0: i32, %arg1: memref<8x125xbf16, #tpu.memory_space<vmem>>, %arg2: memref<125x512xbf16, #tpu.memory_space<vmem>>, %arg3: memref<8x1xf32, #tpu.memory_space<vmem>>, %arg4: memref<8x512xf32, #tpu.memory_space<vmem>>) attributes {dimension_semantics = [#tpu.dimension_semantics<parallel>], iteration_bounds = array<i64: 1>, scalar_prefetch = 0 : i64, scratch_operands = 0 : i64, tpu.core_type = #tpu.core_type<tc>, window_params = [{pipeline_mode = #tpu.pipeline_mode<synchronous>, transform_indices = @transform_0, window_bounds = array<i64: 8, 125>}, {transform_indices = @transform_1, window_bounds = array<i64: 125, 512>}, {pipeline_mode = #tpu.pipeline_mode<synchronous>, transform_indices = @transform_2, window_bounds = array<i64: 8, 1>}, {transform_indices = @transform_3, window_bounds = array<i64: 8, 512>}]} {
    %c0 = arith.constant 0 : index
    %c0_0 = arith.constant 0 : index
    %0 = vector.load %arg1[%c0, %c0_0] : memref<8x125xbf16, #tpu.memory_space<vmem>>, vector<8x125xbf16>
    %c0_1 = arith.constant 0 : index
    %c0_2 = arith.constant 0 : index
    %1 = vector.load %arg2[%c0_1, %c0_2] : memref<125x512xbf16, #tpu.memory_space<vmem>>, vector<125x512xbf16>
    %cst = arith.constant dense<0.000000e+00> : vector<8x512xf32>
    %2 = tpu.matmul %0, %1, %cst {dimension_numbers = #tpu.dot_dimension_numbers<[1], [0], [0], [1], [0, 0, 1, 1], [], []>} : vector<8x125xbf16>, vector<125x512xbf16>, vector<8x512xf32> -> vector<8x512xf32>
    %c0_3 = arith.constant 0 : index
    %c0_4 = arith.constant 0 : index
    %3 = vector.load %arg3[%c0_3, %c0_4] : memref<8x1xf32, #tpu.memory_space<vmem>>, vector<8x1xf32>
    %4 = vector.broadcast %3 : vector<8x1xf32> to vector<8x512xf32>
    %5 = arith.addf %2, %4 : vector<8x512xf32>
    %cst_5 = arith.constant 0.000000e+00 : f32
    %6 = vector.broadcast %cst_5 : f32 to vector<8x512xf32>
    %7 = arith.cmpf ogt, %5, %6 : vector<8x512xf32>
    %cst_6 = arith.constant 0.000000e+00 : f32
    %8 = vector.broadcast %cst_6 : f32 to vector<8x512xf32>
    %9 = arith.minimumf %5, %8 : vector<8x512xf32>
    %10 = math.exp %9 : vector<8x512xf32>
    %cst_7 = arith.constant 1.000000e+00 : f32
    %11 = vector.broadcast %cst_7 : f32 to vector<8x512xf32>
    %12 = arith.subf %10, %11 : vector<8x512xf32>
    %13 = arith.select %7, %5, %12 : vector<8x512xi1>, vector<8x512xf32>
    %c0_8 = arith.constant 0 : index
    %c0_9 = arith.constant 0 : index
    %14 = vector.load %arg4[%c0_8, %c0_9] : memref<8x512xf32, #tpu.memory_space<vmem>>, vector<8x512xf32>
    tpu.vector_store %arg4[%c0_8, %c0_9], %13 {strides = array<i32>} : memref<8x512xf32, #tpu.memory_space<vmem>>, vector<8x512xf32>,
    return
  }
  func.func @transform_0(%arg0: i32) -> (i32, i32) {
    %c0_i32 = arith.constant 0 : i32
    %c0_i32_0 = arith.constant 0 : i32
    %c0_i32_1 = arith.constant 0 : i32
    return %c0_i32, %c0_i32_0 : i32, i32
  }
  func.func @transform_1(%arg0: i32) -> (i32, i32) {
    %c0_i32 = arith.constant 0 : i32
    %c0_i32_0 = arith.constant 0 : i32
    return %c0_i32, %arg0 : i32, i32
  }
  func.func @transform_2(%arg0: i32) -> (i32, i32) {
    %c0_i32 = arith.constant 0 : i32
    %c0_i32_0 = arith.constant 0 : i32
    %c0_i32_1 = arith.constant 0 : i32
    return %c0_i32, %c0_i32_0 : i32, i32
  }
  func.func @transform_3(%arg0: i32) -> (i32, i32) {
    %c0_i32 = arith.constant 0 : i32
    %c0_i32_0 = arith.constant 0 : i32
    return %c0_i32, %arg0 : i32, i32
  }
}

module attributes {stable_mosaic.version = 11 : i64} {
  func.func @kernel(%arg0: i32, %arg1: memref<16x72xbf16, #tpu.memory_space<vmem>>, %arg2: memref<72x128xbf16, #tpu.memory_space<vmem>>, %arg3: memref<16x1xf32, #tpu.memory_space<vmem>>, %arg4: memref<16x128xf32, #tpu.memory_space<vmem>>) attributes {dimension_semantics = [#tpu.dimension_semantics<parallel>], iteration_bounds = array<i64: 1>, scalar_prefetch = 0 : i64, scratch_operands = 0 : i64, tpu.core_type = #tpu.core_type<tc>, window_params = [{pipeline_mode = #tpu.pipeline_mode<synchronous>, transform_indices = @transform_0, window_bounds = array<i64: 16, 72>}, {transform_indices = @transform_1, window_bounds = array<i64: 72, 128>}, {pipeline_mode = #tpu.pipeline_mode<synchronous>, transform_indices = @transform_2, window_bounds = array<i64: 16, 1>}, {transform_indices = @transform_3, window_bounds = array<i64: 16, 128>}]} {
    %c0 = arith.constant 0 : index
    %c0_0 = arith.constant 0 : index
    %0 = vector.load %arg1[%c0, %c0_0] : memref<16x72xbf16, #tpu.memory_space<vmem>>, vector<16x72xbf16>
    %c0_1 = arith.constant 0 : index
    %c0_2 = arith.constant 0 : index
    %1 = vector.load %arg2[%c0_1, %c0_2] : memref<72x128xbf16, #tpu.memory_space<vmem>>, vector<72x128xbf16>
    %cst = arith.constant dense<0.000000e+00> : vector<16x128xf32>
    %2 = tpu.matmul %0, %1, %cst {dimension_numbers = #tpu.dot_dimension_numbers<[1], [0], [0], [1], [0, 0, 1, 1], [], []>} : vector<16x72xbf16>, vector<72x128xbf16>, vector<16x128xf32> -> vector<16x128xf32>
    %c0_3 = arith.constant 0 : index
    %c0_4 = arith.constant 0 : index
    %3 = vector.load %arg3[%c0_3, %c0_4] : memref<16x1xf32, #tpu.memory_space<vmem>>, vector<16x1xf32>
    %4 = vector.broadcast %3 : vector<16x1xf32> to vector<16x128xf32>
    %5 = arith.addf %2, %4 : vector<16x128xf32>
    %cst_5 = arith.constant 0.000000e+00 : f32
    %6 = vector.broadcast %cst_5 : f32 to vector<16x128xf32>
    %7 = arith.cmpf ogt, %5, %6 : vector<16x128xf32>
    %cst_6 = arith.constant 0.000000e+00 : f32
    %8 = vector.broadcast %cst_6 : f32 to vector<16x128xf32>
    %9 = arith.minimumf %5, %8 : vector<16x128xf32>
    %10 = math.exp %9 : vector<16x128xf32>
    %cst_7 = arith.constant 1.000000e+00 : f32
    %11 = vector.broadcast %cst_7 : f32 to vector<16x128xf32>
    %12 = arith.subf %10, %11 : vector<16x128xf32>
    %13 = arith.select %7, %5, %12 : vector<16x128xi1>, vector<16x128xf32>
    %c0_8 = arith.constant 0 : index
    %c0_9 = arith.constant 0 : index
    %14 = vector.load %arg4[%c0_8, %c0_9] : memref<16x128xf32, #tpu.memory_space<vmem>>, vector<16x128xf32>
    tpu.vector_store %arg4[%c0_8, %c0_9], %13 {strides = array<i32>} : memref<16x128xf32, #tpu.memory_space<vmem>>, vector<16x128xf32>,
    return
  }
  func.func @transform_0(%arg0: i32) -> (i32, i32) {
    %c0_i32 = arith.constant 0 : i32
    %c0_i32_0 = arith.constant 0 : i32
    %c0_i32_1 = arith.constant 0 : i32
    return %c0_i32, %c0_i32_0 : i32, i32
  }
  func.func @transform_1(%arg0: i32) -> (i32, i32) {
    %c0_i32 = arith.constant 0 : i32
    %c0_i32_0 = arith.constant 0 : i32
    return %c0_i32, %arg0 : i32, i32
  }
  func.func @transform_2(%arg0: i32) -> (i32, i32) {
    %c0_i32 = arith.constant 0 : i32
    %c0_i32_0 = arith.constant 0 : i32
    %c0_i32_1 = arith.constant 0 : i32
    return %c0_i32, %c0_i32_0 : i32, i32
  }
  func.func @transform_3(%arg0: i32) -> (i32, i32) {
    %c0_i32 = arith.constant 0 : i32
    %c0_i32_0 = arith.constant 0 : i32
    return %c0_i32, %arg0 : i32, i32
  }
}

module attributes {stable_mosaic.version = 11 : i64} {
  func.func @kernel(%arg0: i32, %arg1: memref<16x144xbf16, #tpu.memory_space<vmem>>, %arg2: memref<144x128xbf16, #tpu.memory_space<vmem>>, %arg3: memref<16x1xf32, #tpu.memory_space<vmem>>, %arg4: memref<16x128xf32, #tpu.memory_space<vmem>>) attributes {dimension_semantics = [#tpu.dimension_semantics<parallel>], iteration_bounds = array<i64: 1>, scalar_prefetch = 0 : i64, scratch_operands = 0 : i64, tpu.core_type = #tpu.core_type<tc>, window_params = [{pipeline_mode = #tpu.pipeline_mode<synchronous>, transform_indices = @transform_0, window_bounds = array<i64: 16, 144>}, {transform_indices = @transform_1, window_bounds = array<i64: 144, 128>}, {pipeline_mode = #tpu.pipeline_mode<synchronous>, transform_indices = @transform_2, window_bounds = array<i64: 16, 1>}, {transform_indices = @transform_3, window_bounds = array<i64: 16, 128>}]} {
    %c0 = arith.constant 0 : index
    %c0_0 = arith.constant 0 : index
    %0 = vector.load %arg1[%c0, %c0_0] : memref<16x144xbf16, #tpu.memory_space<vmem>>, vector<16x144xbf16>
    %c0_1 = arith.constant 0 : index
    %c0_2 = arith.constant 0 : index
    %1 = vector.load %arg2[%c0_1, %c0_2] : memref<144x128xbf16, #tpu.memory_space<vmem>>, vector<144x128xbf16>
    %cst = arith.constant dense<0.000000e+00> : vector<16x128xf32>
    %2 = tpu.matmul %0, %1, %cst {dimension_numbers = #tpu.dot_dimension_numbers<[1], [0], [0], [1], [0, 0, 1, 1], [], []>} : vector<16x144xbf16>, vector<144x128xbf16>, vector<16x128xf32> -> vector<16x128xf32>
    %c0_3 = arith.constant 0 : index
    %c0_4 = arith.constant 0 : index
    %3 = vector.load %arg3[%c0_3, %c0_4] : memref<16x1xf32, #tpu.memory_space<vmem>>, vector<16x1xf32>
    %4 = vector.broadcast %3 : vector<16x1xf32> to vector<16x128xf32>
    %5 = arith.addf %2, %4 : vector<16x128xf32>
    %cst_5 = arith.constant 0.000000e+00 : f32
    %6 = vector.broadcast %cst_5 : f32 to vector<16x128xf32>
    %7 = arith.cmpf ogt, %5, %6 : vector<16x128xf32>
    %cst_6 = arith.constant 0.000000e+00 : f32
    %8 = vector.broadcast %cst_6 : f32 to vector<16x128xf32>
    %9 = arith.minimumf %5, %8 : vector<16x128xf32>
    %10 = math.exp %9 : vector<16x128xf32>
    %cst_7 = arith.constant 1.000000e+00 : f32
    %11 = vector.broadcast %cst_7 : f32 to vector<16x128xf32>
    %12 = arith.subf %10, %11 : vector<16x128xf32>
    %13 = arith.select %7, %5, %12 : vector<16x128xi1>, vector<16x128xf32>
    %c0_8 = arith.constant 0 : index
    %c0_9 = arith.constant 0 : index
    %14 = vector.load %arg4[%c0_8, %c0_9] : memref<16x128xf32, #tpu.memory_space<vmem>>, vector<16x128xf32>
    tpu.vector_store %arg4[%c0_8, %c0_9], %13 {strides = array<i32>} : memref<16x128xf32, #tpu.memory_space<vmem>>, vector<16x128xf32>,
    return
  }
  func.func @transform_0(%arg0: i32) -> (i32, i32) {
    %c0_i32 = arith.constant 0 : i32
    %c0_i32_0 = arith.constant 0 : i32
    %c0_i32_1 = arith.constant 0 : i32
    return %c0_i32, %c0_i32_0 : i32, i32
  }
  func.func @transform_1(%arg0: i32) -> (i32, i32) {
    %c0_i32 = arith.constant 0 : i32
    %c0_i32_0 = arith.constant 0 : i32
    return %c0_i32, %arg0 : i32, i32
  }
  func.func @transform_2(%arg0: i32) -> (i32, i32) {
    %c0_i32 = arith.constant 0 : i32
    %c0_i32_0 = arith.constant 0 : i32
    %c0_i32_1 = arith.constant 0 : i32
    return %c0_i32, %c0_i32_0 : i32, i32
  }
  func.func @transform_3(%arg0: i32) -> (i32, i32) {
    %c0_i32 = arith.constant 0 : i32
    %c0_i32_0 = arith.constant 0 : i32
    return %c0_i32, %arg0 : i32, i32
  }
}

module attributes {stable_mosaic.version = 11 : i64} {
  func.func @kernel(%arg0: i32, %arg1: memref<32x144xbf16, #tpu.memory_space<vmem>>, %arg2: memref<144x128xbf16, #tpu.memory_space<vmem>>, %arg3: memref<32x1xf32, #tpu.memory_space<vmem>>, %arg4: memref<32x128xf32, #tpu.memory_space<vmem>>) attributes {dimension_semantics = [#tpu.dimension_semantics<parallel>], iteration_bounds = array<i64: 1>, scalar_prefetch = 0 : i64, scratch_operands = 0 : i64, tpu.core_type = #tpu.core_type<tc>, window_params = [{pipeline_mode = #tpu.pipeline_mode<synchronous>, transform_indices = @transform_0, window_bounds = array<i64: 32, 144>}, {transform_indices = @transform_1, window_bounds = array<i64: 144, 128>}, {pipeline_mode = #tpu.pipeline_mode<synchronous>, transform_indices = @transform_2, window_bounds = array<i64: 32, 1>}, {transform_indices = @transform_3, window_bounds = array<i64: 32, 128>}]} {
    %c0 = arith.constant 0 : index
    %c0_0 = arith.constant 0 : index
    %0 = vector.load %arg1[%c0, %c0_0] : memref<32x144xbf16, #tpu.memory_space<vmem>>, vector<32x144xbf16>
    %c0_1 = arith.constant 0 : index
    %c0_2 = arith.constant 0 : index
    %1 = vector.load %arg2[%c0_1, %c0_2] : memref<144x128xbf16, #tpu.memory_space<vmem>>, vector<144x128xbf16>
    %cst = arith.constant dense<0.000000e+00> : vector<32x128xf32>
    %2 = tpu.matmul %0, %1, %cst {dimension_numbers = #tpu.dot_dimension_numbers<[1], [0], [0], [1], [0, 0, 1, 1], [], []>} : vector<32x144xbf16>, vector<144x128xbf16>, vector<32x128xf32> -> vector<32x128xf32>
    %c0_3 = arith.constant 0 : index
    %c0_4 = arith.constant 0 : index
    %3 = vector.load %arg3[%c0_3, %c0_4] : memref<32x1xf32, #tpu.memory_space<vmem>>, vector<32x1xf32>
    %4 = vector.broadcast %3 : vector<32x1xf32> to vector<32x128xf32>
    %5 = arith.addf %2, %4 : vector<32x128xf32>
    %cst_5 = arith.constant 0.000000e+00 : f32
    %6 = vector.broadcast %cst_5 : f32 to vector<32x128xf32>
    %7 = arith.cmpf ogt, %5, %6 : vector<32x128xf32>
    %cst_6 = arith.constant 0.000000e+00 : f32
    %8 = vector.broadcast %cst_6 : f32 to vector<32x128xf32>
    %9 = arith.minimumf %5, %8 : vector<32x128xf32>
    %10 = math.exp %9 : vector<32x128xf32>
    %cst_7 = arith.constant 1.000000e+00 : f32
    %11 = vector.broadcast %cst_7 : f32 to vector<32x128xf32>
    %12 = arith.subf %10, %11 : vector<32x128xf32>
    %13 = arith.select %7, %5, %12 : vector<32x128xi1>, vector<32x128xf32>
    %c0_8 = arith.constant 0 : index
    %c0_9 = arith.constant 0 : index
    %14 = vector.load %arg4[%c0_8, %c0_9] : memref<32x128xf32, #tpu.memory_space<vmem>>, vector<32x128xf32>
    tpu.vector_store %arg4[%c0_8, %c0_9], %13 {strides = array<i32>} : memref<32x128xf32, #tpu.memory_space<vmem>>, vector<32x128xf32>,
    return
  }
  func.func @transform_0(%arg0: i32) -> (i32, i32) {
    %c0_i32 = arith.constant 0 : i32
    %c0_i32_0 = arith.constant 0 : i32
    %c0_i32_1 = arith.constant 0 : i32
    return %c0_i32, %c0_i32_0 : i32, i32
  }
  func.func @transform_1(%arg0: i32) -> (i32, i32) {
    %c0_i32 = arith.constant 0 : i32
    %c0_i32_0 = arith.constant 0 : i32
    return %c0_i32, %arg0 : i32, i32
  }
  func.func @transform_2(%arg0: i32) -> (i32, i32) {
    %c0_i32 = arith.constant 0 : i32
    %c0_i32_0 = arith.constant 0 : i32
    %c0_i32_1 = arith.constant 0 : i32
    return %c0_i32, %c0_i32_0 : i32, i32
  }
  func.func @transform_3(%arg0: i32) -> (i32, i32) {
    %c0_i32 = arith.constant 0 : i32
    %c0_i32_0 = arith.constant 0 : i32
    return %c0_i32, %arg0 : i32, i32
  }
}

module attributes {stable_mosaic.version = 11 : i64} {
  func.func @kernel(%arg0: i32, %arg1: memref<32x288xbf16, #tpu.memory_space<vmem>>, %arg2: memref<288x128xbf16, #tpu.memory_space<vmem>>, %arg3: memref<32x1xf32, #tpu.memory_space<vmem>>, %arg4: memref<32x128xf32, #tpu.memory_space<vmem>>) attributes {dimension_semantics = [#tpu.dimension_semantics<parallel>], iteration_bounds = array<i64: 1>, scalar_prefetch = 0 : i64, scratch_operands = 0 : i64, tpu.core_type = #tpu.core_type<tc>, window_params = [{pipeline_mode = #tpu.pipeline_mode<synchronous>, transform_indices = @transform_0, window_bounds = array<i64: 32, 288>}, {transform_indices = @transform_1, window_bounds = array<i64: 288, 128>}, {pipeline_mode = #tpu.pipeline_mode<synchronous>, transform_indices = @transform_2, window_bounds = array<i64: 32, 1>}, {transform_indices = @transform_3, window_bounds = array<i64: 32, 128>}]} {
    %c0 = arith.constant 0 : index
    %c0_0 = arith.constant 0 : index
    %0 = vector.load %arg1[%c0, %c0_0] : memref<32x288xbf16, #tpu.memory_space<vmem>>, vector<32x288xbf16>
    %c0_1 = arith.constant 0 : index
    %c0_2 = arith.constant 0 : index
    %1 = vector.load %arg2[%c0_1, %c0_2] : memref<288x128xbf16, #tpu.memory_space<vmem>>, vector<288x128xbf16>
    %cst = arith.constant dense<0.000000e+00> : vector<32x128xf32>
    %2 = tpu.matmul %0, %1, %cst {dimension_numbers = #tpu.dot_dimension_numbers<[1], [0], [0], [1], [0, 0, 1, 1], [], []>} : vector<32x288xbf16>, vector<288x128xbf16>, vector<32x128xf32> -> vector<32x128xf32>
    %c0_3 = arith.constant 0 : index
    %c0_4 = arith.constant 0 : index
    %3 = vector.load %arg3[%c0_3, %c0_4] : memref<32x1xf32, #tpu.memory_space<vmem>>, vector<32x1xf32>
    %4 = vector.broadcast %3 : vector<32x1xf32> to vector<32x128xf32>
    %5 = arith.addf %2, %4 : vector<32x128xf32>
    %cst_5 = arith.constant 0.000000e+00 : f32
    %6 = vector.broadcast %cst_5 : f32 to vector<32x128xf32>
    %7 = arith.cmpf ogt, %5, %6 : vector<32x128xf32>
    %cst_6 = arith.constant 0.000000e+00 : f32
    %8 = vector.broadcast %cst_6 : f32 to vector<32x128xf32>
    %9 = arith.minimumf %5, %8 : vector<32x128xf32>
    %10 = math.exp %9 : vector<32x128xf32>
    %cst_7 = arith.constant 1.000000e+00 : f32
    %11 = vector.broadcast %cst_7 : f32 to vector<32x128xf32>
    %12 = arith.subf %10, %11 : vector<32x128xf32>
    %13 = arith.select %7, %5, %12 : vector<32x128xi1>, vector<32x128xf32>
    %c0_8 = arith.constant 0 : index
    %c0_9 = arith.constant 0 : index
    %14 = vector.load %arg4[%c0_8, %c0_9] : memref<32x128xf32, #tpu.memory_space<vmem>>, vector<32x128xf32>
    tpu.vector_store %arg4[%c0_8, %c0_9], %13 {strides = array<i32>} : memref<32x128xf32, #tpu.memory_space<vmem>>, vector<32x128xf32>,
    return
  }
  func.func @transform_0(%arg0: i32) -> (i32, i32) {
    %c0_i32 = arith.constant 0 : i32
    %c0_i32_0 = arith.constant 0 : i32
    %c0_i32_1 = arith.constant 0 : i32
    return %c0_i32, %c0_i32_0 : i32, i32
  }
  func.func @transform_1(%arg0: i32) -> (i32, i32) {
    %c0_i32 = arith.constant 0 : i32
    %c0_i32_0 = arith.constant 0 : i32
    return %c0_i32, %arg0 : i32, i32
  }
  func.func @transform_2(%arg0: i32) -> (i32, i32) {
    %c0_i32 = arith.constant 0 : i32
    %c0_i32_0 = arith.constant 0 : i32
    %c0_i32_1 = arith.constant 0 : i32
    return %c0_i32, %c0_i32_0 : i32, i32
  }
  func.func @transform_3(%arg0: i32) -> (i32, i32) {
    %c0_i32 = arith.constant 0 : i32
    %c0_i32_0 = arith.constant 0 : i32
    return %c0_i32, %arg0 : i32, i32
  }
}

module attributes {stable_mosaic.version = 11 : i64} {
  func.func @kernel(%arg0: i32, %arg1: memref<16x288xbf16, #tpu.memory_space<vmem>>, %arg2: memref<288x128xbf16, #tpu.memory_space<vmem>>, %arg3: memref<16x1xf32, #tpu.memory_space<vmem>>, %arg4: memref<16x128xf32, #tpu.memory_space<vmem>>) attributes {dimension_semantics = [#tpu.dimension_semantics<parallel>], iteration_bounds = array<i64: 1>, scalar_prefetch = 0 : i64, scratch_operands = 0 : i64, tpu.core_type = #tpu.core_type<tc>, window_params = [{pipeline_mode = #tpu.pipeline_mode<synchronous>, transform_indices = @transform_0, window_bounds = array<i64: 16, 288>}, {transform_indices = @transform_1, window_bounds = array<i64: 288, 128>}, {pipeline_mode = #tpu.pipeline_mode<synchronous>, transform_indices = @transform_2, window_bounds = array<i64: 16, 1>}, {transform_indices = @transform_3, window_bounds = array<i64: 16, 128>}]} {
    %c0 = arith.constant 0 : index
    %c0_0 = arith.constant 0 : index
    %0 = vector.load %arg1[%c0, %c0_0] : memref<16x288xbf16, #tpu.memory_space<vmem>>, vector<16x288xbf16>
    %c0_1 = arith.constant 0 : index
    %c0_2 = arith.constant 0 : index
    %1 = vector.load %arg2[%c0_1, %c0_2] : memref<288x128xbf16, #tpu.memory_space<vmem>>, vector<288x128xbf16>
    %cst = arith.constant dense<0.000000e+00> : vector<16x128xf32>
    %2 = tpu.matmul %0, %1, %cst {dimension_numbers = #tpu.dot_dimension_numbers<[1], [0], [0], [1], [0, 0, 1, 1], [], []>} : vector<16x288xbf16>, vector<288x128xbf16>, vector<16x128xf32> -> vector<16x128xf32>
    %c0_3 = arith.constant 0 : index
    %c0_4 = arith.constant 0 : index
    %3 = vector.load %arg3[%c0_3, %c0_4] : memref<16x1xf32, #tpu.memory_space<vmem>>, vector<16x1xf32>
    %4 = vector.broadcast %3 : vector<16x1xf32> to vector<16x128xf32>
    %5 = arith.addf %2, %4 : vector<16x128xf32>
    %cst_5 = arith.constant 0.000000e+00 : f32
    %6 = vector.broadcast %cst_5 : f32 to vector<16x128xf32>
    %7 = arith.cmpf ogt, %5, %6 : vector<16x128xf32>
    %cst_6 = arith.constant 0.000000e+00 : f32
    %8 = vector.broadcast %cst_6 : f32 to vector<16x128xf32>
    %9 = arith.minimumf %5, %8 : vector<16x128xf32>
    %10 = math.exp %9 : vector<16x128xf32>
    %cst_7 = arith.constant 1.000000e+00 : f32
    %11 = vector.broadcast %cst_7 : f32 to vector<16x128xf32>
    %12 = arith.subf %10, %11 : vector<16x128xf32>
    %13 = arith.select %7, %5, %12 : vector<16x128xi1>, vector<16x128xf32>
    %c0_8 = arith.constant 0 : index
    %c0_9 = arith.constant 0 : index
    %14 = vector.load %arg4[%c0_8, %c0_9] : memref<16x128xf32, #tpu.memory_space<vmem>>, vector<16x128xf32>
    tpu.vector_store %arg4[%c0_8, %c0_9], %13 {strides = array<i32>} : memref<16x128xf32, #tpu.memory_space<vmem>>, vector<16x128xf32>,
    return
  }
  func.func @transform_0(%arg0: i32) -> (i32, i32) {
    %c0_i32 = arith.constant 0 : i32
    %c0_i32_0 = arith.constant 0 : i32
    %c0_i32_1 = arith.constant 0 : i32
    return %c0_i32, %c0_i32_0 : i32, i32
  }
  func.func @transform_1(%arg0: i32) -> (i32, i32) {
    %c0_i32 = arith.constant 0 : i32
    %c0_i32_0 = arith.constant 0 : i32
    return %c0_i32, %arg0 : i32, i32
  }
  func.func @transform_2(%arg0: i32) -> (i32, i32) {
    %c0_i32 = arith.constant 0 : i32
    %c0_i32_0 = arith.constant 0 : i32
    %c0_i32_1 = arith.constant 0 : i32
    return %c0_i32, %c0_i32_0 : i32, i32
  }
  func.func @transform_3(%arg0: i32) -> (i32, i32) {
    %c0_i32 = arith.constant 0 : i32
    %c0_i32_0 = arith.constant 0 : i32
    return %c0_i32, %arg0 : i32, i32
  }
}

module attributes {stable_mosaic.version = 11 : i64} {
  func.func @kernel(%arg0: i32, %arg1: memref<8x144xbf16, #tpu.memory_space<vmem>>, %arg2: memref<144x512xbf16, #tpu.memory_space<vmem>>, %arg3: memref<8x1xf32, #tpu.memory_space<vmem>>, %arg4: memref<8x512xf32, #tpu.memory_space<vmem>>) attributes {dimension_semantics = [#tpu.dimension_semantics<parallel>], iteration_bounds = array<i64: 1>, scalar_prefetch = 0 : i64, scratch_operands = 0 : i64, tpu.core_type = #tpu.core_type<tc>, window_params = [{pipeline_mode = #tpu.pipeline_mode<synchronous>, transform_indices = @transform_0, window_bounds = array<i64: 8, 144>}, {transform_indices = @transform_1, window_bounds = array<i64: 144, 512>}, {pipeline_mode = #tpu.pipeline_mode<synchronous>, transform_indices = @transform_2, window_bounds = array<i64: 8, 1>}, {transform_indices = @transform_3, window_bounds = array<i64: 8, 512>}]} {
    %c0 = arith.constant 0 : index
    %c0_0 = arith.constant 0 : index
    %0 = vector.load %arg1[%c0, %c0_0] : memref<8x144xbf16, #tpu.memory_space<vmem>>, vector<8x144xbf16>
    %c0_1 = arith.constant 0 : index
    %c0_2 = arith.constant 0 : index
    %1 = vector.load %arg2[%c0_1, %c0_2] : memref<144x512xbf16, #tpu.memory_space<vmem>>, vector<144x512xbf16>
    %cst = arith.constant dense<0.000000e+00> : vector<8x512xf32>
    %2 = tpu.matmul %0, %1, %cst {dimension_numbers = #tpu.dot_dimension_numbers<[1], [0], [0], [1], [0, 0, 1, 1], [], []>} : vector<8x144xbf16>, vector<144x512xbf16>, vector<8x512xf32> -> vector<8x512xf32>
    %c0_3 = arith.constant 0 : index
    %c0_4 = arith.constant 0 : index
    %3 = vector.load %arg3[%c0_3, %c0_4] : memref<8x1xf32, #tpu.memory_space<vmem>>, vector<8x1xf32>
    %4 = vector.broadcast %3 : vector<8x1xf32> to vector<8x512xf32>
    %5 = arith.addf %2, %4 : vector<8x512xf32>
    %cst_5 = arith.constant 0.000000e+00 : f32
    %6 = vector.broadcast %cst_5 : f32 to vector<8x512xf32>
    %7 = arith.cmpf ogt, %5, %6 : vector<8x512xf32>
    %cst_6 = arith.constant 0.000000e+00 : f32
    %8 = vector.broadcast %cst_6 : f32 to vector<8x512xf32>
    %9 = arith.minimumf %5, %8 : vector<8x512xf32>
    %10 = math.exp %9 : vector<8x512xf32>
    %cst_7 = arith.constant 1.000000e+00 : f32
    %11 = vector.broadcast %cst_7 : f32 to vector<8x512xf32>
    %12 = arith.subf %10, %11 : vector<8x512xf32>
    %13 = arith.select %7, %5, %12 : vector<8x512xi1>, vector<8x512xf32>
    %c0_8 = arith.constant 0 : index
    %c0_9 = arith.constant 0 : index
    %14 = vector.load %arg4[%c0_8, %c0_9] : memref<8x512xf32, #tpu.memory_space<vmem>>, vector<8x512xf32>
    tpu.vector_store %arg4[%c0_8, %c0_9], %13 {strides = array<i32>} : memref<8x512xf32, #tpu.memory_space<vmem>>, vector<8x512xf32>,
    return
  }
  func.func @transform_0(%arg0: i32) -> (i32, i32) {
    %c0_i32 = arith.constant 0 : i32
    %c0_i32_0 = arith.constant 0 : i32
    %c0_i32_1 = arith.constant 0 : i32
    return %c0_i32, %c0_i32_0 : i32, i32
  }
  func.func @transform_1(%arg0: i32) -> (i32, i32) {
    %c0_i32 = arith.constant 0 : i32
    %c0_i32_0 = arith.constant 0 : i32
    return %c0_i32, %arg0 : i32, i32
  }
  func.func @transform_2(%arg0: i32) -> (i32, i32) {
    %c0_i32 = arith.constant 0 : i32
    %c0_i32_0 = arith.constant 0 : i32
    %c0_i32_1 = arith.constant 0 : i32
    return %c0_i32, %c0_i32_0 : i32, i32
  }
  func.func @transform_3(%arg0: i32) -> (i32, i32) {
    %c0_i32 = arith.constant 0 : i32
    %c0_i32_0 = arith.constant 0 : i32
    return %c0_i32, %arg0 : i32, i32
  }
}

module attributes {stable_mosaic.version = 11 : i64} {
  func.func @kernel(%arg0: i32, %arg1: memref<4x72xbf16, #tpu.memory_space<vmem>>, %arg2: memref<72x512xbf16, #tpu.memory_space<vmem>>, %arg3: memref<4x1xf32, #tpu.memory_space<vmem>>, %arg4: memref<4x512xf32, #tpu.memory_space<vmem>>) attributes {dimension_semantics = [#tpu.dimension_semantics<parallel>], iteration_bounds = array<i64: 1>, scalar_prefetch = 0 : i64, scratch_operands = 0 : i64, tpu.core_type = #tpu.core_type<tc>, window_params = [{pipeline_mode = #tpu.pipeline_mode<synchronous>, transform_indices = @transform_0, window_bounds = array<i64: 4, 72>}, {transform_indices = @transform_1, window_bounds = array<i64: 72, 512>}, {pipeline_mode = #tpu.pipeline_mode<synchronous>, transform_indices = @transform_2, window_bounds = array<i64: 4, 1>}, {transform_indices = @transform_3, window_bounds = array<i64: 4, 512>}]} {
    %c0 = arith.constant 0 : index
    %c0_0 = arith.constant 0 : index
    %0 = vector.load %arg1[%c0, %c0_0] : memref<4x72xbf16, #tpu.memory_space<vmem>>, vector<4x72xbf16>
    %c0_1 = arith.constant 0 : index
    %c0_2 = arith.constant 0 : index
    %1 = vector.load %arg2[%c0_1, %c0_2] : memref<72x512xbf16, #tpu.memory_space<vmem>>, vector<72x512xbf16>
    %cst = arith.constant dense<0.000000e+00> : vector<4x512xf32>
    %2 = tpu.matmul %0, %1, %cst {dimension_numbers = #tpu.dot_dimension_numbers<[1], [0], [0], [1], [0, 0, 1, 1], [], []>} : vector<4x72xbf16>, vector<72x512xbf16>, vector<4x512xf32> -> vector<4x512xf32>
    %c0_3 = arith.constant 0 : index
    %c0_4 = arith.constant 0 : index
    %3 = vector.load %arg3[%c0_3, %c0_4] : memref<4x1xf32, #tpu.memory_space<vmem>>, vector<4x1xf32>
    %4 = vector.broadcast %3 : vector<4x1xf32> to vector<4x512xf32>
    %5 = arith.addf %2, %4 : vector<4x512xf32>
    %cst_5 = arith.constant 0.000000e+00 : f32
    %6 = vector.broadcast %cst_5 : f32 to vector<4x512xf32>
    %7 = arith.cmpf ogt, %5, %6 : vector<4x512xf32>
    %cst_6 = arith.constant 0.000000e+00 : f32
    %8 = vector.broadcast %cst_6 : f32 to vector<4x512xf32>
    %9 = arith.minimumf %5, %8 : vector<4x512xf32>
    %10 = math.exp %9 : vector<4x512xf32>
    %cst_7 = arith.constant 1.000000e+00 : f32
    %11 = vector.broadcast %cst_7 : f32 to vector<4x512xf32>
    %12 = arith.subf %10, %11 : vector<4x512xf32>
    %13 = arith.select %7, %5, %12 : vector<4x512xi1>, vector<4x512xf32>
    %c0_8 = arith.constant 0 : index
    %c0_9 = arith.constant 0 : index
    %14 = vector.load %arg4[%c0_8, %c0_9] : memref<4x512xf32, #tpu.memory_space<vmem>>, vector<4x512xf32>
    tpu.vector_store %arg4[%c0_8, %c0_9], %13 {strides = array<i32>} : memref<4x512xf32, #tpu.memory_space<vmem>>, vector<4x512xf32>,
    return
  }
  func.func @transform_0(%arg0: i32) -> (i32, i32) {
    %c0_i32 = arith.constant 0 : i32
    %c0_i32_0 = arith.constant 0 : i32
    %c0_i32_1 = arith.constant 0 : i32
    return %c0_i32, %c0_i32_0 : i32, i32
  }
  func.func @transform_1(%arg0: i32) -> (i32, i32) {
    %c0_i32 = arith.constant 0 : i32
    %c0_i32_0 = arith.constant 0 : i32
    return %c0_i32, %arg0 : i32, i32
  }
  func.func @transform_2(%arg0: i32) -> (i32, i32) {
    %c0_i32 = arith.constant 0 : i32
    %c0_i32_0 = arith.constant 0 : i32
    %c0_i32_1 = arith.constant 0 : i32
    return %c0_i32, %c0_i32_0 : i32, i32
  }
  func.func @transform_3(%arg0: i32) -> (i32, i32) {
    %c0_i32 = arith.constant 0 : i32
    %c0_i32_0 = arith.constant 0 : i32
    return %c0_i32, %arg0 : i32, i32
  }
}

module attributes {stable_mosaic.version = 11 : i64} {
  func.func @kernel(%arg0: i32, %arg1: memref<3x36xbf16, #tpu.memory_space<vmem>>, %arg2: memref<36x512xbf16, #tpu.memory_space<vmem>>, %arg3: memref<3x1xf32, #tpu.memory_space<vmem>>, %arg4: memref<3x512xf32, #tpu.memory_space<vmem>>) attributes {dimension_semantics = [#tpu.dimension_semantics<parallel>], iteration_bounds = array<i64: 1>, scalar_prefetch = 0 : i64, scratch_operands = 0 : i64, tpu.core_type = #tpu.core_type<tc>, window_params = [{pipeline_mode = #tpu.pipeline_mode<synchronous>, transform_indices = @transform_0, window_bounds = array<i64: 3, 36>}, {transform_indices = @transform_1, window_bounds = array<i64: 36, 512>}, {pipeline_mode = #tpu.pipeline_mode<synchronous>, transform_indices = @transform_2, window_bounds = array<i64: 3, 1>}, {transform_indices = @transform_3, window_bounds = array<i64: 3, 512>}]} {
    %c0 = arith.constant 0 : index
    %c0_0 = arith.constant 0 : index
    %0 = vector.load %arg1[%c0, %c0_0] : memref<3x36xbf16, #tpu.memory_space<vmem>>, vector<3x36xbf16>
    %c0_1 = arith.constant 0 : index
    %c0_2 = arith.constant 0 : index
    %1 = vector.load %arg2[%c0_1, %c0_2] : memref<36x512xbf16, #tpu.memory_space<vmem>>, vector<36x512xbf16>
    %cst = arith.constant dense<0.000000e+00> : vector<3x512xf32>
    %2 = tpu.matmul %0, %1, %cst {dimension_numbers = #tpu.dot_dimension_numbers<[1], [0], [0], [1], [0, 0, 1, 1], [], []>} : vector<3x36xbf16>, vector<36x512xbf16>, vector<3x512xf32> -> vector<3x512xf32>
    %c0_3 = arith.constant 0 : index
    %c0_4 = arith.constant 0 : index
    %3 = vector.load %arg3[%c0_3, %c0_4] : memref<3x1xf32, #tpu.memory_space<vmem>>, vector<3x1xf32>
    %4 = vector.broadcast %3 : vector<3x1xf32> to vector<3x512xf32>
    %5 = arith.addf %2, %4 : vector<3x512xf32>
    %c0_5 = arith.constant 0 : index
    %c0_6 = arith.constant 0 : index
    %6 = vector.load %arg4[%c0_5, %c0_6] : memref<3x512xf32, #tpu.memory_space<vmem>>, vector<3x512xf32>
    tpu.vector_store %arg4[%c0_5, %c0_6], %5 {strides = array<i32>} : memref<3x512xf32, #tpu.memory_space<vmem>>, vector<3x512xf32>,
    return
  }
  func.func @transform_0(%arg0: i32) -> (i32, i32) {
    %c0_i32 = arith.constant 0 : i32
    %c0_i32_0 = arith.constant 0 : i32
    %c0_i32_1 = arith.constant 0 : i32
    return %c0_i32, %c0_i32_0 : i32, i32
  }
  func.func @transform_1(%arg0: i32) -> (i32, i32) {
    %c0_i32 = arith.constant 0 : i32
    %c0_i32_0 = arith.constant 0 : i32
    return %c0_i32, %arg0 : i32, i32
  }
  func.func @transform_2(%arg0: i32) -> (i32, i32) {
    %c0_i32 = arith.constant 0 : i32
    %c0_i32_0 = arith.constant 0 : i32
    %c0_i32_1 = arith.constant 0 : i32
    return %c0_i32, %c0_i32_0 : i32, i32
  }
  func.func @transform_3(%arg0: i32) -> (i32, i32) {
    %c0_i32 = arith.constant 0 : i32
    %c0_i32_0 = arith.constant 0 : i32
    return %c0_i32, %arg0 : i32, i32
  }
}

module attributes {stable_mosaic.version = 11 : i64} {
  func.func @kernel(%arg0: i32, %arg1: memref<8x72xbf16, #tpu.memory_space<vmem>>, %arg2: memref<72x128xbf16, #tpu.memory_space<vmem>>, %arg3: memref<8x1xf32, #tpu.memory_space<vmem>>, %arg4: memref<8x128xf32, #tpu.memory_space<vmem>>) attributes {dimension_semantics = [#tpu.dimension_semantics<parallel>], iteration_bounds = array<i64: 1>, scalar_prefetch = 0 : i64, scratch_operands = 0 : i64, tpu.core_type = #tpu.core_type<tc>, window_params = [{pipeline_mode = #tpu.pipeline_mode<synchronous>, transform_indices = @transform_0, window_bounds = array<i64: 8, 72>}, {transform_indices = @transform_1, window_bounds = array<i64: 72, 128>}, {pipeline_mode = #tpu.pipeline_mode<synchronous>, transform_indices = @transform_2, window_bounds = array<i64: 8, 1>}, {transform_indices = @transform_3, window_bounds = array<i64: 8, 128>}]} {
    %c0 = arith.constant 0 : index
    %c0_0 = arith.constant 0 : index
    %0 = vector.load %arg1[%c0, %c0_0] : memref<8x72xbf16, #tpu.memory_space<vmem>>, vector<8x72xbf16>
    %c0_1 = arith.constant 0 : index
    %c0_2 = arith.constant 0 : index
    %1 = vector.load %arg2[%c0_1, %c0_2] : memref<72x128xbf16, #tpu.memory_space<vmem>>, vector<72x128xbf16>
    %cst = arith.constant dense<0.000000e+00> : vector<8x128xf32>
    %2 = tpu.matmul %0, %1, %cst {dimension_numbers = #tpu.dot_dimension_numbers<[1], [0], [0], [1], [0, 0, 1, 1], [], []>} : vector<8x72xbf16>, vector<72x128xbf16>, vector<8x128xf32> -> vector<8x128xf32>
    %c0_3 = arith.constant 0 : index
    %c0_4 = arith.constant 0 : index
    %3 = vector.load %arg3[%c0_3, %c0_4] : memref<8x1xf32, #tpu.memory_space<vmem>>, vector<8x1xf32>
    %4 = vector.broadcast %3 : vector<8x1xf32> to vector<8x128xf32>
    %5 = arith.addf %2, %4 : vector<8x128xf32>
    %cst_5 = arith.constant 0.000000e+00 : f32
    %6 = vector.broadcast %cst_5 : f32 to vector<8x128xf32>
    %7 = arith.cmpf ogt, %5, %6 : vector<8x128xf32>
    %cst_6 = arith.constant 0.000000e+00 : f32
    %8 = vector.broadcast %cst_6 : f32 to vector<8x128xf32>
    %9 = arith.minimumf %5, %8 : vector<8x128xf32>
    %10 = math.exp %9 : vector<8x128xf32>
    %cst_7 = arith.constant 1.000000e+00 : f32
    %11 = vector.broadcast %cst_7 : f32 to vector<8x128xf32>
    %12 = arith.subf %10, %11 : vector<8x128xf32>
    %13 = arith.select %7, %5, %12 : vector<8x128xi1>, vector<8x128xf32>
    %c0_8 = arith.constant 0 : index
    %c0_9 = arith.constant 0 : index
    %14 = vector.load %arg4[%c0_8, %c0_9] : memref<8x128xf32, #tpu.memory_space<vmem>>, vector<8x128xf32>
    tpu.vector_store %arg4[%c0_8, %c0_9], %13 {strides = array<i32>} : memref<8x128xf32, #tpu.memory_space<vmem>>, vector<8x128xf32>,
    return
  }
  func.func @transform_0(%arg0: i32) -> (i32, i32) {
    %c0_i32 = arith.constant 0 : i32
    %c0_i32_0 = arith.constant 0 : i32
    %c0_i32_1 = arith.constant 0 : i32
    return %c0_i32, %c0_i32_0 : i32, i32
  }
  func.func @transform_1(%arg0: i32) -> (i32, i32) {
    %c0_i32 = arith.constant 0 : i32
    %c0_i32_0 = arith.constant 0 : i32
    return %c0_i32, %arg0 : i32, i32
  }
  func.func @transform_2(%arg0: i32) -> (i32, i32) {
    %c0_i32 = arith.constant 0 : i32
    %c0_i32_0 = arith.constant 0 : i32
    %c0_i32_1 = arith.constant 0 : i32
    return %c0_i32, %c0_i32_0 : i32, i32
  }
  func.func @transform_3(%arg0: i32) -> (i32, i32) {
    %c0_i32 = arith.constant 0 : i32
    %c0_i32_0 = arith.constant 0 : i32
    return %c0_i32, %arg0 : i32, i32
  }
}

module attributes {stable_mosaic.version = 11 : i64} {
  func.func @kernel(%arg0: i32, %arg1: memref<32x288xbf16, #tpu.memory_space<vmem>>, %arg2: memref<288x128xbf16, #tpu.memory_space<vmem>>, %arg3: memref<32x1xf32, #tpu.memory_space<vmem>>, %arg4: memref<32x128xf32, #tpu.memory_space<vmem>>) attributes {dimension_semantics = [#tpu.dimension_semantics<parallel>], iteration_bounds = array<i64: 1>, scalar_prefetch = 0 : i64, scratch_operands = 0 : i64, tpu.core_type = #tpu.core_type<tc>, window_params = [{pipeline_mode = #tpu.pipeline_mode<synchronous>, transform_indices = @transform_0, window_bounds = array<i64: 32, 288>}, {transform_indices = @transform_1, window_bounds = array<i64: 288, 128>}, {pipeline_mode = #tpu.pipeline_mode<synchronous>, transform_indices = @transform_2, window_bounds = array<i64: 32, 1>}, {transform_indices = @transform_3, window_bounds = array<i64: 32, 128>}]} {
    %c0 = arith.constant 0 : index
    %c0_0 = arith.constant 0 : index
    %0 = vector.load %arg1[%c0, %c0_0] : memref<32x288xbf16, #tpu.memory_space<vmem>>, vector<32x288xbf16>
    %c0_1 = arith.constant 0 : index
    %c0_2 = arith.constant 0 : index
    %1 = vector.load %arg2[%c0_1, %c0_2] : memref<288x128xbf16, #tpu.memory_space<vmem>>, vector<288x128xbf16>
    %cst = arith.constant dense<0.000000e+00> : vector<32x128xf32>
    %2 = tpu.matmul %0, %1, %cst {dimension_numbers = #tpu.dot_dimension_numbers<[1], [0], [0], [1], [0, 0, 1, 1], [], []>} : vector<32x288xbf16>, vector<288x128xbf16>, vector<32x128xf32> -> vector<32x128xf32>
    %c0_3 = arith.constant 0 : index
    %c0_4 = arith.constant 0 : index
    %3 = vector.load %arg3[%c0_3, %c0_4] : memref<32x1xf32, #tpu.memory_space<vmem>>, vector<32x1xf32>
    %4 = vector.broadcast %3 : vector<32x1xf32> to vector<32x128xf32>
    %5 = arith.addf %2, %4 : vector<32x128xf32>
    %cst_5 = arith.constant 0.000000e+00 : f32
    %6 = vector.broadcast %cst_5 : f32 to vector<32x128xf32>
    %7 = arith.maximumf %5, %6 : vector<32x128xf32>
    %c0_6 = arith.constant 0 : index
    %c0_7 = arith.constant 0 : index
    %8 = vector.load %arg4[%c0_6, %c0_7] : memref<32x128xf32, #tpu.memory_space<vmem>>, vector<32x128xf32>
    tpu.vector_store %arg4[%c0_6, %c0_7], %7 {strides = array<i32>} : memref<32x128xf32, #tpu.memory_space<vmem>>, vector<32x128xf32>,
    return
  }
  func.func @transform_0(%arg0: i32) -> (i32, i32) {
    %c0_i32 = arith.constant 0 : i32
    %c0_i32_0 = arith.constant 0 : i32
    %c0_i32_1 = arith.constant 0 : i32
    return %c0_i32, %c0_i32_0 : i32, i32
  }
  func.func @transform_1(%arg0: i32) -> (i32, i32) {
    %c0_i32 = arith.constant 0 : i32
    %c0_i32_0 = arith.constant 0 : i32
    return %c0_i32, %arg0 : i32, i32
  }
  func.func @transform_2(%arg0: i32) -> (i32, i32) {
    %c0_i32 = arith.constant 0 : i32
    %c0_i32_0 = arith.constant 0 : i32
    %c0_i32_1 = arith.constant 0 : i32
    return %c0_i32, %c0_i32_0 : i32, i32
  }
  func.func @transform_3(%arg0: i32) -> (i32, i32) {
    %c0_i32 = arith.constant 0 : i32
    %c0_i32_0 = arith.constant 0 : i32
    return %c0_i32, %arg0 : i32, i32
  }
}

module attributes {stable_mosaic.version = 11 : i64} {
  func.func @kernel(%arg0: i32, %arg1: i32, %arg2: memref<1x4x288xbf16, #tpu.memory_space<vmem>>, %arg3: memref<1x288x128xbf16, #tpu.memory_space<vmem>>, %arg4: memref<1x4x128xf32, #tpu.memory_space<vmem>>) attributes {dimension_semantics = [#tpu.dimension_semantics<parallel>, #tpu.dimension_semantics<parallel>], iteration_bounds = array<i64: 2, 1>, scalar_prefetch = 0 : i64, scratch_operands = 0 : i64, tpu.core_type = #tpu.core_type<tc>, window_params = [{transform_indices = @transform_0, window_bounds = array<i64: 1, 4, 288>}, {transform_indices = @transform_1, window_bounds = array<i64: 1, 288, 128>}, {transform_indices = @transform_2, window_bounds = array<i64: 1, 4, 128>}]} {
    %c0 = arith.constant 0 : index
    %c0_0 = arith.constant 0 : index
    %c0_1 = arith.constant 0 : index
    %0 = vector.load %arg2[%c0, %c0_0, %c0_1] : memref<1x4x288xbf16, #tpu.memory_space<vmem>>, vector<1x4x288xbf16>
    %1 = vector.shape_cast %0 : vector<1x4x288xbf16> to vector<4x288xbf16>
    %c0_2 = arith.constant 0 : index
    %c0_3 = arith.constant 0 : index
    %c0_4 = arith.constant 0 : index
    %2 = vector.load %arg3[%c0_2, %c0_3, %c0_4] : memref<1x288x128xbf16, #tpu.memory_space<vmem>>, vector<1x288x128xbf16>
    %3 = vector.shape_cast %2 : vector<1x288x128xbf16> to vector<288x128xbf16>
    %cst = arith.constant dense<0.000000e+00> : vector<4x128xf32>
    %4 = tpu.matmul %1, %3, %cst {dimension_numbers = #tpu.dot_dimension_numbers<[1], [0], [0], [1], [0, 0, 1, 1], [], []>} : vector<4x288xbf16>, vector<288x128xbf16>, vector<4x128xf32> -> vector<4x128xf32>
    %c0_5 = arith.constant 0 : index
    %c0_6 = arith.constant 0 : index
    %c0_7 = arith.constant 0 : index
    %5 = vector.load %arg4[%c0_5, %c0_6, %c0_7] : memref<1x4x128xf32, #tpu.memory_space<vmem>>, vector<1x4x128xf32>
    %6 = vector.shape_cast %5 : vector<1x4x128xf32> to vector<4x128xf32>
    %7 = vector.shape_cast %4 : vector<4x128xf32> to vector<1x4x128xf32>
    tpu.vector_store %arg4[%c0_5, %c0_6, %c0_7], %7 {strides = array<i32>} : memref<1x4x128xf32, #tpu.memory_space<vmem>>, vector<1x4x128xf32>,
    return
  }
  func.func @transform_0(%arg0: i32, %arg1: i32) -> (i32, i32, i32) {
    %c0_i32 = arith.constant 0 : i32
    %c0_i32_0 = arith.constant 0 : i32
    %c0_i32_1 = arith.constant 0 : i32
    return %arg0, %c0_i32, %c0_i32_0 : i32, i32, i32
  }
  func.func @transform_1(%arg0: i32, %arg1: i32) -> (i32, i32, i32) {
    %c0_i32 = arith.constant 0 : i32
    %c0_i32_0 = arith.constant 0 : i32
    return %arg0, %c0_i32, %arg1 : i32, i32, i32
  }
  func.func @transform_2(%arg0: i32, %arg1: i32) -> (i32, i32, i32) {
    %c0_i32 = arith.constant 0 : i32
    %c0_i32_0 = arith.constant 0 : i32
    return %arg0, %c0_i32, %arg1 : i32, i32, i32
  }
}

module attributes {stable_mosaic.version = 11 : i64} {
  func.func @kernel(%arg0: i32, %arg1: i32, %arg2: memref<1x4x128xf32, #tpu.memory_space<vmem>>, %arg3: memref<4x1xf32, #tpu.memory_space<vmem>>, %arg4: memref<1x4x128xf32, #tpu.memory_space<vmem>>) attributes {dimension_semantics = [#tpu.dimension_semantics<parallel>, #tpu.dimension_semantics<parallel>], iteration_bounds = array<i64: 2, 1>, scalar_prefetch = 0 : i64, scratch_operands = 0 : i64, tpu.core_type = #tpu.core_type<tc>, window_params = [{transform_indices = @transform_0, window_bounds = array<i64: 1, 4, 128>}, {pipeline_mode = #tpu.pipeline_mode<synchronous>, transform_indices = @transform_1, window_bounds = array<i64: 4, 1>}, {transform_indices = @transform_2, window_bounds = array<i64: 1, 4, 128>}]} {
    %c0 = arith.constant 0 : index
    %c0_0 = arith.constant 0 : index
    %0 = vector.load %arg3[%c0, %c0_0] : memref<4x1xf32, #tpu.memory_space<vmem>>, vector<4x1xf32>
    %c0_1 = arith.constant 0 : index
    %c0_2 = arith.constant 0 : index
    %c0_3 = arith.constant 0 : index
    %1 = vector.load %arg2[%c0_1, %c0_2, %c0_3] : memref<1x4x128xf32, #tpu.memory_space<vmem>>, vector<1x4x128xf32>
    %2 = vector.shape_cast %1 : vector<1x4x128xf32> to vector<4x128xf32>
    %3 = vector.broadcast %0 : vector<4x1xf32> to vector<4x128xf32>
    %4 = arith.mulf %2, %3 : vector<4x128xf32>
    %cst = arith.constant 1.000000e+01 : f32
    %5 = vector.broadcast %cst : f32 to vector<4x128xf32>
    %6 = arith.mulf %4, %5 : vector<4x128xf32>
    %cst_4 = arith.constant dense<0xFF800000> : vector<128xf32>
    %7 = vector.multi_reduction <maximumf>, %6, %cst_4 [0] : vector<4x128xf32> to vector<128xf32>
    %8 = vector.shape_cast %7 : vector<128xf32> to vector<1x128xf32>
    %9 = vector.broadcast %8 : vector<1x128xf32> to vector<4x128xf32>
    %10 = arith.subf %6, %9 : vector<4x128xf32>
    %11 = math.exp %10 : vector<4x128xf32>
    %cst_5 = arith.constant dense<0.000000e+00> : vector<128xf32>
    %12 = vector.multi_reduction <add>, %11, %cst_5 [0] : vector<4x128xf32> to vector<128xf32>
    %13 = vector.shape_cast %12 : vector<128xf32> to vector<1x128xf32>
    %14 = tpu.reciprocal %13 {approx = true} : vector<1x128xf32> -> vector<1x128xf32>
    %15 = vector.broadcast %14 : vector<1x128xf32> to vector<4x128xf32>
    %16 = arith.mulf %11, %15 : vector<4x128xf32>
    %17 = vector.broadcast %0 : vector<4x1xf32> to vector<4x128xf32>
    %18 = arith.mulf %16, %17 : vector<4x128xf32>
    %c0_6 = arith.constant 0 : index
    %c0_7 = arith.constant 0 : index
    %c0_8 = arith.constant 0 : index
    %19 = vector.load %arg4[%c0_6, %c0_7, %c0_8] : memref<1x4x128xf32, #tpu.memory_space<vmem>>, vector<1x4x128xf32>
    %20 = vector.shape_cast %19 : vector<1x4x128xf32> to vector<4x128xf32>
    %21 = vector.shape_cast %18 : vector<4x128xf32> to vector<1x4x128xf32>
    tpu.vector_store %arg4[%c0_6, %c0_7, %c0_8], %21 {strides = array<i32>} : memref<1x4x128xf32, #tpu.memory_space<vmem>>, vector<1x4x128xf32>,
    return
  }
  func.func @transform_0(%arg0: i32, %arg1: i32) -> (i32, i32, i32) {
    %c0_i32 = arith.constant 0 : i32
    %c0_i32_0 = arith.constant 0 : i32
    return %arg0, %c0_i32, %arg1 : i32, i32, i32
  }
  func.func @transform_1(%arg0: i32, %arg1: i32) -> (i32, i32) {
    %c0_i32 = arith.constant 0 : i32
    %c0_i32_0 = arith.constant 0 : i32
    %c0_i32_1 = arith.constant 0 : i32
    return %c0_i32, %c0_i32_0 : i32, i32
  }
  func.func @transform_2(%arg0: i32, %arg1: i32) -> (i32, i32, i32) {
    %c0_i32 = arith.constant 0 : i32
    %c0_i32_0 = arith.constant 0 : i32
    return %arg0, %c0_i32, %arg1 : i32, i32, i32
  }
}

module attributes {stable_mosaic.version = 11 : i64} {
  func.func @kernel(%arg0: i32, %arg1: i32, %arg2: memref<1x32x64xbf16, #tpu.memory_space<vmem>>, %arg3: memref<1x64x128xbf16, #tpu.memory_space<vmem>>, %arg4: memref<1x32x128xf32, #tpu.memory_space<vmem>>) attributes {dimension_semantics = [#tpu.dimension_semantics<parallel>, #tpu.dimension_semantics<parallel>], iteration_bounds = array<i64: 2, 1>, scalar_prefetch = 0 : i64, scratch_operands = 0 : i64, tpu.core_type = #tpu.core_type<tc>, window_params = [{transform_indices = @transform_0, window_bounds = array<i64: 1, 32, 64>}, {transform_indices = @transform_1, window_bounds = array<i64: 1, 64, 128>}, {transform_indices = @transform_2, window_bounds = array<i64: 1, 32, 128>}]} {
    %c0 = arith.constant 0 : index
    %c0_0 = arith.constant 0 : index
    %c0_1 = arith.constant 0 : index
    %0 = vector.load %arg2[%c0, %c0_0, %c0_1] : memref<1x32x64xbf16, #tpu.memory_space<vmem>>, vector<1x32x64xbf16>
    %1 = vector.shape_cast %0 : vector<1x32x64xbf16> to vector<32x64xbf16>
    %c0_2 = arith.constant 0 : index
    %c0_3 = arith.constant 0 : index
    %c0_4 = arith.constant 0 : index
    %2 = vector.load %arg3[%c0_2, %c0_3, %c0_4] : memref<1x64x128xbf16, #tpu.memory_space<vmem>>, vector<1x64x128xbf16>
    %3 = vector.shape_cast %2 : vector<1x64x128xbf16> to vector<64x128xbf16>
    %cst = arith.constant dense<0.000000e+00> : vector<32x128xf32>
    %4 = tpu.matmul %1, %3, %cst {dimension_numbers = #tpu.dot_dimension_numbers<[1], [0], [0], [1], [0, 0, 1, 1], [], []>} : vector<32x64xbf16>, vector<64x128xbf16>, vector<32x128xf32> -> vector<32x128xf32>
    %c0_5 = arith.constant 0 : index
    %c0_6 = arith.constant 0 : index
    %c0_7 = arith.constant 0 : index
    %5 = vector.load %arg4[%c0_5, %c0_6, %c0_7] : memref<1x32x128xf32, #tpu.memory_space<vmem>>, vector<1x32x128xf32>
    %6 = vector.shape_cast %5 : vector<1x32x128xf32> to vector<32x128xf32>
    %7 = vector.shape_cast %4 : vector<32x128xf32> to vector<1x32x128xf32>
    tpu.vector_store %arg4[%c0_5, %c0_6, %c0_7], %7 {strides = array<i32>} : memref<1x32x128xf32, #tpu.memory_space<vmem>>, vector<1x32x128xf32>,
    return
  }
  func.func @transform_0(%arg0: i32, %arg1: i32) -> (i32, i32, i32) {
    %c0_i32 = arith.constant 0 : i32
    %c0_i32_0 = arith.constant 0 : i32
    %c0_i32_1 = arith.constant 0 : i32
    return %arg0, %c0_i32, %c0_i32_0 : i32, i32, i32
  }
  func.func @transform_1(%arg0: i32, %arg1: i32) -> (i32, i32, i32) {
    %c0_i32 = arith.constant 0 : i32
    %c0_i32_0 = arith.constant 0 : i32
    return %arg0, %c0_i32, %arg1 : i32, i32, i32
  }
  func.func @transform_2(%arg0: i32, %arg1: i32) -> (i32, i32, i32) {
    %c0_i32 = arith.constant 0 : i32
    %c0_i32_0 = arith.constant 0 : i32
    return %arg0, %c0_i32, %arg1 : i32, i32, i32
  }
}

module attributes {stable_mosaic.version = 11 : i64} {
  func.func @kernel(%arg0: i32, %arg1: memref<32x576xbf16, #tpu.memory_space<vmem>>, %arg2: memref<576x128xbf16, #tpu.memory_space<vmem>>, %arg3: memref<32x1xf32, #tpu.memory_space<vmem>>, %arg4: memref<32x128xf32, #tpu.memory_space<vmem>>) attributes {dimension_semantics = [#tpu.dimension_semantics<parallel>], iteration_bounds = array<i64: 1>, scalar_prefetch = 0 : i64, scratch_operands = 0 : i64, tpu.core_type = #tpu.core_type<tc>, window_params = [{pipeline_mode = #tpu.pipeline_mode<synchronous>, transform_indices = @transform_0, window_bounds = array<i64: 32, 576>}, {transform_indices = @transform_1, window_bounds = array<i64: 576, 128>}, {pipeline_mode = #tpu.pipeline_mode<synchronous>, transform_indices = @transform_2, window_bounds = array<i64: 32, 1>}, {transform_indices = @transform_3, window_bounds = array<i64: 32, 128>}]} {
    %c0 = arith.constant 0 : index
    %c0_0 = arith.constant 0 : index
    %0 = vector.load %arg1[%c0, %c0_0] : memref<32x576xbf16, #tpu.memory_space<vmem>>, vector<32x576xbf16>
    %c0_1 = arith.constant 0 : index
    %c0_2 = arith.constant 0 : index
    %1 = vector.load %arg2[%c0_1, %c0_2] : memref<576x128xbf16, #tpu.memory_space<vmem>>, vector<576x128xbf16>
    %cst = arith.constant dense<0.000000e+00> : vector<32x128xf32>
    %2 = tpu.matmul %0, %1, %cst {dimension_numbers = #tpu.dot_dimension_numbers<[1], [0], [0], [1], [0, 0, 1, 1], [], []>} : vector<32x576xbf16>, vector<576x128xbf16>, vector<32x128xf32> -> vector<32x128xf32>
    %c0_3 = arith.constant 0 : index
    %c0_4 = arith.constant 0 : index
    %3 = vector.load %arg3[%c0_3, %c0_4] : memref<32x1xf32, #tpu.memory_space<vmem>>, vector<32x1xf32>
    %4 = vector.broadcast %3 : vector<32x1xf32> to vector<32x128xf32>
    %5 = arith.addf %2, %4 : vector<32x128xf32>
    %cst_5 = arith.constant 0.000000e+00 : f32
    %6 = vector.broadcast %cst_5 : f32 to vector<32x128xf32>
    %7 = arith.cmpf ogt, %5, %6 : vector<32x128xf32>
    %cst_6 = arith.constant 0.000000e+00 : f32
    %8 = vector.broadcast %cst_6 : f32 to vector<32x128xf32>
    %9 = arith.minimumf %5, %8 : vector<32x128xf32>
    %10 = math.exp %9 : vector<32x128xf32>
    %cst_7 = arith.constant 1.000000e+00 : f32
    %11 = vector.broadcast %cst_7 : f32 to vector<32x128xf32>
    %12 = arith.subf %10, %11 : vector<32x128xf32>
    %13 = arith.select %7, %5, %12 : vector<32x128xi1>, vector<32x128xf32>
    %c0_8 = arith.constant 0 : index
    %c0_9 = arith.constant 0 : index
    %14 = vector.load %arg4[%c0_8, %c0_9] : memref<32x128xf32, #tpu.memory_space<vmem>>, vector<32x128xf32>
    tpu.vector_store %arg4[%c0_8, %c0_9], %13 {strides = array<i32>} : memref<32x128xf32, #tpu.memory_space<vmem>>, vector<32x128xf32>,
    return
  }
  func.func @transform_0(%arg0: i32) -> (i32, i32) {
    %c0_i32 = arith.constant 0 : i32
    %c0_i32_0 = arith.constant 0 : i32
    %c0_i32_1 = arith.constant 0 : i32
    return %c0_i32, %c0_i32_0 : i32, i32
  }
  func.func @transform_1(%arg0: i32) -> (i32, i32) {
    %c0_i32 = arith.constant 0 : i32
    %c0_i32_0 = arith.constant 0 : i32
    return %c0_i32, %arg0 : i32, i32
  }
  func.func @transform_2(%arg0: i32) -> (i32, i32) {
    %c0_i32 = arith.constant 0 : i32
    %c0_i32_0 = arith.constant 0 : i32
    %c0_i32_1 = arith.constant 0 : i32
    return %c0_i32, %c0_i32_0 : i32, i32
  }
  func.func @transform_3(%arg0: i32) -> (i32, i32) {
    %c0_i32 = arith.constant 0 : i32
    %c0_i32_0 = arith.constant 0 : i32
    return %c0_i32, %arg0 : i32, i32
  }
}

</mosaic_0001>

<bundles_post_ra>
// kernel: _device_forward.45
= control target key start
LH: loop header
LB: loop body
LE: loop exit
PB: predicated region body
PF: predicated region fallthrough
CT: control target
= control target key end

     0   :  { %vm214_vm0 = vcmask 1045504   ;;  %vm215_vm1 = vcmask 1046528   ;;  %v441_v1 = vmov 0   ;;  %v442_v2 = vmov 65535   ;;  %s577_s1 = inlined_call_operand.vmem [shape: bf16[125,512], index: 1, kind: input, shape index: {}]   ;;  %s578_s2 = inlined_call_operand.vmem [shape: f32[8,1], index: 2, kind: input, shape index: {}]   ;;  %s579_s0 = inlined_call_operand.vmem [shape: bf16[8,125], index: 0, kind: input, shape index: {}]   ;;  %s580_s3 = inlined_call_operand.vmem [shape: f32[8,512], index: 3, kind: output, shape index: {}]  }
   0x1   :  { %v385_v0 = vld [vmem:[%s577_s1 + $0xe4] ss:$16 sps:$4 sm:$0x7f]   ;;  %262 = vmatprep.mubr.bf16.mxu0 %v441_v1  ;;  %303 = vmatprep.mubr.bf16.mxu1 %v441_v1  ;;  %v216_v3 = vsel %vm214_vm0, 4294967295, %v442_v2  ;;  %v393_v11 = vld [vmem:[%s577_s1 + $0xcc] ss:$16 sps:$4 sm:$0xff]  }
   0x2   :  { %384 = vset.pattern.permute.xlu0 %v441_v1  ;;  %v217_v4 = vsel %vm215_vm1, %v216_v3, 0  ;;  %v387_v5 = vld [vmem:[%s577_s1 + $0xec] ss:$16 sps:$4 sm:$0x7f]   ;;  %v391_v10 = vld [vmem:[%s577_s1 + $0xc4] ss:$16 sps:$4 sm:$0xff]  }
   0x3   :  { %v222_v6 = vand.u32 %v385_v0, %v217_v4  ;;  %v389_v7 = vld [vmem:[%s577_s1 + $0xe0] ss:$16 sps:$4 sm:$0x7f]   ;;  %v390_v8 = vld [vmem:[%s577_s1 + $0xe8] ss:$16 sps:$4 sm:$0x7f]   ;;  %v228_v9 = vand.u32 %v387_v5, %v217_v4 }
   0x4   :  { %v219_v12 = vand.u32 %v389_v7, %v217_v4  ;;  %v225_v13 = vand.u32 %v390_v8, %v217_v4  ;;  %v395_v14 = vld [vmem:[%s577_s1 + $0xc0] ss:$16 sps:$4 sm:$0xff]   ;;  %v396_v15 = vld [vmem:[%s577_s1 + $0xc8] ss:$16 sps:$4 sm:$0xff]   ;;  %v397_v16 = vld [vmem:[%s577_s1 + $0xa4] ss:$16 sps:$4 sm:$0xff]  }
   0x5   :  { %230 = vmatprep.subr.bf16.mxu0 %v222_v6  ;;  %271 = vmatprep.subr.bf16.mxu1 %v228_v9  ;;  %v399_v17 = vld [vmem:[%s577_s1 + $0xac] ss:$16 sps:$4 sm:$0xff]   ;;  %v401_v18 = vld [vmem:[%s577_s1 + $0xa0] ss:$16 sps:$4 sm:$0xff]   ;;  %v402_v19 = vld [vmem:[%s577_s1 + $0xa8] ss:$16 sps:$4 sm:$0xff]  }
   0x6   :  { %231 = vmatpush1.bf16.msra.mxu0 %v219_v12  ;;  %272 = vmatpush1.bf16.msra.mxu1 %v225_v13  ;;  %v403_v20 = vld [vmem:[%s577_s1 + $0x84] ss:$16 sps:$4 sm:$0xff]   ;;  %v405_v21 = vld [vmem:[%s577_s1 + $0x8c] ss:$16 sps:$4 sm:$0xff]   ;;  %v407_v22 = vld [vmem:[%s577_s1 + $0x80] ss:$16 sps:$4 sm:$0xff]  }
   0x7   :  { %232 = vmatprep.subr.bf16.mxu0 %v391_v10  ;;  %273 = vmatprep.subr.bf16.mxu1 %v393_v11  ;;  %v408_v23 = vld [vmem:[%s577_s1 + $0x88] ss:$16 sps:$4 sm:$0xff]   ;;  %v409_v24 = vld [vmem:[%s577_s1 + $0x64] ss:$16 sps:$4 sm:$0xff]   ;;  %v411_v25 = vld [vmem:[%s577_s1 + $0x6c] ss:$16 sps:$4 sm:$0xff]  }
   0x8   :  { %v413_v26 = vld [vmem:[%s577_s1 + $0x60] ss:$16 sps:$4 sm:$0xff]   ;;  %v414_v27 = vld [vmem:[%s577_s1 + $0x68] ss:$16 sps:$4 sm:$0xff]   ;;  %v415_v28 = vld [vmem:[%s577_s1 + $0x44] ss:$16 sps:$4 sm:$0xff]  }
   0x9   :  { %v417_v29 = vld [vmem:[%s577_s1 + $0x4c] ss:$16 sps:$4 sm:$0xff]   ;;  %v48_v30 = vld [vmem:[%s578_s2] sm:$0xff]  ;;  %v420_v32 = vld [vmem:[%s577_s1 + $0x48] ss:$16 sps:$4 sm:$0xff]   ;;  %vm210_vm2 = vcmask 1022976  }
   0xa   :  { %233 = vmatpush1.bf16.msra.mxu0 %v395_v14  ;;  %274 = vmatpush1.bf16.msra.mxu1 %v396_v15  ;;  %v419_v31 = vld [vmem:[%s577_s1 + $0x40] ss:$16 sps:$4 sm:$0xff]   ;;  %v421_v33 = vld [vmem:[%s577_s1 + $0x24] ss:$16 sps:$4 sm:$0xff]   ;;  %v423_v34 = vld [vmem:[%s577_s1 + $0x2c] ss:$16 sps:$4 sm:$0xff]  }
   0xb   :  { %234 = vmatprep.subr.bf16.mxu0 %v397_v16  ;;  %275 = vmatprep.subr.bf16.mxu1 %v399_v17  ;;  %v425_v35 = vld [vmem:[%s577_s1 + $0x20] ss:$16 sps:$4 sm:$0xff]   ;;  %v426_v36 = vld [vmem:[%s577_s1 + $0x28] ss:$16 sps:$4 sm:$0xff]   ;;  %v427_v37 = vld [vmem:[%s577_s1 + $0x4] ss:$16 sps:$4 sm:$0xff]  }
   0xc   :  { %51 = vperm.xlu0 %384, %v48_v30   ;;  %v429_v38 = vld [vmem:[%s577_s1 + $0xc] ss:$16 sps:$4 sm:$0xff]   ;;  %v431_v39 = vld [vmem:[%s577_s1] ss:$16 sps:$4 sm:$0xff]   ;;  %v432_v40 = vld [vmem:[%s577_s1 + $0x8] ss:$16 sps:$4 sm:$0xff]  }
   0xd   :  { %v15_v41 = vld [vmem:[%s579_s0] sm:$0xf] }
   0xe   :  { %235 = vmatpush1.bf16.msra.mxu0 %v401_v18  ;;  %276 = vmatpush1.bf16.msra.mxu1 %v402_v19 }
   0xf   :  { %236 = vmatprep.subr.bf16.mxu0 %v403_v20  ;;  %277 = vmatprep.subr.bf16.mxu1 %v405_v21 }
  0x12   :  { %237 = vmatpush1.bf16.msra.mxu0 %v407_v22  ;;  %278 = vmatpush1.bf16.msra.mxu1 %v408_v23 }
  0x13   :  { %238 = vmatprep.subr.bf16.mxu0 %v409_v24  ;;  %279 = vmatprep.subr.bf16.mxu1 %v411_v25 }
  0x16   :  { %239 = vmatpush1.bf16.msra.mxu0 %v413_v26  ;;  %280 = vmatpush1.bf16.msra.mxu1 %v414_v27 }
  0x17   :  { %240 = vmatprep.subr.bf16.mxu0 %v415_v28  ;;  %281 = vmatprep.subr.bf16.mxu1 %v417_v29 }
  0x1a   :  { %241 = vmatpush1.bf16.msra.mxu0 %v419_v31  ;;  %282 = vmatpush1.bf16.msra.mxu1 %v420_v32 }
  0x1b   :  { %242 = vmatprep.subr.bf16.mxu0 %v421_v33  ;;  %283 = vmatprep.subr.bf16.mxu1 %v423_v34 }
  0x1e   :  { %243 = vmatpush1.bf16.msra.mxu0 %v425_v35  ;;  %284 = vmatpush1.bf16.msra.mxu1 %v426_v36 }
  0x1f   :  { %244 = vmatprep.subr.bf16.mxu0 %v427_v37  ;;  %285 = vmatprep.subr.bf16.mxu1 %v429_v38 }
  0x22   :  { %245 = vmatpush1.bf16.msra.mxu0 %v431_v39  ;;  %286 = vmatpush1.bf16.msra.mxu1 %v432_v40 }
  0x25   :  { %376 = vmatmul.mubr.msk.bf16.vlgmr.msra.gmra.mxu0 %vm210_vm2, %v15_v41  ;;  %377 = vmatmul.mubr.msk.bf16.vlgmr.msra.gmra.mxu1 %vm210_vm2, %v15_v41 }
  0x87   :  { %v52_v42 = vpop.permute.xlu0 %51 }
  0xe5   :  { %v264_v43 = vpop.f32.mrf.mxu0  ;;  %v305_v44 = vpop.f32.mrf.mxu1 }
  0xe6   :  { %v265_v45 = vadd.f32 %v264_v43, %v52_v42  ;;  %v306_v46 = vadd.f32 %v305_v44, %v52_v42 }
  0xe7   :  { %v266_v47 = vpop.f32.mrf.mxu0  ;;  %v307_v48 = vpop.f32.mrf.mxu1 }
  0xe8   :  { %v316_v49 = vmin.f32 %v265_v45, 0.0  ;;  %v318_v50 = vmin.f32 %v306_v46, 0.0  ;;  %v267_v51 = vadd.f32 %v266_v47, %v52_v42  ;;  %v308_v52 = vadd.f32 %v307_v48, %v52_v42 }
  0xe9   :  { %v268_v53 = vpop.f32.mrf.mxu0  ;;  %v309_v54 = vpop.f32.mrf.mxu1  ;;  %vm312_vm3 = vcmp.gt.f32.partialorder %v265_v45, 0.0  ;;  %vm314_vm4 = vcmp.gt.f32.partialorder %v306_v46, 0.0 }
  0xea   :  { %v320_v55 = vmul.f32 1.442695, %v316_v49  ;;  %v324_v56 = vmul.f32 1.442695, %v318_v50  ;;  %v317_v57 = vmin.f32 %v267_v51, 0.0  ;;  %v319_v58 = vmin.f32 %v308_v52, 0.0 }
  0xeb   :  { %v269_v59 = vpop.f32.mrf.mxu0  ;;  %v310_v60 = vpop.f32.mrf.mxu1  ;;  %vm313_vm5 = vcmp.gt.f32.partialorder %v267_v51, 0.0  ;;  %vm315_vm6 = vcmp.gt.f32.partialorder %v308_v52, 0.0 }
  0xec   :  { %433 = vpow2.f32 %v320_v55  ;;  %v322_v61 = vmul.f32 1.442695, %v317_v57  ;;  %v326_v62 = vmul.f32 1.442695, %v319_v58 }
  0xed   :  { %435 = vpow2.f32 %v324_v56 }
  0xee   :  { %437 = vpow2.f32 %v322_v61 }
  0xef   :  { %439 = vpow2.f32 %v326_v62 }
  0xf9   :  { %v434_v63 = vpop.eup %433 }
  0xfa   :  { %v436_v0 = vpop.eup %435  ;;  %v378_v1 = vadd.f32 -1.0, %v434_v63 }
  0xfb   :  { %v380_v2 = vadd.f32 -1.0, %v436_v0  ;;  %v438_v3 = vpop.eup %437 }
  0xfc   :  { %v332_v4 = vsel %vm312_vm3, %v265_v45, %v378_v1  ;;  %v440_v5 = vpop.eup %439  ;;  %v379_v7 = vadd.f32 -1.0, %v438_v3 }
  0xfd   :  { %336 = vst [vmem:[%s580_s3] sm:$0xff] %v332_v4  ;;  %v334_v6 = vsel %vm314_vm4, %v306_v46, %v380_v2  ;;  %v381_v8 = vadd.f32 -1.0, %v440_v5 }
  0xfe   :  { %338 = vst [vmem:[%s580_s3 + $0x10] sm:$0xff] %v334_v6  ;;  %v333_v9 = vsel %vm313_vm5, %v267_v51, %v379_v7 }
  0xff   :  { %337 = vst [vmem:[%s580_s3 + $0x8] sm:$0xff] %v333_v9  ;;  %v335_v10 = vsel %vm315_vm6, %v308_v52, %v381_v8 }
 0x100   :  { %339 = vst [vmem:[%s580_s3 + $0x18] sm:$0xff] %v335_v10 }

// kernel: _device_forward.46
= control target key start
LH: loop header
LB: loop body
LE: loop exit
PB: predicated region body
PF: predicated region fallthrough
CT: control target
= control target key end

     0   :  { %vm74_vm0 = vcmask 1043456   ;;  %v180_v0 = vmov 0.0   ;;  %vm181_vm1 = vmmov 0   ;;  %v182_v3 = vmov 0   ;;  %s233_s1 = inlined_call_operand.vmem [shape: bf16[72,128], index: 1, kind: input, shape index: {}]   ;;  %s234_s2 = inlined_call_operand.vmem [shape: f32[16,1], index: 2, kind: input, shape index: {}]   ;;  %s235_s0 = inlined_call_operand.vmem [shape: bf16[16,72], index: 0, kind: input, shape index: {}]   ;;  %s236_s3 = inlined_call_operand.vmem [shape: f32[16,128], index: 3, kind: output, shape index: {}]  }
   0x1   :  { %152 = vmatprep.subr.bf16.mxu0 %v180_v0  ;;  %v170_v1 = vld [vmem:[%s233_s1 + $0x20] ss:$0 sps:$4 sm:$0xff]   ;;  %162 = vmatprep.mubr.msk.bf16.mxu0 %vm181_vm1, %v180_v0  ;;  %v171_v4 = vld [vmem:[%s233_s1 + $0x18] sm:$0xff]   ;;  %v172_v6 = vld [vmem:[%s233_s1 + $0x10] sm:$0xff]   ;;  %vm70_vm2 = vcmask 588800  }
   0x2   :  { %v76_v2 = vsel %vm74_vm0, %v170_v1, 0  ;;  %169 = vset.pattern.permute.xlu0 %v182_v3  ;;  %v26_v5 = vld [vmem:[%s234_s2] sm:$0xff]  ;;  %v27_v7 = vld [vmem:[%s234_s2 + $0x8] sm:$0xff] }
   0x3   :  { %153 = vmatpush3.bf16.msra.mxu0 %v76_v2  ;;  %30 = vperm.xlu0 %169, %v26_v5   ;;  %v173_v8 = vld [vmem:[%s233_s1 + $0x8] sm:$0xff]   ;;  %v174_v9 = vld [vmem:[%s233_s1] sm:$0xff]  }
   0x4   :  { %154 = vmatprep.subr.bf16.mxu0 %v180_v0  ;;  %v175_v10 = vld [vmem:[%s235_s0] sm:$0xff]  }
   0x7   :  { %155 = vmatpush3.bf16.msra.mxu0 %v171_v4  ;;  %35 = vperm.xlu0 %169, %v27_v7  }
   0x8   :  { %156 = vmatprep.subr.bf16.mxu0 %v180_v0 }
   0xb   :  { %157 = vmatpush3.bf16.msra.mxu0 %v172_v6 }
   0xc   :  { %158 = vmatprep.subr.bf16.mxu0 %v180_v0 }
   0xf   :  { %159 = vmatpush3.bf16.msra.mxu0 %v173_v8 }
  0x10   :  { %160 = vmatprep.subr.bf16.mxu0 %v180_v0 }
  0x13   :  { %161 = vmatpush3.bf16.msra.mxu0 %v174_v9 }
  0x16   :  { %163 = vmatmul.mubr.msk.bf16.vlgmr.msra.gmra.mxu0 %vm70_vm2, %v175_v10 }
  0x7e   :  { %v31_v11 = vpop.permute.xlu0 %30 }
  0x82   :  { %v36_v16 = vpop.permute.xlu0 %35 }
  0xd6   :  { %v112_v12 = vpop.f32.mrf.mxu0 }
  0xd7   :  { %v113_v13 = vadd.f32 %v112_v12, %v31_v11 }
  0xd8   :  { %v164_v14 = vpop.f32.mrf.mxu0 }
  0xd9   :  { %v121_v15 = vmin.f32 %v113_v13, 0.0  ;;  %vm119_vm3 = vcmp.gt.f32.partialorder %v113_v13, 0.0 }
  0xda   :  { %v115_v17 = vpop.f32.mrf.mxu0 }
  0xdb   :  { %v123_v18 = vmul.f32 1.442695, %v121_v15  ;;  %v116_v19 = vadd.f32 %v115_v17, %v36_v16 }
  0xdc   :  { %v165_v20 = vpop.f32.mrf.mxu0 }
  0xdd   :  { %176 = vpow2.f32 %v123_v18  ;;  %v122_v21 = vmin.f32 %v116_v19, 0.0  ;;  %vm120_vm4 = vcmp.gt.f32.partialorder %v116_v19, 0.0 }
  0xdf   :  { %v125_v22 = vmul.f32 1.442695, %v122_v21 }
  0xe1   :  { %178 = vpow2.f32 %v125_v22 }
  0xea   :  { %v177_v23 = vpop.eup %176 }
  0xeb   :  { %v144_v24 = vadd.f32 -1.0, %v177_v23 }
  0xed   :  { %v129_v25 = vsel %vm119_vm3, %v113_v13, %v144_v24 }
  0xee   :  { %v179_v26 = vpop.eup %178  ;;  %131 = vst [vmem:[%s236_s3] sm:$0xff] %v129_v25 }
  0xef   :  { %v145_v27 = vadd.f32 -1.0, %v179_v26 }
  0xf1   :  { %v130_v28 = vsel %vm120_vm4, %v116_v19, %v145_v27 }
  0xf2   :  { %132 = vst [vmem:[%s236_s3 + $0x8] sm:$0xff] %v130_v28 }

// kernel: _device_forward.47
= control target key start
LH: loop header
LB: loop body
LE: loop exit
PB: predicated region body
PF: predicated region fallthrough
CT: control target
= control target key end

     0   :  { %v205_v0 = vmov 0   ;;  %vm110_vm0 = vcmask 130048   ;;  %s271_s1 = inlined_call_operand.vmem [shape: bf16[144,128], index: 1, kind: input, shape index: {}]   ;;  %s272_s0 = inlined_call_operand.vmem [shape: bf16[16,144], index: 0, kind: input, shape index: {}]   ;;  %s273_s2 = inlined_call_operand.vmem [shape: f32[16,1], index: 2, kind: input, shape index: {}]   ;;  %s274_s3 = inlined_call_operand.vmem [shape: f32[16,128], index: 3, kind: output, shape index: {}]  }
   0x1   :  { %114 = vmatprep.subr.bf16.mxu0 %v205_v0  ;;  %v189_v1 = vld [vmem:[%s271_s1 + $0x38] sm:$0xff]   ;;  %188 = vset.pattern.permute.xlu0 %v205_v0  ;;  %v190_v2 = vld [vmem:[%s271_s1 + $0x30] sm:$0xff]   ;;  %v191_v3 = vld [vmem:[%s271_s1 + $0x28] sm:$0xff]  }
   0x2   :  { %115 = vmatpush1.bf16.msra.mxu0 %v189_v1  ;;  %v192_v4 = vld [vmem:[%s271_s1 + $0x20] sm:$0xff]   ;;  %v36_v7 = vld [vmem:[%s273_s2 + $0x8] sm:$0xff]  ;;  %v193_v8 = vld [vmem:[%s271_s1 + $0x18] sm:$0xff]  }
   0x3   :  { %116 = vmatprep.subr.bf16.mxu0 %v205_v0  ;;  %v200_v5 = vld [vmem:[%s272_s0 + $0x4] ss:$8 sps:$4 sm:$0xff]   ;;  %v194_v9 = vld [vmem:[%s271_s1 + $0x10] sm:$0xff]   ;;  %v198_v13 = vld [vmem:[%s272_s0] ss:$8 sps:$4 sm:$0xff]  }
   0x4   :  { %v35_v6 = vld [vmem:[%s273_s2] sm:$0xff]  ;;  %184 = vmatprep.mubr.msk.bf16.mxu0 %vm110_vm0, %v200_v5  ;;  %v195_v10 = vld [vmem:[%s271_s1 + $0x8] sm:$0xff]  }
   0x5   :  { %39 = vperm.xlu0 %188, %v35_v6   ;;  %v196_v11 = vld [vmem:[%s271_s1] sm:$0xff]  }
   0x6   :  { %117 = vmatpush1.bf16.msra.mxu0 %v190_v2  ;;  %v197_v12 = vld [vmem:[%s271_s1 + $0x40] sm:$0xff]  }
   0x7   :  { %118 = vmatprep.subr.bf16.mxu0 %v205_v0 }
   0x9   :  { %44 = vperm.xlu0 %188, %v36_v7  }
   0xa   :  { %119 = vmatpush1.bf16.msra.mxu0 %v191_v3 }
   0xb   :  { %120 = vmatprep.subr.bf16.mxu0 %v205_v0 }
   0xe   :  { %121 = vmatpush1.bf16.msra.mxu0 %v192_v4 }
   0xf   :  { %122 = vmatprep.subr.bf16.mxu0 %v205_v0 }
  0x12   :  { %123 = vmatpush1.bf16.msra.mxu0 %v193_v8 }
  0x13   :  { %124 = vmatprep.subr.bf16.mxu0 %v205_v0 }
  0x16   :  { %125 = vmatpush1.bf16.msra.mxu0 %v194_v9 }
  0x17   :  { %126 = vmatprep.subr.bf16.mxu0 %v205_v0 }
  0x1a   :  { %127 = vmatpush1.bf16.msra.mxu0 %v195_v10 }
  0x1b   :  { %128 = vmatprep.subr.bf16.mxu0 %v205_v0 }
  0x1e   :  { %129 = vmatpush1.bf16.msra.mxu0 %v196_v11 }
  0x1f   :  { %144 = vmatprep.subr.bf16.mxu0 %v205_v0 }
  0x22   :  { %145 = vmatpush2.bf16.msra.mxu0 %v197_v12 }
  0x25   :  { %147 = vmatmul.mubr.bf16.vlgmr.msra.gmra.mxu0 %v198_v13 }
  0x80   :  { %v40_v14 = vpop.permute.xlu0 %39 }
  0x84   :  { %v45_v19 = vpop.permute.xlu0 %44 }
  0xe5   :  { %v148_v15 = vpop.f32.mrf.mxu0 }
  0xe6   :  { %v149_v16 = vadd.f32 %v148_v15, %v40_v14 }
  0xe7   :  { %v150_v17 = vpop.f32.mrf.mxu0 }
  0xe8   :  { %v157_v18 = vmin.f32 %v149_v16, 0.0  ;;  %vm155_vm1 = vcmp.gt.f32.partialorder %v149_v16, 0.0 }
  0xe9   :  { %v151_v20 = vpop.f32.mrf.mxu0 }
  0xea   :  { %v159_v21 = vmul.f32 1.442695, %v157_v18  ;;  %v152_v22 = vadd.f32 %v151_v20, %v45_v19 }
  0xeb   :  { %v153_v23 = vpop.f32.mrf.mxu0 }
  0xec   :  { %201 = vpow2.f32 %v159_v21  ;;  %v158_v24 = vmin.f32 %v152_v22, 0.0  ;;  %vm156_vm2 = vcmp.gt.f32.partialorder %v152_v22, 0.0 }
  0xee   :  { %v161_v25 = vmul.f32 1.442695, %v158_v24 }
  0xf0   :  { %203 = vpow2.f32 %v161_v25 }
  0xf9   :  { %v202_v26 = vpop.eup %201 }
  0xfa   :  { %v185_v27 = vadd.f32 -1.0, %v202_v26 }
  0xfc   :  { %v165_v28 = vsel %vm155_vm1, %v149_v16, %v185_v27 }
  0xfd   :  { %v204_v29 = vpop.eup %203  ;;  %167 = vst [vmem:[%s274_s3] sm:$0xff] %v165_v28 }
  0xfe   :  { %v186_v30 = vadd.f32 -1.0, %v204_v29 }
 0x100   :  { %v166_v31 = vsel %vm156_vm2, %v152_v22, %v186_v30 }
 0x101   :  { %168 = vst [vmem:[%s274_s3 + $0x8] sm:$0xff] %v166_v31 }

// kernel: _device_forward.48
= control target key start
LH: loop header
LB: loop body
LE: loop exit
PB: predicated region body
PF: predicated region fallthrough
CT: control target
= control target key end

     0   :  { %v284_v0 = vmov 0   ;;  %vm133_vm0 = vcmask 130048   ;;  %s368_s1 = inlined_call_operand.vmem [shape: bf16[144,128], index: 1, kind: input, shape index: {}]   ;;  %s369_s0 = inlined_call_operand.vmem [shape: bf16[32,144], index: 0, kind: input, shape index: {}]   ;;  %s370_s2 = inlined_call_operand.vmem [shape: f32[32,1], index: 2, kind: input, shape index: {}]   ;;  %s371_s3 = inlined_call_operand.vmem [shape: f32[32,128], index: 3, kind: output, shape index: {}]  }
   0x1   :  { %140 = vmatprep.subr.bf16.mxu0 %v284_v0  ;;  %240 = vmatprep.subr.bf16.mxu1 %v284_v0  ;;  %v261_v1 = vld [vmem:[%s368_s1 + $0x38] sm:$0xff]   ;;  %v262_v2 = vld [vmem:[%s368_s1 + $0x30] sm:$0xff]   ;;  %v263_v3 = vld [vmem:[%s368_s1 + $0x28] sm:$0xff]  }
   0x2   :  { %260 = vset.pattern.permute.xlu1 %v284_v0  ;;  %259 = vset.pattern.permute.xlu0 %v284_v0  ;;  %v264_v4 = vld [vmem:[%s368_s1 + $0x20] sm:$0xff]   ;;  %v275_v6 = vld [vmem:[%s369_s0 + $0x14] ss:$8 sps:$4 sm:$0xff]   ;;  %v38_v11 = vld [vmem:[%s370_s2 + $0x8] sm:$0xff] }
   0x3   :  { %141 = vmatpush1.bf16.msra.mxu0 %v261_v1  ;;  %249 = vmatpush1.bf16.msra.mxu1 %v261_v1  ;;  %v272_v5 = vld [vmem:[%s369_s0 + $0x4] ss:$8 sps:$4 sm:$0xff]   ;;  %v39_v7 = vld [vmem:[%s370_s2 + $0x10] sm:$0xff]  ;;  %v40_v9 = vld [vmem:[%s370_s2 + $0x18] sm:$0xff] }
   0x4   :  { %142 = vmatprep.subr.bf16.mxu0 %v284_v0  ;;  %241 = vmatprep.subr.bf16.mxu1 %v284_v0  ;;  %v37_v8 = vld [vmem:[%s370_s2] sm:$0xff]  ;;  %v265_v10 = vld [vmem:[%s368_s1 + $0x18] sm:$0xff]   ;;  %v266_v12 = vld [vmem:[%s368_s1 + $0x10] sm:$0xff]  }
   0x5   :  { %234 = vmatprep.mubr.msk.bf16.mxu0 %vm133_vm0, %v272_v5  ;;  %53 = vperm.xlu1 %260, %v39_v7   ;;  %v267_v13 = vld [vmem:[%s368_s1 + $0x8] sm:$0xff]   ;;  %v268_v14 = vld [vmem:[%s368_s1] sm:$0xff]   ;;  %v273_v17 = vld [vmem:[%s369_s0 + $0x10] ss:$8 sps:$4 sm:$0xff]  }
   0x6   :  { %235 = vmatprep.mubr.msk.bf16.mxu1 %vm133_vm0, %v275_v6  ;;  %43 = vperm.xlu0 %259, %v37_v8   ;;  %v269_v15 = vld [vmem:[%s368_s1 + $0x40] sm:$0xff]  }
   0x7   :  { %143 = vmatpush1.bf16.msra.mxu0 %v262_v2  ;;  %250 = vmatpush1.bf16.msra.mxu1 %v262_v2  ;;  %v270_v16 = vld [vmem:[%s369_s0] ss:$8 sps:$4 sm:$0xff]  }
   0x8   :  { %144 = vmatprep.subr.bf16.mxu0 %v284_v0  ;;  %242 = vmatprep.subr.bf16.mxu1 %v284_v0 }
   0x9   :  { %58 = vperm.xlu1 %260, %v40_v9  }
   0xa   :  { %48 = vperm.xlu0 %259, %v38_v11  }
   0xb   :  { %145 = vmatpush1.bf16.msra.mxu0 %v263_v3  ;;  %251 = vmatpush1.bf16.msra.mxu1 %v263_v3 }
   0xc   :  { %146 = vmatprep.subr.bf16.mxu0 %v284_v0  ;;  %243 = vmatprep.subr.bf16.mxu1 %v284_v0 }
   0xf   :  { %147 = vmatpush1.bf16.msra.mxu0 %v264_v4  ;;  %252 = vmatpush1.bf16.msra.mxu1 %v264_v4 }
  0x10   :  { %148 = vmatprep.subr.bf16.mxu0 %v284_v0  ;;  %244 = vmatprep.subr.bf16.mxu1 %v284_v0 }
  0x13   :  { %149 = vmatpush1.bf16.msra.mxu0 %v265_v10  ;;  %253 = vmatpush1.bf16.msra.mxu1 %v265_v10 }
  0x14   :  { %150 = vmatprep.subr.bf16.mxu0 %v284_v0  ;;  %245 = vmatprep.subr.bf16.mxu1 %v284_v0 }
  0x17   :  { %151 = vmatpush1.bf16.msra.mxu0 %v266_v12  ;;  %254 = vmatpush1.bf16.msra.mxu1 %v266_v12 }
  0x18   :  { %152 = vmatprep.subr.bf16.mxu0 %v284_v0  ;;  %246 = vmatprep.subr.bf16.mxu1 %v284_v0 }
  0x1b   :  { %153 = vmatpush1.bf16.msra.mxu0 %v267_v13  ;;  %255 = vmatpush1.bf16.msra.mxu1 %v267_v13 }
  0x1c   :  { %154 = vmatprep.subr.bf16.mxu0 %v284_v0  ;;  %247 = vmatprep.subr.bf16.mxu1 %v284_v0 }
  0x1f   :  { %155 = vmatpush1.bf16.msra.mxu0 %v268_v14  ;;  %256 = vmatpush1.bf16.msra.mxu1 %v268_v14 }
  0x20   :  { %170 = vmatprep.subr.bf16.mxu0 %v284_v0  ;;  %248 = vmatprep.subr.bf16.mxu1 %v284_v0 }
  0x23   :  { %171 = vmatpush2.bf16.msra.mxu0 %v269_v15  ;;  %257 = vmatpush2.bf16.msra.mxu1 %v269_v15 }
  0x26   :  { %173 = vmatmul.mubr.bf16.vlgmr.msra.gmra.mxu0 %v270_v16  ;;  %181 = vmatmul.mubr.bf16.vlgmr.msra.gmra.mxu1 %v273_v17 }
  0x80   :  { %v54_v18 = vpop.permute.xlu1 %53 }
  0x81   :  { %v44_v19 = vpop.permute.xlu0 %43 }
  0x84   :  { %v59_v26 = vpop.permute.xlu1 %58 }
  0x85   :  { %v49_v27 = vpop.permute.xlu0 %48 }
  0xe6   :  { %v174_v20 = vpop.f32.mrf.mxu0  ;;  %v182_v21 = vpop.f32.mrf.mxu1 }
  0xe7   :  { %v175_v22 = vadd.f32 %v174_v20, %v44_v19  ;;  %v183_v23 = vadd.f32 %v182_v21, %v54_v18 }
  0xe8   :  { %v176_v24 = vpop.f32.mrf.mxu0  ;;  %v184_v25 = vpop.f32.mrf.mxu1 }
  0xe9   :  { %v193_v28 = vmin.f32 %v175_v22, 0.0  ;;  %v195_v29 = vmin.f32 %v183_v23, 0.0  ;;  %vm189_vm1 = vcmp.gt.f32.partialorder %v175_v22, 0.0  ;;  %vm191_vm2 = vcmp.gt.f32.partialorder %v183_v23, 0.0 }
  0xea   :  { %v177_v30 = vpop.f32.mrf.mxu0  ;;  %v185_v31 = vpop.f32.mrf.mxu1 }
  0xeb   :  { %v197_v32 = vmul.f32 1.442695, %v193_v28  ;;  %v201_v33 = vmul.f32 1.442695, %v195_v29  ;;  %v178_v34 = vadd.f32 %v177_v30, %v49_v27  ;;  %v186_v35 = vadd.f32 %v185_v31, %v59_v26 }
  0xec   :  { %v179_v36 = vpop.f32.mrf.mxu0  ;;  %v187_v37 = vpop.f32.mrf.mxu1 }
  0xed   :  { %276 = vpow2.f32 %v197_v32  ;;  %v194_v38 = vmin.f32 %v178_v34, 0.0  ;;  %v196_v39 = vmin.f32 %v186_v35, 0.0  ;;  %vm190_vm3 = vcmp.gt.f32.partialorder %v178_v34, 0.0 }
  0xee   :  { %278 = vpow2.f32 %v201_v33  ;;  %vm192_vm4 = vcmp.gt.f32.partialorder %v186_v35, 0.0 }
  0xef   :  { %v199_v40 = vmul.f32 1.442695, %v194_v38  ;;  %v203_v41 = vmul.f32 1.442695, %v196_v39 }
  0xf1   :  { %280 = vpow2.f32 %v199_v40 }
  0xf2   :  { %282 = vpow2.f32 %v203_v41 }
  0xfa   :  { %v277_v42 = vpop.eup %276 }
  0xfb   :  { %v279_v43 = vpop.eup %278  ;;  %v236_v44 = vadd.f32 -1.0, %v277_v42 }
  0xfc   :  { %v238_v45 = vadd.f32 -1.0, %v279_v43 }
  0xfd   :  { %v209_v46 = vsel %vm189_vm1, %v175_v22, %v236_v44 }
  0xfe   :  { %v281_v47 = vpop.eup %280  ;;  %213 = vst [vmem:[%s371_s3] sm:$0xff] %v209_v46  ;;  %v211_v48 = vsel %vm191_vm2, %v183_v23, %v238_v45 }
  0xff   :  { %v283_v49 = vpop.eup %282  ;;  %215 = vst [vmem:[%s371_s3 + $0x10] sm:$0xff] %v211_v48  ;;  %v237_v50 = vadd.f32 -1.0, %v281_v47 }
 0x100   :  { %v239_v51 = vadd.f32 -1.0, %v283_v49 }
 0x101   :  { %v210_v52 = vsel %vm190_vm3, %v178_v34, %v237_v50 }
 0x102   :  { %214 = vst [vmem:[%s371_s3 + $0x8] sm:$0xff] %v210_v52  ;;  %v212_v53 = vsel %vm192_vm4, %v186_v35, %v239_v51 }
 0x103   :  { %216 = vst [vmem:[%s371_s3 + $0x18] sm:$0xff] %v212_v53 }

// kernel: _device_forward.49
= control target key start
LH: loop header
LB: loop body
LE: loop exit
PB: predicated region body
PF: predicated region fallthrough
CT: control target
= control target key end

     0   :  { %v465_v1 = vmov 0   ;;  %vm221_vm0 = vcmask 261120   ;;  %s584_s1 = inlined_call_operand.vmem [shape: bf16[288,128], index: 1, kind: input, shape index: {}]   ;;  %s585_s0 = inlined_call_operand.vmem [shape: bf16[32,288], index: 0, kind: input, shape index: {}]   ;;  %s586_s2 = inlined_call_operand.vmem [shape: f32[32,1], index: 2, kind: input, shape index: {}]   ;;  %s587_s3 = inlined_call_operand.vmem [shape: f32[32,128], index: 3, kind: output, shape index: {}]  }
   0x1   :  { %v431_v0 = vld [vmem:[%s584_s1 + $0x78] sm:$0xff]   ;;  %429 = vset.pattern.permute.xlu0 %v465_v1  ;;  %430 = vset.pattern.permute.xlu1 %v465_v1  ;;  %v433_v3 = vld [vmem:[%s584_s1 + $0x70] sm:$0xff]   ;;  %v435_v5 = vld [vmem:[%s584_s1 + $0x68] sm:$0xff]  }
   0x2   :  { %v432_v2 = vld [vmem:[%s584_s1 + $0x38] sm:$0xff]   ;;  %388 = vmatprep.subr.bf16.mxu0 %v431_v0  ;;  %v434_v4 = vld [vmem:[%s584_s1 + $0x30] sm:$0xff]   ;;  %v436_v6 = vld [vmem:[%s584_s1 + $0x28] sm:$0xff]  }
   0x3   :  { %389 = vmatpush3.bf16.msra.mxu0 %v432_v2  ;;  %v437_v7 = vld [vmem:[%s584_s1 + $0x60] sm:$0xff]   ;;  %v439_v9 = vld [vmem:[%s584_s1 + $0x58] sm:$0xff]   ;;  %v446_v11 = vld [vmem:[%s584_s1 + $0x88] sm:$0xff]  }
   0x4   :  { %390 = vmatprep.subr.bf16.mxu0 %v433_v3  ;;  %v438_v8 = vld [vmem:[%s584_s1 + $0x20] sm:$0xff]   ;;  %v440_v10 = vld [vmem:[%s584_s1 + $0x18] sm:$0xff]   ;;  %v441_v12 = vld [vmem:[%s584_s1 + $0x50] sm:$0xff]   ;;  %420 = vmatprep.subr.bf16.mxu1 %v446_v11 }
   0x5   :  { %v442_v13 = vld [vmem:[%s584_s1 + $0x10] sm:$0xff]   ;;  %v443_v14 = vld [vmem:[%s584_s1 + $0x48] sm:$0xff]   ;;  %421 = vmatpush3.bf16.msra.mxu1 %v446_v11  ;;  %v451_v16 = vld [vmem:[%s584_s1 + $0x80] sm:$0xff]  }
   0x6   :  { %v450_v15 = vld [vmem:[%s585_s0 + $0x4] ss:$12 sps:$4 sm:$0xff]   ;;  %v452_v17 = vld [vmem:[%s585_s0 + $0x8] ss:$12 sps:$4 sm:$0xff]   ;;  %422 = vmatprep.subr.bf16.mxu1 %v451_v16  ;;  %v453_v18 = vld [vmem:[%s585_s0 + $0x20] ss:$12 sps:$4 sm:$0xff]  }
   0x7   :  { %391 = vmatpush3.bf16.msra.mxu0 %v434_v4  ;;  %260 = vmatprep.mubr.bf16.mxu0 %v450_v15  ;;  %v59_v19 = vld [vmem:[%s586_s2] sm:$0xff]  ;;  %v444_v20 = vld [vmem:[%s584_s1 + $0x8] sm:$0xff]   ;;  %v61_v21 = vld [vmem:[%s586_s2 + $0x10] sm:$0xff] }
   0x8   :  { %392 = vmatprep.subr.bf16.mxu0 %v435_v5  ;;  %424 = vmatprep.mubr.msk.bf16.mxu1 %vm221_vm0, %v452_v17  ;;  %v445_v22 = vld [vmem:[%s584_s1 + $0x40] sm:$0xff]   ;;  %v60_v23 = vld [vmem:[%s586_s2 + $0x8] sm:$0xff]  ;;  %v62_v24 = vld [vmem:[%s586_s2 + $0x18] sm:$0xff] }
   0x9   :  { %423 = vmatpush3.bf16.msra.mxu1 %v451_v16  ;;  %65 = vperm.xlu0 %429, %v59_v19   ;;  %v447_v25 = vld [vmem:[%s584_s1] sm:$0xff]   ;;  %v454_v27 = vld [vmem:[%s585_s0 + $0x1c] ss:$12 sps:$4 sm:$0xff]  }
   0xa   :  { %75 = vperm.xlu1 %430, %v61_v21   ;;  %v448_v26 = vld [vmem:[%s585_s0] ss:$12 sps:$4 sm:$0xff]   ;;  %v456_v28 = vld [vmem:[%s585_s0 + $0x18] ss:$12 sps:$4 sm:$0xff]  }
   0xb   :  { %393 = vmatpush3.bf16.msra.mxu0 %v436_v6 }
   0xc   :  { %394 = vmatprep.subr.bf16.mxu0 %v437_v7  ;;  %425 = vmatmul.mubr.msk.bf16.vlgmr.msra.gmra.mxu1 %vm221_vm0, %v453_v18 }
   0xd   :  { %70 = vperm.xlu0 %429, %v60_v23  }
   0xe   :  { %80 = vperm.xlu1 %430, %v62_v24  }
   0xf   :  { %395 = vmatpush3.bf16.msra.mxu0 %v438_v8 }
  0x10   :  { %396 = vmatprep.subr.bf16.mxu0 %v439_v9 }
  0x13   :  { %397 = vmatpush3.bf16.msra.mxu0 %v440_v10 }
  0x14   :  { %398 = vmatprep.subr.bf16.mxu0 %v441_v12 }
  0x17   :  { %399 = vmatpush3.bf16.msra.mxu0 %v442_v13 }
  0x18   :  { %400 = vmatprep.subr.bf16.mxu0 %v443_v14 }
  0x1b   :  { %401 = vmatpush3.bf16.msra.mxu0 %v444_v20 }
  0x1c   :  { %402 = vmatprep.subr.bf16.mxu0 %v445_v22 }
  0x1f   :  { %403 = vmatpush3.bf16.msra.mxu0 %v447_v25 }
  0x22   :  { %261 = vmatmul.mubr.bf16.vlgmr.msra.gmra.mxu0 %v448_v26 }
  0x23   :  { %268 = vmatprep.mubr.bf16.mxu0 %v454_v27 }
  0x2a   :  { %269 = vmatmul.mubr.bf16.gmra.mxu0 %v456_v28 }
  0x84   :  { %v66_v30 = vpop.permute.xlu0 %65 }
  0x85   :  { %v76_v46 = vpop.permute.xlu1 %75 }
  0x88   :  { %v71_v39 = vpop.permute.xlu0 %70 }
  0x89   :  { %v81_v58 = vpop.permute.xlu1 %80 }
  0xcc   :  { %v426_v29 = vpop.f32.mrf.mxu1 }
  0xce   :  { %v311_v32 = vpop.f32.mrf.mxu1 }
  0xd0   :  { %v427_v36 = vpop.f32.mrf.mxu1 }
  0xd2   :  { %v314_v43 = vpop.f32.mrf.mxu1 }
  0xe2   :  { %v404_v31 = vpop.f32.mrf.mxu0 }
  0xe4   :  { %v405_v33 = vpop.f32.mrf.mxu0 }
  0xe5   :  { %v406_v34 = vadd.f32 %v405_v33, %v404_v31 }
  0xe6   :  { %v407_v35 = vpop.f32.mrf.mxu0 }
  0xe7   :  { %v263_v37 = vadd.f32 %v406_v34, %v66_v30 }
  0xe8   :  { %v408_v38 = vpop.f32.mrf.mxu0 }
  0xe9   :  { %v409_v40 = vadd.f32 %v408_v38, %v407_v35  ;;  %v312_v41 = vadd.f32 %v311_v32, %v263_v37 }
  0xea   :  { %v410_v42 = vpop.f32.mrf.mxu0 }
  0xeb   :  { %v330_v44 = vmin.f32 %v312_v41, 0.0  ;;  %v266_v45 = vadd.f32 %v409_v40, %v71_v39  ;;  %vm326_vm1 = vcmp.gt.f32.partialorder %v312_v41, 0.0 }
  0xec   :  { %v411_v47 = vpop.f32.mrf.mxu0 }
  0xed   :  { %v334_v48 = vmul.f32 1.442695, %v330_v44  ;;  %v412_v49 = vadd.f32 %v411_v47, %v410_v42  ;;  %v315_v50 = vadd.f32 %v314_v43, %v266_v45 }
  0xee   :  { %v413_v51 = vpop.f32.mrf.mxu0 }
  0xef   :  { %457 = vpow2.f32 %v334_v48  ;;  %v271_v52 = vadd.f32 %v412_v49, %v76_v46  ;;  %v331_v53 = vmin.f32 %v315_v50, 0.0  ;;  %vm327_vm2 = vcmp.gt.f32.partialorder %v315_v50, 0.0 }
  0xf0   :  { %v414_v54 = vpop.f32.mrf.mxu0 }
  0xf1   :  { %v320_v55 = vadd.f32 %v426_v29, %v271_v52  ;;  %v336_v56 = vmul.f32 1.442695, %v331_v53  ;;  %v415_v57 = vadd.f32 %v414_v54, %v413_v51 }
  0xf3   :  { %v332_v59 = vmin.f32 %v320_v55, 0.0  ;;  %459 = vpow2.f32 %v336_v56  ;;  %v274_v60 = vadd.f32 %v415_v57, %v81_v58  ;;  %vm328_vm3 = vcmp.gt.f32.partialorder %v320_v55, 0.0 }
  0xf5   :  { %v338_v61 = vmul.f32 1.442695, %v332_v59  ;;  %v323_v62 = vadd.f32 %v427_v36, %v274_v60 }
  0xf7   :  { %461 = vpow2.f32 %v338_v61  ;;  %v333_v63 = vmin.f32 %v323_v62, 0.0  ;;  %vm329_vm4 = vcmp.gt.f32.partialorder %v323_v62, 0.0 }
  0xf9   :  { %v340_v0 = vmul.f32 1.442695, %v333_v63 }
  0xfb   :  { %463 = vpow2.f32 %v340_v0 }
  0xfc   :  { %v458_v1 = vpop.eup %457 }
  0xfd   :  { %v384_v2 = vadd.f32 -1.0, %v458_v1 }
  0xff   :  { %v346_v3 = vsel %vm326_vm1, %v312_v41, %v384_v2 }
 0x100   :  { %v460_v4 = vpop.eup %459  ;;  %350 = vst [vmem:[%s587_s3] sm:$0xff] %v346_v3 }
 0x101   :  { %v385_v5 = vadd.f32 -1.0, %v460_v4 }
 0x103   :  { %v347_v6 = vsel %vm327_vm2, %v315_v50, %v385_v5 }
 0x104   :  { %v462_v7 = vpop.eup %461  ;;  %351 = vst [vmem:[%s587_s3 + $0x8] sm:$0xff] %v347_v6 }
 0x105   :  { %v386_v8 = vadd.f32 -1.0, %v462_v7 }
 0x107   :  { %v348_v9 = vsel %vm328_vm3, %v320_v55, %v386_v8 }
 0x108   :  { %v464_v10 = vpop.eup %463  ;;  %352 = vst [vmem:[%s587_s3 + $0x10] sm:$0xff] %v348_v9 }
 0x109   :  { %v387_v11 = vadd.f32 -1.0, %v464_v10 }
 0x10b   :  { %v349_v12 = vsel %vm329_vm4, %v323_v62, %v387_v11 }
 0x10c   :  { %353 = vst [vmem:[%s587_s3 + $0x18] sm:$0xff] %v349_v12 }

// kernel: _device_forward.57
= control target key start
LH: loop header
LB: loop body
LE: loop exit
PB: predicated region body
PF: predicated region fallthrough
CT: control target
= control target key end

     0   :  { %v381_v1 = vmov 0.0   ;;  %vm382_vm0 = vmmov 0   ;;  %v383_v3 = vmov 0   ;;  %vm190_vm1 = vcmask 261120   ;;  %s479_s1 = inlined_call_operand.vmem [shape: bf16[288,128], index: 1, kind: input, shape index: {}]   ;;  %s480_s0 = inlined_call_operand.vmem [shape: bf16[16,288], index: 0, kind: input, shape index: {}]   ;;  %s481_s2 = inlined_call_operand.vmem [shape: f32[16,1], index: 2, kind: input, shape index: {}]   ;;  %s482_s3 = inlined_call_operand.vmem [shape: f32[16,128], index: 3, kind: output, shape index: {}]  }
   0x1   :  { %v355_v0 = vld [vmem:[%s479_s1 + $0x78] sm:$0xff]   ;;  %343 = vmatprep.subr.bf16.mxu1 %v381_v1  ;;  %347 = vmatprep.mubr.msk.bf16.mxu1 %vm382_vm0, %v381_v1  ;;  %v357_v4 = vld [vmem:[%s479_s1 + $0x70] sm:$0xff]   ;;  %v359_v6 = vld [vmem:[%s479_s1 + $0x68] sm:$0xff]  }
   0x2   :  { %v356_v2 = vld [vmem:[%s479_s1 + $0x38] sm:$0xff]   ;;  %354 = vset.pattern.permute.xlu0 %v383_v3  ;;  %318 = vmatprep.subr.bf16.mxu0 %v355_v0  ;;  %v358_v5 = vld [vmem:[%s479_s1 + $0x30] sm:$0xff]   ;;  %v360_v7 = vld [vmem:[%s479_s1 + $0x28] sm:$0xff]  }
   0x3   :  { %319 = vmatpush3.bf16.msra.mxu0 %v356_v2  ;;  %v361_v8 = vld [vmem:[%s479_s1 + $0x60] sm:$0xff]   ;;  %v363_v10 = vld [vmem:[%s479_s1 + $0x58] sm:$0xff]   ;;  %v369_v11 = vld [vmem:[%s479_s1 + $0x88] sm:$0xff]  }
   0x4   :  { %320 = vmatprep.subr.bf16.mxu0 %v357_v4  ;;  %v362_v9 = vld [vmem:[%s479_s1 + $0x20] sm:$0xff]   ;;  %v364_v12 = vld [vmem:[%s479_s1 + $0x18] sm:$0xff]   ;;  %v365_v13 = vld [vmem:[%s479_s1 + $0x50] sm:$0xff]   ;;  %344 = vmatpush3.bf16.msra.mxu1 %v369_v11 }
   0x5   :  { %345 = vmatprep.subr.bf16.mxu1 %v381_v1  ;;  %v372_v14 = vld [vmem:[%s479_s1 + $0x80] sm:$0xff]   ;;  %v366_v15 = vld [vmem:[%s479_s1 + $0x10] sm:$0xff]   ;;  %v367_v17 = vld [vmem:[%s479_s1 + $0x48] sm:$0xff]  }
   0x6   :  { %v375_v16 = vld [vmem:[%s480_s0 + $0x4] ss:$12 sps:$4 sm:$0xff]   ;;  %v376_v18 = vld [vmem:[%s480_s0 + $0x8] ss:$12 sps:$4 sm:$0xff]   ;;  %v373_v24 = vld [vmem:[%s480_s0] ss:$12 sps:$4 sm:$0xff]  }
   0x7   :  { %321 = vmatpush3.bf16.msra.mxu0 %v358_v5  ;;  %v55_v19 = vld [vmem:[%s481_s2] sm:$0xff]  ;;  %226 = vmatprep.mubr.bf16.mxu0 %v375_v16  ;;  %v56_v20 = vld [vmem:[%s481_s2 + $0x8] sm:$0xff] }
   0x8   :  { %322 = vmatprep.subr.bf16.mxu0 %v359_v6  ;;  %346 = vmatpush3.bf16.msra.mxu1 %v372_v14  ;;  %v368_v21 = vld [vmem:[%s479_s1 + $0x8] sm:$0xff]   ;;  %v370_v22 = vld [vmem:[%s479_s1 + $0x40] sm:$0xff]  }
   0x9   :  { %59 = vperm.xlu0 %354, %v55_v19   ;;  %v371_v23 = vld [vmem:[%s479_s1] sm:$0xff]  }
   0xb   :  { %323 = vmatpush3.bf16.msra.mxu0 %v360_v7  ;;  %348 = vmatmul.mubr.msk.bf16.vlgmr.msra.gmra.mxu1 %vm190_vm1, %v376_v18 }
   0xc   :  { %324 = vmatprep.subr.bf16.mxu0 %v361_v8 }
   0xd   :  { %64 = vperm.xlu0 %354, %v56_v20  }
   0xf   :  { %325 = vmatpush3.bf16.msra.mxu0 %v362_v9 }
  0x10   :  { %326 = vmatprep.subr.bf16.mxu0 %v363_v10 }
  0x13   :  { %327 = vmatpush3.bf16.msra.mxu0 %v364_v12 }
  0x14   :  { %328 = vmatprep.subr.bf16.mxu0 %v365_v13 }
  0x17   :  { %329 = vmatpush3.bf16.msra.mxu0 %v366_v15 }
  0x18   :  { %330 = vmatprep.subr.bf16.mxu0 %v367_v17 }
  0x1b   :  { %331 = vmatpush3.bf16.msra.mxu0 %v368_v21 }
  0x1c   :  { %332 = vmatprep.subr.bf16.mxu0 %v370_v22 }
  0x1f   :  { %333 = vmatpush3.bf16.msra.mxu0 %v371_v23 }
  0x22   :  { %227 = vmatmul.mubr.bf16.vlgmr.msra.gmra.mxu0 %v373_v24 }
  0x84   :  { %v60_v30 = vpop.permute.xlu0 %59 }
  0x88   :  { %v65_v38 = vpop.permute.xlu0 %64 }
  0xcb   :  { %v269_v25 = vpop.f32.mrf.mxu1 }
  0xcd   :  { %v349_v26 = vpop.f32.mrf.mxu1 }
  0xcf   :  { %v272_v27 = vpop.f32.mrf.mxu1 }
  0xd1   :  { %v350_v28 = vpop.f32.mrf.mxu1 }
  0xe2   :  { %v334_v29 = vpop.f32.mrf.mxu0 }
  0xe4   :  { %v335_v31 = vpop.f32.mrf.mxu0 }
  0xe5   :  { %v336_v32 = vadd.f32 %v335_v31, %v334_v29 }
  0xe6   :  { %v337_v33 = vpop.f32.mrf.mxu0 }
  0xe7   :  { %v229_v34 = vadd.f32 %v336_v32, %v60_v30 }
  0xe8   :  { %v338_v35 = vpop.f32.mrf.mxu0 }
  0xe9   :  { %v270_v36 = vadd.f32 %v269_v25, %v229_v34  ;;  %v339_v37 = vadd.f32 %v338_v35, %v337_v33 }
  0xeb   :  { %v278_v39 = vmin.f32 %v270_v36, 0.0  ;;  %v232_v40 = vadd.f32 %v339_v37, %v65_v38  ;;  %vm276_vm2 = vcmp.gt.f32.partialorder %v270_v36, 0.0 }
  0xed   :  { %v280_v41 = vmul.f32 1.442695, %v278_v39  ;;  %v273_v42 = vadd.f32 %v272_v27, %v232_v40 }
  0xef   :  { %377 = vpow2.f32 %v280_v41  ;;  %v279_v43 = vmin.f32 %v273_v42, 0.0  ;;  %vm277_vm3 = vcmp.gt.f32.partialorder %v273_v42, 0.0 }
  0xf1   :  { %v282_v44 = vmul.f32 1.442695, %v279_v43 }
  0xf3   :  { %379 = vpow2.f32 %v282_v44 }
  0xfc   :  { %v378_v45 = vpop.eup %377 }
  0xfd   :  { %v316_v46 = vadd.f32 -1.0, %v378_v45 }
  0xff   :  { %v286_v47 = vsel %vm276_vm2, %v270_v36, %v316_v46 }
 0x100   :  { %v380_v48 = vpop.eup %379  ;;  %288 = vst [vmem:[%s482_s3] sm:$0xff] %v286_v47 }
 0x101   :  { %v317_v49 = vadd.f32 -1.0, %v380_v48 }
 0x103   :  { %v287_v50 = vsel %vm277_vm3, %v273_v42, %v317_v49 }
 0x104   :  { %289 = vst [vmem:[%s482_s3 + $0x8] sm:$0xff] %v287_v50 }

// kernel: _device_forward.59
= control target key start
LH: loop header
LB: loop body
LE: loop exit
PB: predicated region body
PF: predicated region fallthrough
CT: control target
= control target key end

     0   :  { %v472_v1 = vmov 0   ;;  %vm244_vm0 = vcmask 130048   ;;  %s619_s1 = inlined_call_operand.vmem [shape: bf16[144,512], index: 1, kind: input, shape index: {}]   ;;  %s620_s0 = inlined_call_operand.vmem [shape: bf16[8,144], index: 0, kind: input, shape index: {}]   ;;  %s621_s2 = inlined_call_operand.vmem [shape: f32[8,1], index: 2, kind: input, shape index: {}]   ;;  %s622_s3 = inlined_call_operand.vmem [shape: f32[8,512], index: 3, kind: output, shape index: {}]  }
   0x1   :  { %v408_v0 = vld [vmem:[%s619_s1 + $0xe4] ss:$16 sps:$4 sm:$0xff]   ;;  %407 = vset.pattern.permute.xlu0 %v472_v1  ;;  %v410_v2 = vld [vmem:[%s619_s1 + $0xec] ss:$16 sps:$4 sm:$0xff]   ;;  %v412_v3 = vld [vmem:[%s619_s1 + $0xe0] ss:$16 sps:$4 sm:$0xff]  }
   0x2   :  { %248 = vmatprep.subr.bf16.mxu0 %v408_v0  ;;  %v413_v4 = vld [vmem:[%s619_s1 + $0xe8] ss:$16 sps:$4 sm:$0xff]   ;;  %289 = vmatprep.subr.bf16.mxu1 %v410_v2  ;;  %v414_v5 = vld [vmem:[%s619_s1 + $0xc4] ss:$16 sps:$4 sm:$0xff]   ;;  %v416_v6 = vld [vmem:[%s619_s1 + $0xcc] ss:$16 sps:$4 sm:$0xff]  }
   0x3   :  { %249 = vmatpush1.bf16.msra.mxu0 %v412_v3  ;;  %290 = vmatpush1.bf16.msra.mxu1 %v413_v4  ;;  %v418_v7 = vld [vmem:[%s619_s1 + $0xc0] ss:$16 sps:$4 sm:$0xff]   ;;  %v419_v8 = vld [vmem:[%s619_s1 + $0xc8] ss:$16 sps:$4 sm:$0xff]   ;;  %v420_v9 = vld [vmem:[%s619_s1 + $0xa4] ss:$16 sps:$4 sm:$0xff]  }
   0x4   :  { %250 = vmatprep.subr.bf16.mxu0 %v414_v5  ;;  %291 = vmatprep.subr.bf16.mxu1 %v416_v6  ;;  %v422_v10 = vld [vmem:[%s619_s1 + $0xac] ss:$16 sps:$4 sm:$0xff]   ;;  %v424_v11 = vld [vmem:[%s619_s1 + $0xa0] ss:$16 sps:$4 sm:$0xff]   ;;  %v425_v12 = vld [vmem:[%s619_s1 + $0xa8] ss:$16 sps:$4 sm:$0xff]  }
   0x5   :  { %v426_v13 = vld [vmem:[%s619_s1 + $0x84] ss:$16 sps:$4 sm:$0xff]   ;;  %v428_v14 = vld [vmem:[%s619_s1 + $0x8c] ss:$16 sps:$4 sm:$0xff]   ;;  %v430_v15 = vld [vmem:[%s619_s1 + $0x80] ss:$16 sps:$4 sm:$0xff]  }
   0x6   :  { %v431_v16 = vld [vmem:[%s619_s1 + $0x88] ss:$16 sps:$4 sm:$0xff]   ;;  %v432_v17 = vld [vmem:[%s619_s1 + $0x64] ss:$16 sps:$4 sm:$0xff]   ;;  %v434_v18 = vld [vmem:[%s619_s1 + $0x6c] ss:$16 sps:$4 sm:$0xff]  }
   0x7   :  { %251 = vmatpush1.bf16.msra.mxu0 %v418_v7  ;;  %292 = vmatpush1.bf16.msra.mxu1 %v419_v8  ;;  %v436_v19 = vld [vmem:[%s619_s1 + $0x60] ss:$16 sps:$4 sm:$0xff]   ;;  %v437_v20 = vld [vmem:[%s619_s1 + $0x68] ss:$16 sps:$4 sm:$0xff]   ;;  %v438_v21 = vld [vmem:[%s619_s1 + $0x44] ss:$16 sps:$4 sm:$0xff]  }
   0x8   :  { %252 = vmatprep.subr.bf16.mxu0 %v420_v9  ;;  %293 = vmatprep.subr.bf16.mxu1 %v422_v10  ;;  %v440_v22 = vld [vmem:[%s619_s1 + $0x4c] ss:$16 sps:$4 sm:$0xff]   ;;  %v442_v23 = vld [vmem:[%s619_s1 + $0x40] ss:$16 sps:$4 sm:$0xff]   ;;  %v443_v24 = vld [vmem:[%s619_s1 + $0x48] ss:$16 sps:$4 sm:$0xff]  }
   0x9   :  { %v444_v25 = vld [vmem:[%s619_s1 + $0x24] ss:$16 sps:$4 sm:$0xff]   ;;  %v446_v26 = vld [vmem:[%s619_s1 + $0x2c] ss:$16 sps:$4 sm:$0xff]   ;;  %v448_v27 = vld [vmem:[%s619_s1 + $0x20] ss:$16 sps:$4 sm:$0xff]  }
   0xa   :  { %v449_v28 = vld [vmem:[%s619_s1 + $0x28] ss:$16 sps:$4 sm:$0xff]   ;;  %v15_v29 = vld [vmem:[%s620_s0] sm:$0xff]  ;;  %v452_v32 = vld [vmem:[%s619_s1 + $0xc] ss:$16 sps:$4 sm:$0xff]  }
   0xb   :  { %253 = vmatpush1.bf16.msra.mxu0 %v424_v11  ;;  %294 = vmatpush1.bf16.msra.mxu1 %v425_v12  ;;  %v52_v30 = vld [vmem:[%s621_s2] sm:$0xff]  ;;  %v363_v33 = vcombine.high %v15_v29, %v15_v29  ;;  %v455_v35 = vld [vmem:[%s619_s1 + $0x8] ss:$16 sps:$4 sm:$0xff]   ;;  %v458_v37 = vld [vmem:[%s619_s1 + $0x10c] ss:$16 sps:$4 sm:$0xff]   ;;  %v362_v40 = vcombine.low %v15_v29, %v15_v29 }
   0xc   :  { %254 = vmatprep.subr.bf16.mxu0 %v426_v13  ;;  %295 = vmatprep.subr.bf16.mxu1 %v428_v14  ;;  %v450_v31 = vld [vmem:[%s619_s1 + $0x4] ss:$16 sps:$4 sm:$0xff]   ;;  %v454_v34 = vld [vmem:[%s619_s1] ss:$16 sps:$4 sm:$0xff]   ;;  %v461_v39 = vld [vmem:[%s619_s1 + $0x108] ss:$16 sps:$4 sm:$0xff]  }
   0xd   :  { %55 = vperm.xlu0 %407, %v52_v30   ;;  %400 = vmatprep.mubr.msk.bf16.mxu0 %vm244_vm0, %v363_v33  ;;  %v456_v36 = vld [vmem:[%s619_s1 + $0x104] ss:$16 sps:$4 sm:$0xff]   ;;  %v460_v38 = vld [vmem:[%s619_s1 + $0x100] ss:$16 sps:$4 sm:$0xff]  }
   0xe   :  { %401 = vmatprep.mubr.msk.bf16.mxu1 %vm244_vm0, %v363_v33 }
   0xf   :  { %255 = vmatpush1.bf16.msra.mxu0 %v430_v15  ;;  %296 = vmatpush1.bf16.msra.mxu1 %v431_v16 }
  0x10   :  { %256 = vmatprep.subr.bf16.mxu0 %v432_v17  ;;  %297 = vmatprep.subr.bf16.mxu1 %v434_v18 }
  0x13   :  { %257 = vmatpush1.bf16.msra.mxu0 %v436_v19  ;;  %298 = vmatpush1.bf16.msra.mxu1 %v437_v20 }
  0x14   :  { %258 = vmatprep.subr.bf16.mxu0 %v438_v21  ;;  %299 = vmatprep.subr.bf16.mxu1 %v440_v22 }
  0x17   :  { %259 = vmatpush1.bf16.msra.mxu0 %v442_v23  ;;  %300 = vmatpush1.bf16.msra.mxu1 %v443_v24 }
  0x18   :  { %260 = vmatprep.subr.bf16.mxu0 %v444_v25  ;;  %301 = vmatprep.subr.bf16.mxu1 %v446_v26 }
  0x1b   :  { %261 = vmatpush1.bf16.msra.mxu0 %v448_v27  ;;  %302 = vmatpush1.bf16.msra.mxu1 %v449_v28 }
  0x1c   :  { %262 = vmatprep.subr.bf16.mxu0 %v450_v31  ;;  %303 = vmatprep.subr.bf16.mxu1 %v452_v32 }
  0x1f   :  { %263 = vmatpush1.bf16.msra.mxu0 %v454_v34  ;;  %304 = vmatpush1.bf16.msra.mxu1 %v455_v35 }
  0x20   :  { %278 = vmatprep.subr.bf16.mxu0 %v456_v36  ;;  %319 = vmatprep.subr.bf16.mxu1 %v458_v37 }
  0x23   :  { %279 = vmatpush2.bf16.msra.mxu0 %v460_v38  ;;  %320 = vmatpush2.bf16.msra.mxu1 %v461_v39 }
  0x26   :  { %281 = vmatmul.mubr.bf16.vlgmr.msra.gmra.mxu0 %v362_v40  ;;  %322 = vmatmul.mubr.bf16.vlgmr.msra.gmra.mxu1 %v362_v40 }
  0x88   :  { %v56_v41 = vpop.permute.xlu0 %55 }
  0xe6   :  { %v282_v42 = vpop.f32.mrf.mxu0  ;;  %v323_v43 = vpop.f32.mrf.mxu1 }
  0xe7   :  { %v283_v44 = vadd.f32 %v282_v42, %v56_v41  ;;  %v324_v45 = vadd.f32 %v323_v43, %v56_v41 }
  0xe8   :  { %v284_v46 = vpop.f32.mrf.mxu0  ;;  %v325_v47 = vpop.f32.mrf.mxu1 }
  0xe9   :  { %v334_v48 = vmin.f32 %v283_v44, 0.0  ;;  %v336_v49 = vmin.f32 %v324_v45, 0.0  ;;  %v285_v50 = vadd.f32 %v284_v46, %v56_v41  ;;  %v326_v51 = vadd.f32 %v325_v47, %v56_v41 }
  0xea   :  { %v286_v52 = vpop.f32.mrf.mxu0  ;;  %v327_v53 = vpop.f32.mrf.mxu1  ;;  %vm330_vm1 = vcmp.gt.f32.partialorder %v283_v44, 0.0  ;;  %vm332_vm2 = vcmp.gt.f32.partialorder %v324_v45, 0.0 }
  0xeb   :  { %v338_v54 = vmul.f32 1.442695, %v334_v48  ;;  %v342_v55 = vmul.f32 1.442695, %v336_v49  ;;  %v335_v56 = vmin.f32 %v285_v50, 0.0  ;;  %v337_v57 = vmin.f32 %v326_v51, 0.0 }
  0xec   :  { %v287_v58 = vpop.f32.mrf.mxu0  ;;  %v328_v59 = vpop.f32.mrf.mxu1  ;;  %vm331_vm3 = vcmp.gt.f32.partialorder %v285_v50, 0.0  ;;  %vm333_vm4 = vcmp.gt.f32.partialorder %v326_v51, 0.0 }
  0xed   :  { %464 = vpow2.f32 %v338_v54  ;;  %v340_v60 = vmul.f32 1.442695, %v335_v56  ;;  %v344_v61 = vmul.f32 1.442695, %v337_v57 }
  0xee   :  { %466 = vpow2.f32 %v342_v55 }
  0xef   :  { %468 = vpow2.f32 %v340_v60 }
  0xf0   :  { %470 = vpow2.f32 %v344_v61 }
  0xfa   :  { %v465_v62 = vpop.eup %464 }
  0xfb   :  { %v467_v63 = vpop.eup %466  ;;  %v402_v0 = vadd.f32 -1.0, %v465_v62 }
  0xfc   :  { %v404_v1 = vadd.f32 -1.0, %v467_v63  ;;  %v469_v2 = vpop.eup %468 }
  0xfd   :  { %v350_v3 = vsel %vm330_vm1, %v283_v44, %v402_v0  ;;  %v471_v4 = vpop.eup %470  ;;  %v403_v6 = vadd.f32 -1.0, %v469_v2 }
  0xfe   :  { %354 = vst [vmem:[%s622_s3] sm:$0xff] %v350_v3  ;;  %v352_v5 = vsel %vm332_vm2, %v324_v45, %v404_v1  ;;  %v405_v7 = vadd.f32 -1.0, %v471_v4 }
  0xff   :  { %356 = vst [vmem:[%s622_s3 + $0x10] sm:$0xff] %v352_v5  ;;  %v351_v8 = vsel %vm331_vm3, %v285_v50, %v403_v6 }
 0x100   :  { %355 = vst [vmem:[%s622_s3 + $0x8] sm:$0xff] %v351_v8  ;;  %v353_v9 = vsel %vm333_vm4, %v326_v51, %v405_v7 }
 0x101   :  { %357 = vst [vmem:[%s622_s3 + $0x18] sm:$0xff] %v353_v9 }

// kernel: _device_forward.60
= control target key start
LH: loop header
LB: loop body
LE: loop exit
PB: predicated region body
PF: predicated region fallthrough
CT: control target
= control target key end

     0   :  { %vm134_vm0 = vcmask 1043456   ;;  %v333_v2 = vmov 0   ;;  %vm130_vm1 = vcmask 588800   ;;  %s420_s1 = inlined_call_operand.vmem [shape: bf16[72,512], index: 1, kind: input, shape index: {}]   ;;  %s421_s2 = inlined_call_operand.vmem [shape: f32[4,1], index: 2, kind: input, shape index: {}]   ;;  %s422_s0 = inlined_call_operand.vmem [shape: bf16[4,72], index: 0, kind: input, shape index: {}]   ;;  %s423_s3 = inlined_call_operand.vmem [shape: f32[4,512], index: 3, kind: output, shape index: {}]  }
   0x1   :  { %v32_v0 = vld [vmem:[%s420_s1 + $0x80] sm:$0xff]  ;;  %v33_v1 = vld [vmem:[%s420_s1 + $0x88] sm:$0xff]  ;;  %179 = vmatprep.mubr.bf16.mxu0 %v333_v2  ;;  %220 = vmatprep.mubr.bf16.mxu1 %v333_v2 }
   0x2   :  { %v284_v3 = vcombine.high %v32_v0, %v32_v0  ;;  %v286_v4 = vcombine.high %v33_v1, %v33_v1  ;;  %v283_v5 = vcombine.low %v32_v0, %v32_v0  ;;  %v285_v6 = vcombine.low %v33_v1, %v33_v1  ;;  %v301_v7 = vld [vmem:[%s420_s1 + $0x64] ss:$16 sps:$4 sm:$0xff]   ;;  %296 = vset.pattern.permute.xlu0 %v333_v2  ;;  %v303_v8 = vld [vmem:[%s420_s1 + $0x6c] ss:$16 sps:$4 sm:$0xff]   ;;  %v305_v11 = vld [vmem:[%s420_s1 + $0x60] ss:$16 sps:$4 sm:$0xff]  }
   0x3   :  { %v306_v12 = vld [vmem:[%s420_s1 + $0x68] ss:$16 sps:$4 sm:$0xff]   ;;  %v307_v13 = vld [vmem:[%s420_s1 + $0x44] ss:$16 sps:$4 sm:$0xff]   ;;  %v309_v14 = vld [vmem:[%s420_s1 + $0x4c] ss:$16 sps:$4 sm:$0xff]  }
   0x4   :  { %287 = vmatprep.subr.msk.bf16.mxu0 %vm134_vm0, %v284_v3  ;;  %289 = vmatprep.subr.msk.bf16.mxu1 %vm134_vm0, %v286_v4  ;;  %v136_v9 = vsel %vm134_vm0, %v283_v5, 0  ;;  %v142_v10 = vsel %vm134_vm0, %v285_v6, 0  ;;  %v311_v15 = vld [vmem:[%s420_s1 + $0x40] ss:$16 sps:$4 sm:$0xff]   ;;  %v312_v16 = vld [vmem:[%s420_s1 + $0x48] ss:$16 sps:$4 sm:$0xff]  }
   0x5   :  { %154 = vmatpush1.bf16.msra.mxu0 %v136_v9  ;;  %195 = vmatpush1.bf16.msra.mxu1 %v142_v10  ;;  %v313_v17 = vld [vmem:[%s420_s1 + $0x24] ss:$16 sps:$4 sm:$0xff]   ;;  %v315_v18 = vld [vmem:[%s420_s1 + $0x2c] ss:$16 sps:$4 sm:$0xff]   ;;  %v34_v19 = vld [vmem:[%s421_s2] sm:$0xf] }
   0x6   :  { %155 = vmatprep.subr.bf16.mxu0 %v301_v7  ;;  %196 = vmatprep.subr.bf16.mxu1 %v303_v8  ;;  %v317_v20 = vld [vmem:[%s420_s1 + $0x20] ss:$16 sps:$4 sm:$0xff]   ;;  %v318_v21 = vld [vmem:[%s420_s1 + $0x28] ss:$16 sps:$4 sm:$0xff]   ;;  %v319_v22 = vld [vmem:[%s420_s1 + $0x4] ss:$16 sps:$4 sm:$0xff]  }
   0x7   :  { %v321_v23 = vld [vmem:[%s420_s1 + $0xc] ss:$16 sps:$4 sm:$0xff]   ;;  %37 = vperm.xlu0 %296, %v34_v19   ;;  %v323_v24 = vld [vmem:[%s420_s1] ss:$16 sps:$4 sm:$0xff]   ;;  %v324_v25 = vld [vmem:[%s420_s1 + $0x8] ss:$16 sps:$4 sm:$0xff]  }
   0x8   :  { %v15_v26 = vld [vmem:[%s422_s0] sm:$0x3] }
   0x9   :  { %156 = vmatpush1.bf16.msra.mxu0 %v305_v11  ;;  %197 = vmatpush1.bf16.msra.mxu1 %v306_v12 }
   0xa   :  { %157 = vmatprep.subr.bf16.mxu0 %v307_v13  ;;  %198 = vmatprep.subr.bf16.mxu1 %v309_v14 }
   0xd   :  { %158 = vmatpush1.bf16.msra.mxu0 %v311_v15  ;;  %199 = vmatpush1.bf16.msra.mxu1 %v312_v16 }
   0xe   :  { %159 = vmatprep.subr.bf16.mxu0 %v313_v17  ;;  %200 = vmatprep.subr.bf16.mxu1 %v315_v18 }
  0x11   :  { %160 = vmatpush1.bf16.msra.mxu0 %v317_v20  ;;  %201 = vmatpush1.bf16.msra.mxu1 %v318_v21 }
  0x12   :  { %161 = vmatprep.subr.bf16.mxu0 %v319_v22  ;;  %202 = vmatprep.subr.bf16.mxu1 %v321_v23 }
  0x15   :  { %162 = vmatpush1.bf16.msra.mxu0 %v323_v24  ;;  %203 = vmatpush1.bf16.msra.mxu1 %v324_v25 }
  0x18   :  { %288 = vmatmul.mubr.msk.bf16.vlgmr.msra.gmra.mxu0 %vm130_vm1, %v15_v26  ;;  %290 = vmatmul.mubr.msk.bf16.vlgmr.msra.gmra.mxu1 %vm130_vm1, %v15_v26 }
  0x82   :  { %v38_v27 = vpop.permute.xlu0 %37 }
  0xd8   :  { %v181_v28 = vpop.f32.mrf.mxu0  ;;  %v222_v29 = vpop.f32.mrf.mxu1 }
  0xd9   :  { %v182_v30 = vadd.f32 %v181_v28, %v38_v27  ;;  %v223_v31 = vadd.f32 %v222_v29, %v38_v27 }
  0xda   :  { %v183_v32 = vpop.f32.mrf.mxu0  ;;  %v224_v33 = vpop.f32.mrf.mxu1 }
  0xdb   :  { %v233_v34 = vmin.f32 %v182_v30, 0.0  ;;  %v235_v35 = vmin.f32 %v223_v31, 0.0  ;;  %v184_v36 = vadd.f32 %v183_v32, %v38_v27  ;;  %v225_v37 = vadd.f32 %v224_v33, %v38_v27 }
  0xdc   :  { %v185_v38 = vpop.f32.mrf.mxu0  ;;  %v226_v39 = vpop.f32.mrf.mxu1  ;;  %vm229_vm2 = vcmp.gt.f32.partialorder %v182_v30, 0.0  ;;  %vm231_vm4 = vcmp.gt.f32.partialorder %v223_v31, 0.0 }
  0xdd   :  { %v237_v40 = vmul.f32 1.442695, %v233_v34  ;;  %v241_v41 = vmul.f32 1.442695, %v235_v35  ;;  %v234_v42 = vmin.f32 %v184_v36, 0.0  ;;  %v236_v43 = vmin.f32 %v225_v37, 0.0 }
  0xde   :  { %v186_v44 = vpop.f32.mrf.mxu0  ;;  %v227_v45 = vpop.f32.mrf.mxu1  ;;  %vm230_vm3 = vcmp.gt.f32.partialorder %v184_v36, 0.0  ;;  %vm232_vm5 = vcmp.gt.f32.partialorder %v225_v37, 0.0 }
  0xdf   :  { %325 = vpow2.f32 %v237_v40  ;;  %v239_v46 = vmul.f32 1.442695, %v234_v42  ;;  %v243_v47 = vmul.f32 1.442695, %v236_v43 }
  0xe0   :  { %327 = vpow2.f32 %v241_v41 }
  0xe1   :  { %329 = vpow2.f32 %v239_v46 }
  0xe2   :  { %331 = vpow2.f32 %v243_v47 }
  0xec   :  { %v326_v48 = vpop.eup %325 }
  0xed   :  { %v328_v49 = vpop.eup %327  ;;  %v291_v50 = vadd.f32 -1.0, %v326_v48 }
  0xee   :  { %v330_v51 = vpop.eup %329  ;;  %v293_v52 = vadd.f32 -1.0, %v328_v49 }
  0xef   :  { %v332_v53 = vpop.eup %331  ;;  %v292_v54 = vadd.f32 -1.0, %v330_v51  ;;  %v249_v56 = vsel %vm229_vm2, %v182_v30, %v291_v50 }
  0xf0   :  { %v294_v55 = vadd.f32 -1.0, %v332_v53  ;;  %v251_v58 = vsel %vm231_vm4, %v223_v31, %v293_v52 }
  0xf1   :  { %v250_v57 = vsel %vm230_vm3, %v184_v36, %v292_v54 }
  0xf2   :  { %v257_v59 = vcombine.low %v249_v56, %v250_v57  ;;  %v252_v60 = vsel %vm232_vm5, %v225_v37, %v294_v55 }
  0xf3   :  { %v258_v61 = vcombine.low %v251_v58, %v252_v60 }
  0xf4   :  { %261 = vst [vmem:[%s423_s3] sm:$0xff] %v257_v59 }
  0xf5   :  { %262 = vst [vmem:[%s423_s3 + $0x8] sm:$0xff] %v258_v61 }

// kernel: _device_forward.61
= control target key start
LH: loop header
LB: loop body
LE: loop exit
PB: predicated region body
PF: predicated region fallthrough
CT: control target
= control target key end

     0   :  { %vm86_vm0 = vcmask 1041408   ;;  %v229_v2 = vmov 0   ;;  %vm82_vm1 = vcmask 293888   ;;  %s292_s1 = inlined_call_operand.vmem [shape: bf16[36,512], index: 1, kind: input, shape index: {}]   ;;  %s293_s2 = inlined_call_operand.vmem [shape: f32[3,1], index: 2, kind: input, shape index: {}]   ;;  %s294_s0 = inlined_call_operand.vmem [shape: bf16[3,36], index: 0, kind: input, shape index: {}]   ;;  %s295_s3 = inlined_call_operand.vmem [shape: f32[3,512], index: 3, kind: output, shape index: {}]  }
   0x1   :  { %v24_v0 = vld [vmem:[%s292_s1 + $0x40] sm:$0x33]  ;;  %v25_v1 = vld [vmem:[%s292_s1 + $0x48] sm:$0x33]  ;;  %131 = vmatprep.mubr.bf16.mxu0 %v229_v2  ;;  %172 = vmatprep.mubr.bf16.mxu1 %v229_v2 }
   0x2   :  { %v204_v3 = vcombine.high %v24_v0, %v24_v0  ;;  %v206_v4 = vcombine.high %v25_v1, %v25_v1  ;;  %v203_v5 = vcombine.low %v24_v0, %v24_v0  ;;  %v205_v6 = vcombine.low %v25_v1, %v25_v1  ;;  %v217_v7 = vld [vmem:[%s292_s1 + $0x24] ss:$16 sps:$4 sm:$0xff]   ;;  %212 = vset.pattern.permute.xlu0 %v229_v2  ;;  %v219_v8 = vld [vmem:[%s292_s1 + $0x2c] ss:$16 sps:$4 sm:$0xff]   ;;  %v221_v11 = vld [vmem:[%s292_s1 + $0x20] ss:$16 sps:$4 sm:$0xff]  }
   0x3   :  { %v222_v12 = vld [vmem:[%s292_s1 + $0x28] ss:$16 sps:$4 sm:$0xff]   ;;  %v223_v13 = vld [vmem:[%s292_s1 + $0x4] ss:$16 sps:$4 sm:$0xff]   ;;  %v225_v14 = vld [vmem:[%s292_s1 + $0xc] ss:$16 sps:$4 sm:$0xff]  }
   0x4   :  { %207 = vmatprep.subr.msk.bf16.mxu0 %vm86_vm0, %v204_v3  ;;  %209 = vmatprep.subr.msk.bf16.mxu1 %vm86_vm0, %v206_v4  ;;  %v88_v9 = vsel %vm86_vm0, %v203_v5, 0  ;;  %v94_v10 = vsel %vm86_vm0, %v205_v6, 0  ;;  %v26_v15 = vld [vmem:[%s293_s2] sm:$0x7]  ;;  %v228_v17 = vld [vmem:[%s292_s1 + $0x8] ss:$16 sps:$4 sm:$0xff]  }
   0x5   :  { %110 = vmatpush1.bf16.msra.mxu0 %v88_v9  ;;  %151 = vmatpush1.bf16.msra.mxu1 %v94_v10  ;;  %v227_v16 = vld [vmem:[%s292_s1] ss:$16 sps:$4 sm:$0xff]  }
   0x6   :  { %111 = vmatprep.subr.bf16.mxu0 %v217_v7  ;;  %152 = vmatprep.subr.bf16.mxu1 %v219_v8  ;;  %v15_v18 = vld [vmem:[%s294_s0] sm:$0x3] }
   0x7   :  { %29 = vperm.xlu0 %212, %v26_v15  }
   0x9   :  { %112 = vmatpush1.bf16.msra.mxu0 %v221_v11  ;;  %153 = vmatpush1.bf16.msra.mxu1 %v222_v12 }
   0xa   :  { %113 = vmatprep.subr.bf16.mxu0 %v223_v13  ;;  %154 = vmatprep.subr.bf16.mxu1 %v225_v14 }
   0xd   :  { %114 = vmatpush1.bf16.msra.mxu0 %v227_v16  ;;  %155 = vmatpush1.bf16.msra.mxu1 %v228_v17 }
  0x10   :  { %208 = vmatmul.mubr.msk.bf16.vlgmr.msra.gmra.mxu0 %vm82_vm1, %v15_v18  ;;  %210 = vmatmul.mubr.msk.bf16.vlgmr.msra.gmra.mxu1 %vm82_vm1, %v15_v18 }
  0x82   :  { %v30_v19 = vpop.permute.xlu0 %29 }
  0xd0   :  { %v133_v20 = vpop.f32.mrf.mxu0  ;;  %v174_v21 = vpop.f32.mrf.mxu1 }
  0xd1   :  { %v134_v24 = vadd.f32 %v133_v20, %v30_v19  ;;  %v175_v25 = vadd.f32 %v174_v21, %v30_v19 }
  0xd2   :  { %v135_v22 = vpop.f32.mrf.mxu0  ;;  %v176_v23 = vpop.f32.mrf.mxu1 }
  0xd3   :  { %v136_v26 = vadd.f32 %v135_v22, %v30_v19  ;;  %v177_v27 = vadd.f32 %v176_v23, %v30_v19 }
  0xd4   :  { %v137_v28 = vpop.f32.mrf.mxu0  ;;  %v178_v29 = vpop.f32.mrf.mxu1 }
  0xd5   :  { %v185_v30 = vcombine.low %v134_v24, %v136_v26  ;;  %v186_v31 = vcombine.low %v175_v25, %v177_v27 }
  0xd6   :  { %v138_v32 = vpop.f32.mrf.mxu0  ;;  %v179_v33 = vpop.f32.mrf.mxu1 }
  0xd7   :  { %189 = vst [vmem:[%s295_s3] sm:$0x77] %v185_v30  ;;  %190 = vst [vmem:[%s295_s3 + $0x8] sm:$0x77] %v186_v31 }

// kernel: _device_forward.73
= control target key start
LH: loop header
LB: loop body
LE: loop exit
PB: predicated region body
PF: predicated region fallthrough
CT: control target
= control target key end

     0   :  { %vm62_vm0 = vcmask 1043456   ;;  %v155_v0 = vmov 0.0   ;;  %vm156_vm1 = vmmov 0   ;;  %v157_v3 = vmov 0   ;;  %s202_s1 = inlined_call_operand.vmem [shape: bf16[72,128], index: 1, kind: input, shape index: {}]   ;;  %s203_s2 = inlined_call_operand.vmem [shape: f32[8,1], index: 2, kind: input, shape index: {}]   ;;  %s204_s0 = inlined_call_operand.vmem [shape: bf16[8,72], index: 0, kind: input, shape index: {}]   ;;  %s205_s3 = inlined_call_operand.vmem [shape: f32[8,128], index: 3, kind: output, shape index: {}]  }
   0x1   :  { %130 = vmatprep.subr.bf16.mxu0 %v155_v0  ;;  %v148_v1 = vld [vmem:[%s202_s1 + $0x20] ss:$0 sps:$4 sm:$0xff]   ;;  %140 = vmatprep.mubr.msk.bf16.mxu0 %vm156_vm1, %v155_v0  ;;  %v149_v4 = vld [vmem:[%s202_s1 + $0x18] sm:$0xff]   ;;  %v150_v6 = vld [vmem:[%s202_s1 + $0x10] sm:$0xff]   ;;  %vm58_vm2 = vcmask 588800  }
   0x2   :  { %v64_v2 = vsel %vm62_vm0, %v148_v1, 0  ;;  %147 = vset.pattern.permute.xlu0 %v157_v3  ;;  %v25_v5 = vld [vmem:[%s203_s2] sm:$0xff]  ;;  %v151_v7 = vld [vmem:[%s202_s1 + $0x8] sm:$0xff]  }
   0x3   :  { %131 = vmatpush3.bf16.msra.mxu0 %v64_v2  ;;  %28 = vperm.xlu0 %147, %v25_v5   ;;  %v152_v8 = vld [vmem:[%s202_s1] sm:$0xff]  }
   0x4   :  { %132 = vmatprep.subr.bf16.mxu0 %v155_v0  ;;  %v15_v9 = vld [vmem:[%s204_s0] sm:$0xf] }
   0x7   :  { %133 = vmatpush3.bf16.msra.mxu0 %v149_v4 }
   0x8   :  { %134 = vmatprep.subr.bf16.mxu0 %v155_v0 }
   0xb   :  { %135 = vmatpush3.bf16.msra.mxu0 %v150_v6 }
   0xc   :  { %136 = vmatprep.subr.bf16.mxu0 %v155_v0 }
   0xf   :  { %137 = vmatpush3.bf16.msra.mxu0 %v151_v7 }
  0x10   :  { %138 = vmatprep.subr.bf16.mxu0 %v155_v0 }
  0x13   :  { %139 = vmatpush3.bf16.msra.mxu0 %v152_v8 }
  0x16   :  { %141 = vmatmul.mubr.msk.bf16.vlgmr.msra.gmra.mxu0 %vm58_vm2, %v15_v9 }
  0x7e   :  { %v29_v10 = vpop.permute.xlu0 %28 }
  0xd6   :  { %v100_v11 = vpop.f32.mrf.mxu0 }
  0xd7   :  { %v101_v12 = vadd.f32 %v100_v11, %v29_v10 }
  0xd8   :  { %v142_v13 = vpop.f32.mrf.mxu0 }
  0xd9   :  { %v107_v14 = vmin.f32 %v101_v12, 0.0  ;;  %vm106_vm3 = vcmp.gt.f32.partialorder %v101_v12, 0.0 }
  0xda   :  { %v103_v15 = vpop.f32.mrf.mxu0 }
  0xdb   :  { %v108_v16 = vmul.f32 1.442695, %v107_v14 }
  0xdc   :  { %v143_v17 = vpop.f32.mrf.mxu0 }
  0xdd   :  { %153 = vpow2.f32 %v108_v16 }
  0xea   :  { %v154_v18 = vpop.eup %153 }
  0xeb   :  { %v123_v19 = vadd.f32 -1.0, %v154_v18 }
  0xed   :  { %v111_v20 = vsel %vm106_vm3, %v101_v12, %v123_v19 }
  0xee   :  { %112 = vst [vmem:[%s205_s3] sm:$0xff] %v111_v20 }

// kernel: _device_forward.77
= control target key start
LH: loop header
LB: loop body
LE: loop exit
PB: predicated region body
PF: predicated region fallthrough
CT: control target
= control target key end

     0   :  { %v433_v1 = vmov 0   ;;  %vm221_vm0 = vcmask 261120   ;;  %s552_s1 = inlined_call_operand.vmem [shape: bf16[288,128], index: 1, kind: input, shape index: {}]   ;;  %s553_s0 = inlined_call_operand.vmem [shape: bf16[32,288], index: 0, kind: input, shape index: {}]   ;;  %s554_s2 = inlined_call_operand.vmem [shape: f32[32,1], index: 2, kind: input, shape index: {}]   ;;  %s555_s3 = inlined_call_operand.vmem [shape: f32[32,128], index: 3, kind: output, shape index: {}]  }
   0x1   :  { %v407_v0 = vld [vmem:[%s552_s1 + $0x78] sm:$0xff]   ;;  %405 = vset.pattern.permute.xlu0 %v433_v1  ;;  %406 = vset.pattern.permute.xlu1 %v433_v1  ;;  %v409_v3 = vld [vmem:[%s552_s1 + $0x70] sm:$0xff]   ;;  %v411_v5 = vld [vmem:[%s552_s1 + $0x68] sm:$0xff]  }
   0x2   :  { %v408_v2 = vld [vmem:[%s552_s1 + $0x38] sm:$0xff]   ;;  %364 = vmatprep.subr.bf16.mxu0 %v407_v0  ;;  %v410_v4 = vld [vmem:[%s552_s1 + $0x30] sm:$0xff]   ;;  %v412_v6 = vld [vmem:[%s552_s1 + $0x28] sm:$0xff]  }
   0x3   :  { %365 = vmatpush3.bf16.msra.mxu0 %v408_v2  ;;  %v413_v7 = vld [vmem:[%s552_s1 + $0x60] sm:$0xff]   ;;  %v415_v9 = vld [vmem:[%s552_s1 + $0x58] sm:$0xff]   ;;  %v422_v11 = vld [vmem:[%s552_s1 + $0x88] sm:$0xff]  }
   0x4   :  { %366 = vmatprep.subr.bf16.mxu0 %v409_v3  ;;  %v414_v8 = vld [vmem:[%s552_s1 + $0x20] sm:$0xff]   ;;  %v416_v10 = vld [vmem:[%s552_s1 + $0x18] sm:$0xff]   ;;  %v417_v12 = vld [vmem:[%s552_s1 + $0x50] sm:$0xff]   ;;  %396 = vmatprep.subr.bf16.mxu1 %v422_v11 }
   0x5   :  { %v418_v13 = vld [vmem:[%s552_s1 + $0x10] sm:$0xff]   ;;  %v419_v14 = vld [vmem:[%s552_s1 + $0x48] sm:$0xff]   ;;  %397 = vmatpush3.bf16.msra.mxu1 %v422_v11  ;;  %v427_v16 = vld [vmem:[%s552_s1 + $0x80] sm:$0xff]  }
   0x6   :  { %v426_v15 = vld [vmem:[%s553_s0 + $0x4] ss:$12 sps:$4 sm:$0xff]   ;;  %v428_v17 = vld [vmem:[%s553_s0 + $0x8] ss:$12 sps:$4 sm:$0xff]   ;;  %398 = vmatprep.subr.bf16.mxu1 %v427_v16  ;;  %v429_v18 = vld [vmem:[%s553_s0 + $0x20] ss:$12 sps:$4 sm:$0xff]  }
   0x7   :  { %367 = vmatpush3.bf16.msra.mxu0 %v410_v4  ;;  %260 = vmatprep.mubr.bf16.mxu0 %v426_v15  ;;  %v59_v19 = vld [vmem:[%s554_s2] sm:$0xff]  ;;  %v420_v20 = vld [vmem:[%s552_s1 + $0x8] sm:$0xff]   ;;  %v61_v21 = vld [vmem:[%s554_s2 + $0x10] sm:$0xff] }
   0x8   :  { %368 = vmatprep.subr.bf16.mxu0 %v411_v5  ;;  %400 = vmatprep.mubr.msk.bf16.mxu1 %vm221_vm0, %v428_v17  ;;  %v421_v22 = vld [vmem:[%s552_s1 + $0x40] sm:$0xff]   ;;  %v60_v23 = vld [vmem:[%s554_s2 + $0x8] sm:$0xff]  ;;  %v62_v24 = vld [vmem:[%s554_s2 + $0x18] sm:$0xff] }
   0x9   :  { %399 = vmatpush3.bf16.msra.mxu1 %v427_v16  ;;  %65 = vperm.xlu0 %405, %v59_v19   ;;  %v423_v25 = vld [vmem:[%s552_s1] sm:$0xff]   ;;  %v430_v27 = vld [vmem:[%s553_s0 + $0x1c] ss:$12 sps:$4 sm:$0xff]  }
   0xa   :  { %75 = vperm.xlu1 %406, %v61_v21   ;;  %v424_v26 = vld [vmem:[%s553_s0] ss:$12 sps:$4 sm:$0xff]   ;;  %v432_v28 = vld [vmem:[%s553_s0 + $0x18] ss:$12 sps:$4 sm:$0xff]  }
   0xb   :  { %369 = vmatpush3.bf16.msra.mxu0 %v412_v6 }
   0xc   :  { %370 = vmatprep.subr.bf16.mxu0 %v413_v7  ;;  %401 = vmatmul.mubr.msk.bf16.vlgmr.msra.gmra.mxu1 %vm221_vm0, %v429_v18 }
   0xd   :  { %70 = vperm.xlu0 %405, %v60_v23  }
   0xe   :  { %80 = vperm.xlu1 %406, %v62_v24  }
   0xf   :  { %371 = vmatpush3.bf16.msra.mxu0 %v414_v8 }
  0x10   :  { %372 = vmatprep.subr.bf16.mxu0 %v415_v9 }
  0x13   :  { %373 = vmatpush3.bf16.msra.mxu0 %v416_v10 }
  0x14   :  { %374 = vmatprep.subr.bf16.mxu0 %v417_v12 }
  0x17   :  { %375 = vmatpush3.bf16.msra.mxu0 %v418_v13 }
  0x18   :  { %376 = vmatprep.subr.bf16.mxu0 %v419_v14 }
  0x1b   :  { %377 = vmatpush3.bf16.msra.mxu0 %v420_v20 }
  0x1c   :  { %378 = vmatprep.subr.bf16.mxu0 %v421_v22 }
  0x1f   :  { %379 = vmatpush3.bf16.msra.mxu0 %v423_v25 }
  0x22   :  { %261 = vmatmul.mubr.bf16.vlgmr.msra.gmra.mxu0 %v424_v26 }
  0x23   :  { %268 = vmatprep.mubr.bf16.mxu0 %v430_v27 }
  0x2a   :  { %269 = vmatmul.mubr.bf16.gmra.mxu0 %v432_v28 }
  0x84   :  { %v66_v30 = vpop.permute.xlu0 %65 }
  0x85   :  { %v76_v46 = vpop.permute.xlu1 %75 }
  0x88   :  { %v71_v39 = vpop.permute.xlu0 %70 }
  0x89   :  { %v81_v56 = vpop.permute.xlu1 %80 }
  0xcc   :  { %v402_v29 = vpop.f32.mrf.mxu1 }
  0xce   :  { %v311_v32 = vpop.f32.mrf.mxu1 }
  0xd0   :  { %v403_v36 = vpop.f32.mrf.mxu1 }
  0xd2   :  { %v314_v43 = vpop.f32.mrf.mxu1 }
  0xe2   :  { %v380_v31 = vpop.f32.mrf.mxu0 }
  0xe4   :  { %v381_v33 = vpop.f32.mrf.mxu0 }
  0xe5   :  { %v382_v34 = vadd.f32 %v381_v33, %v380_v31 }
  0xe6   :  { %v383_v35 = vpop.f32.mrf.mxu0 }
  0xe7   :  { %v263_v37 = vadd.f32 %v382_v34, %v66_v30 }
  0xe8   :  { %v384_v38 = vpop.f32.mrf.mxu0 }
  0xe9   :  { %v385_v40 = vadd.f32 %v384_v38, %v383_v35  ;;  %v312_v41 = vadd.f32 %v311_v32, %v263_v37 }
  0xea   :  { %v386_v42 = vpop.f32.mrf.mxu0 }
  0xeb   :  { %v326_v44 = vmax.f32 %v312_v41, 0.0  ;;  %v266_v45 = vadd.f32 %v385_v40, %v71_v39 }
  0xec   :  { %v387_v47 = vpop.f32.mrf.mxu0 }
  0xed   :  { %330 = vst [vmem:[%s555_s3] sm:$0xff] %v326_v44  ;;  %v388_v48 = vadd.f32 %v387_v47, %v386_v42  ;;  %v315_v49 = vadd.f32 %v314_v43, %v266_v45 }
  0xee   :  { %v389_v50 = vpop.f32.mrf.mxu0 }
  0xef   :  { %v271_v51 = vadd.f32 %v388_v48, %v76_v46  ;;  %v327_v52 = vmax.f32 %v315_v49, 0.0 }
  0xf0   :  { %v390_v53 = vpop.f32.mrf.mxu0 }
  0xf1   :  { %v320_v54 = vadd.f32 %v402_v29, %v271_v51  ;;  %331 = vst [vmem:[%s555_s3 + $0x8] sm:$0xff] %v327_v52  ;;  %v391_v55 = vadd.f32 %v390_v53, %v389_v50 }
  0xf3   :  { %v328_v57 = vmax.f32 %v320_v54, 0.0  ;;  %v274_v58 = vadd.f32 %v391_v55, %v81_v56 }
  0xf5   :  { %332 = vst [vmem:[%s555_s3 + $0x10] sm:$0xff] %v328_v57  ;;  %v323_v59 = vadd.f32 %v403_v36, %v274_v58 }
  0xf7   :  { %v329_v60 = vmax.f32 %v323_v59, 0.0 }
  0xf9   :  { %333 = vst [vmem:[%s555_s3 + $0x18] sm:$0xff] %v329_v60 }

// kernel: _device_forward.78
= control target key start
LH: loop header
LB: loop body
LE: loop exit
PB: predicated region body
PF: predicated region fallthrough
CT: control target
= control target key end

     0   :  { %s684_s9 = smov 0   ;;  %s686_s10 = smov 0   ;;  %s745_s0 = inlined_call_operand.vmem [shape: bf16[2,4,288], index: 0, kind: input, shape index: {}]   ;;  %s746_s1 = inlined_call_operand.vmem [shape: bf16[2,288,128], index: 1, kind: input, shape index: {}]   ;;  %s747_s2 = inlined_call_operand.vmem [shape: f32[2,4,128], index: 2, kind: output, shape index: {}]  }
   0x1   :  { %s688_s11 = smov 0  }
   0x2 LB: > { %s24_s12 = sadd.s32 1, %s660_s10  ;;  %p536_p0 = scmp.ge.s32.totalorder %s664_s11, 1  ;;  %s664_s11 = sphi %s688_s11, %s12_s11   ;;  %s660_s10 = sphi %s686_s10, %s749_s10   ;;  %s656_s9 = sphi %s684_s9, %s748_s9  }
   0x3   : > { %p26_p1 = scmp.ge.s32.totalorder %s24_s12, 2  ;;  %p141_p2 = scmp.lt.s32.totalorder %s664_s11, 3 }
   0x5   : > { %s751_s12 = smov (%p26_p1, %s24_s12), 0  ;;  %p142_p3 = pnand %p536_p0, %p141_p2 }
   0x6   : > { %p173_p4 = scmp.lt.s32.totalorder (!%p142_p3), %s656_s9, 1 }
   0x7   : > { %145 = sbr.rel (%p142_p3) target bundleno = 249 (0xf9), region = 28 }
   0xc   : > { %v666_v0 = vmov 0.0   ;;  %vm667_vm0 = vmmov 0   ;;  %s753_s9 = smov (!%p173_p4, %s656_s9), 1  ;;  %v668_v7 = vmov 1983009808   ;;  %v236_v9 = vlaneseq }
   0xd   : > { %586 = vmatprep.subr.bf16.mxu1 %v666_v0  ;;  %590 = vmatprep.mubr.msk.bf16.mxu1 %vm667_vm0, %v666_v0  ;;  %s595_s13 = smul.u32 144, %s753_s9  ;;  %v234_v8 = vunpack.c.l.s4 %v668_v7  ;;  %vm358_vm1 = vcmask 261120   ;;  %s539_s21 = sshll.u32 %s753_s9, 2 }
   0xe   : > { %s594_s17 = smul.u32 6, %s753_s9  ;;  %v237_v14 = vshrl.u32 %v236_v9, 7  ;;  %s192_s24 = scalar_lea.vmem %s747_s2, %s539_s21 }
   0xf   : > { %s708_s16 = scalar_lea.vmem %s746_s1, %s595_s13  ;;  %v235_v13 = vunpack.c.0.s8 %v234_v8 }
  0x10   : > { %v623_v1 = vld [vmem:[%s708_s16 + $0x78] sm:$0xff]   ;;  %v625_v3 = vld [vmem:[%s708_s16 + $0x70] sm:$0xff]   ;;  %v627_v5 = vld [vmem:[%s708_s16 + $0x68] sm:$0xff]   ;;  %s177_s20 = scalar_lea.vmem %s745_s0, %s594_s17 }
  0x11   : > { %v624_v2 = vld [vmem:[%s708_s16 + $0x38] sm:$0xff]   ;;  %561 = vmatprep.subr.bf16.mxu0 %v623_v1  ;;  %v626_v4 = vld [vmem:[%s708_s16 + $0x30] sm:$0xff]   ;;  %v628_v6 = vld [vmem:[%s708_s16 + $0x28] sm:$0xff]   ;;  %v238_v19 = vsub.s32 %v235_v13, %v237_v14 }
  0x12   : > { %562 = vmatpush3.bf16.msra.mxu0 %v624_v2  ;;  %v629_v10 = vld [vmem:[%s708_s16 + $0x60] sm:$0xff]   ;;  %v634_v12 = vld [vmem:[%s708_s16 + $0x88] sm:$0xff]   ;;  %v631_v15 = vld [vmem:[%s708_s16 + $0x58] sm:$0xff]  }
  0x13   : > { %563 = vmatprep.subr.bf16.mxu0 %v625_v3  ;;  %v630_v11 = vld [vmem:[%s708_s16 + $0x20] sm:$0xff]   ;;  %v632_v16 = vld [vmem:[%s708_s16 + $0x18] sm:$0xff]   ;;  %587 = vmatpush3.bf16.msra.mxu1 %v634_v12  ;;  %v633_v18 = vld [vmem:[%s708_s16 + $0x50] sm:$0xff]  }
  0x14   : > { %588 = vmatprep.subr.bf16.mxu1 %v666_v0  ;;  %v637_v17 = vld [vmem:[%s708_s16 + $0x80] sm:$0xff]   ;;  %v635_v23 = vld [vmem:[%s708_s16 + $0x10] sm:$0xff]   ;;  %v636_v26 = vld [vmem:[%s708_s16 + $0x48] sm:$0xff]  }
  0x15   : > { %v194_v20 = vld [vmem:[%s177_s20] sm:$0x3f]  ;;  %v638_v27 = vld [vmem:[%s708_s16 + $0x8] sm:$0xff]  }
  0x16   : > { %564 = vmatpush3.bf16.msra.mxu0 %v626_v4  ;;  %v232_v21 = vcombine.high %v194_v20, %v194_v20  ;;  %v239_v22 = vrot.slane %v194_v20, %v238_v19  ;;  %v640_v28 = vld [vmem:[%s708_s16 + $0x40] sm:$0xff]  }
  0x17   : > { %565 = vmatprep.subr.bf16.mxu0 %v627_v5  ;;  %589 = vmatpush3.bf16.msra.mxu1 %v637_v17  ;;  %v641_v29 = vld [vmem:[%s708_s16] sm:$0xff]  }
  0x18   : > { %v246_v24 = vrot.slane %v232_v21, %v238_v19  ;;  %v247_v25 = vcombine.high %v239_v22, %v239_v22 }
  0x1a   : > { %566 = vmatpush3.bf16.msra.mxu0 %v628_v6  ;;  %591 = vmatmul.mubr.msk.bf16.vlgmr.msra.gmra.mxu1 %vm358_vm1, %v246_v24 }
  0x1b   : > { %567 = vmatprep.subr.bf16.mxu0 %v629_v10  ;;  %394 = vmatprep.mubr.bf16.mxu0 %v247_v25 }
  0x1e   : > { %568 = vmatpush3.bf16.msra.mxu0 %v630_v11 }
  0x1f   : > { %569 = vmatprep.subr.bf16.mxu0 %v631_v15 }
  0x22   : > { %570 = vmatpush3.bf16.msra.mxu0 %v632_v16 }
  0x23   : > { %571 = vmatprep.subr.bf16.mxu0 %v633_v18 }
  0x26   : > { %572 = vmatpush3.bf16.msra.mxu0 %v635_v23 }
  0x27   : > { %573 = vmatprep.subr.bf16.mxu0 %v636_v26 }
  0x2a   : > { %574 = vmatpush3.bf16.msra.mxu0 %v638_v27 }
  0x2b   : > { %575 = vmatprep.subr.bf16.mxu0 %v640_v28 }
  0x2e   : > { %576 = vmatpush3.bf16.msra.mxu0 %v641_v29 }
  0x31   : > { %395 = vmatmul.mubr.bf16.vlgmr.msra.gmra.mxu0 %v239_v22 }
  0xda   : > { %v436_v30 = vpop.f32.mrf.mxu1 }
  0xdc   : > { %v592_v31 = vpop.f32.mrf.mxu1 }
  0xde   : > { %v439_v32 = vpop.f32.mrf.mxu1 }
  0xe0   : > { %v593_v33 = vpop.f32.mrf.mxu1 }
  0xf1   : > { %v577_v34 = vpop.f32.mrf.mxu0 }
  0xf3   : > { %v578_v35 = vpop.f32.mrf.mxu0 }
  0xf4   : > { %v579_v36 = vadd.f32 %v578_v35, %v577_v34 }
  0xf5   : > { %v580_v37 = vpop.f32.mrf.mxu0 }
  0xf6   : > { %v437_v38 = vadd.f32 %v579_v36, %v436_v30 }
  0xf7   : > { %v581_v39 = vpop.f32.mrf.mxu0 }
  0xf8   : > { %442 = vst [vmem:[%s192_s24] sm:$0xf] %v437_v38 }
  0xf9 PF: > { %s12_s11 = sadd.s32 1, %s664_s11   ;;  %s748_s9 = smov %s660_s10 }
  0xfa   : > { %p9_p5 = scmp.ge.s32.totalorder %s12_s11, 4   ;;  %s749_s10 = smov %s751_s12 }
  0xfc   :  { %11 = sbr.rel (!%p9_p5) target bundleno = 2 (0x2), region = 61 }

// kernel: _device_forward.79
= control target key start
LH: loop header
LB: loop body
LE: loop exit
PB: predicated region body
PF: predicated region fallthrough
CT: control target
= control target key end

     0   :  { %s354_s9 = smov 0   ;;  %s356_s10 = smov 0   ;;  %s393_s0 = inlined_call_operand.vmem [shape: f32[2,4,128], index: 0, kind: input, shape index: {}]   ;;  %s394_s1 = inlined_call_operand.vmem [shape: f32[4,1], index: 1, kind: input, shape index: {}]   ;;  %s395_s2 = inlined_call_operand.vmem [shape: f32[2,4,128], index: 2, kind: output, shape index: {}]  }
   0x1   :  { %s358_s11 = smov 0  }
   0x2 LB: > { %s24_s12 = sadd.s32 1, %s332_s10  ;;  %p279_p0 = scmp.ge.s32.totalorder %s336_s11, 1  ;;  %s336_s11 = sphi %s358_s11, %s12_s11   ;;  %s332_s10 = sphi %s356_s10, %s397_s10   ;;  %s328_s9 = sphi %s354_s9, %s396_s9  }
   0x3   : > { %p26_p1 = scmp.ge.s32.totalorder %s24_s12, 2  ;;  %p130_p2 = scmp.lt.s32.totalorder %s336_s11, 3 }
   0x5   : > { %s399_s12 = smov (%p26_p1, %s24_s12), 0  ;;  %p131_p3 = pnand %p279_p0, %p130_p2 }
   0x6   : > { %p156_p4 = scmp.lt.s32.totalorder (!%p131_p3), %s328_s9, 1 }
   0x7   : > { %134 = sbr.rel (%p131_p3) target bundleno = 205 (0xcd), region = 28 }
   0xc   : > { %v170_v0 = vld [vmem:[%s394_s1] sm:$0xf]  ;;  %v338_v1 = vmov 0   ;;  %s401_s9 = smov (!%p156_p4, %s328_s9), 1  ;;  %vm179_vm0 = vcmask 1043456  }
   0xd   : > { %309 = vset.pattern.permute.xlu0 %v338_v1  ;;  %s280_s15 = sshll.u32 %s401_s9, 2 }
   0xe   : > { %174 = vperm.xlu0 %309, %v170_v0   ;;  %s162_s18 = scalar_lea.vmem %s393_s0, %s280_s15  ;;  %s169_s21 = scalar_lea.vmem %s395_s2, %s280_s15 }
   0xf   : > { %v171_v2 = vld [vmem:[%s162_s18] sm:$0xf] }
  0x89   : > { %v175_v3 = vpop.permute.xlu0 %174 }
  0x8a   : > { %v177_v4 = vmul.f32 %v175_v3, %v171_v2 }
  0x8c   : > { %v178_v5 = vmul.f32 10.0, %v177_v4 }
  0x8e   : > { %v180_v6 = vsel %vm179_vm0, %v178_v5, -inf }
  0x8f   : > { %v181_v7 = vrot.slane %v180_v6, 4 }
  0x91   : > { %v182_v8 = vmax.f32 %v180_v6, %v181_v7 }
  0x93   : > { %v183_v9 = vrot.slane %v182_v8, 2 }
  0x95   : > { %v184_v10 = vmax.f32 %v182_v8, %v183_v9 }
  0x97   : > { %v185_v11 = vrot.slane %v184_v10, 1 }
  0x99   : > { %v186_v12 = vmax.f32 %v184_v10, %v185_v11 }
  0x9b   : > { %v187_v13 = vsub.f32 %v178_v5, %v186_v12 }
  0x9d   : > { %v188_v14 = vmul.f32 1.442695, %v187_v13 }
  0x9f   : > { %310 = vpow2.f32 %v188_v14 }
  0xac   : > { %v311_v15 = vpop.eup %310 }
  0xad   : > { %v190_v16 = vsel %vm179_vm0, %v311_v15, 0.0 }
  0xae   : > { %v191_v17 = vrot.slane %v190_v16, 4 }
  0xb0   : > { %v192_v18 = vadd.f32 %v191_v17, %v190_v16 }
  0xb2   : > { %v193_v19 = vrot.slane %v192_v18, 2 }
  0xb4   : > { %v194_v20 = vadd.f32 %v193_v19, %v192_v18 }
  0xb6   : > { %v195_v21 = vrot.slane %v194_v20, 1 }
  0xb8   : > { %v196_v22 = vadd.f32 %v195_v21, %v194_v20 }
  0xba   : > { %312 = vrcp.f32 %v196_v22 }
  0xc7   : > { %v313_v23 = vpop.eup %312 }
  0xc8   : > { %v198_v24 = vmul.f32 %v313_v23, %v311_v15 }
  0xca   : > { %v199_v25 = vmul.f32 %v198_v24, %v175_v3 }
  0xcc   : > { %200 = vst [vmem:[%s169_s21] sm:$0xf] %v199_v25 }
  0xcd PF: > { %s12_s11 = sadd.s32 1, %s336_s11   ;;  %s396_s9 = smov %s332_s10 }
  0xce   : > { %p9_p5 = scmp.ge.s32.totalorder %s12_s11, 4   ;;  %s397_s10 = smov %s399_s12 }
  0xd0   :  { %11 = sbr.rel (!%p9_p5) target bundleno = 2 (0x2), region = 58 }

// kernel: _device_forward.80
= control target key start
LH: loop header
LB: loop body
LE: loop exit
PB: predicated region body
PF: predicated region fallthrough
CT: control target
= control target key end

     0   :  { %s508_s9 = smov 0   ;;  %s510_s10 = smov 0   ;;  %s544_s0 = inlined_call_operand.vmem [shape: bf16[2,32,64], index: 0, kind: input, shape index: {}]   ;;  %s545_s1 = inlined_call_operand.vmem [shape: bf16[2,64,128], index: 1, kind: input, shape index: {}]   ;;  %s546_s2 = inlined_call_operand.vmem [shape: f32[2,32,128], index: 2, kind: output, shape index: {}]  }
   0x1   :  { %s512_s11 = smov 0  }
   0x2 LB: > { %s24_s12 = sadd.s32 1, %s487_s10  ;;  %p401_p0 = scmp.ge.s32.totalorder %s491_s11, 1  ;;  %s491_s11 = sphi %s512_s11, %s12_s11   ;;  %s487_s10 = sphi %s510_s10, %s548_s10   ;;  %s483_s9 = sphi %s508_s9, %s547_s9  }
   0x3   : > { %p26_p1 = scmp.ge.s32.totalorder %s24_s12, 2  ;;  %p141_p2 = scmp.lt.s32.totalorder %s491_s11, 3 }
   0x5   : > { %s550_s12 = smov (%p26_p1, %s24_s12), 0  ;;  %p142_p3 = pnand %p401_p0, %p141_p2 }
   0x6   : > { %p174_p4 = scmp.lt.s32.totalorder (!%p142_p3), %s483_s9, 1 }
   0x7   : > { %145 = sbr.rel (%p142_p3) target bundleno = 232 (0xe8), region = 28 }
   0xc   : > { %s552_s9 = smov (!%p174_p4, %s483_s9), 1  ;;  %vm242_vm0 = vcmask 523264  }
   0xd   : > { %s419_s13 = sshll.u32 %s552_s9, 5  ;;  %s418_s14 = sshll.u32 %s552_s9, 4 }
   0xe   : > { %s186_s17 = scalar_lea.vmem %s545_s1, %s419_s13  ;;  %s178_s20 = scalar_lea.vmem %s544_s0, %s418_s14 }
   0xf   : > { %v463_v0 = vld [vmem:[%s186_s17 + $0x18] sm:$0xff]   ;;  %v464_v1 = vld [vmem:[%s186_s17 + $0x10] sm:$0xff]   ;;  %v465_v2 = vld [vmem:[%s186_s17 + $0x8] sm:$0xff]   ;;  %s194_s23 = scalar_lea.vmem %s546_s2, %s419_s13 }
  0x10   : > { %427 = vmatprep.subr.bf16.mxu0 %v463_v0  ;;  %v467_v3 = vld [vmem:[%s178_s20] sm:$0xff]   ;;  %v468_v5 = vld [vmem:[%s178_s20 + $0x8] sm:$0xff]  }
  0x11   : > { %428 = vmatpush3.bf16.msra.mxu0 %v463_v0  ;;  %435 = vmatprep.mubr.msk.bf16.mxu0 %vm242_vm0, %v467_v3  ;;  %v466_v4 = vld [vmem:[%s186_s17] sm:$0xff]  }
  0x12   : > { %429 = vmatprep.subr.bf16.mxu0 %v464_v1 }
  0x15   : > { %430 = vmatpush3.bf16.msra.mxu0 %v464_v1 }
  0x16   : > { %431 = vmatprep.subr.bf16.mxu0 %v465_v2 }
  0x19   : > { %432 = vmatpush3.bf16.msra.mxu0 %v465_v2 }
  0x1a   : > { %433 = vmatprep.subr.bf16.mxu0 %v466_v4 }
  0x1d   : > { %434 = vmatpush3.bf16.msra.mxu0 %v466_v4 }
  0x20   : > { %436 = vmatmul.mubr.msk.bf16.vlgmr.msra.gmra.mxu0 %vm242_vm0, %v468_v5 }
  0xe0   : > { %v437_v6 = vpop.f32.mrf.mxu0 }
  0xe1   : > { %300 = vst [vmem:[%s194_s23 + $0x10] sm:$0xff] %v437_v6 }
  0xe2   : > { %v283_v7 = vpop.f32.mrf.mxu0 }
  0xe3   : > { %298 = vst [vmem:[%s194_s23] sm:$0xff] %v283_v7 }
  0xe4   : > { %v438_v8 = vpop.f32.mrf.mxu0 }
  0xe5   : > { %301 = vst [vmem:[%s194_s23 + $0x18] sm:$0xff] %v438_v8 }
  0xe6   : > { %v286_v9 = vpop.f32.mrf.mxu0 }
  0xe7   : > { %299 = vst [vmem:[%s194_s23 + $0x8] sm:$0xff] %v286_v9 }
  0xe8 PF: > { %s12_s11 = sadd.s32 1, %s491_s11   ;;  %s547_s9 = smov %s487_s10 }
  0xe9   : > { %p9_p5 = scmp.ge.s32.totalorder %s12_s11, 4   ;;  %s548_s10 = smov %s550_s12 }
  0xeb   :  { %11 = sbr.rel (!%p9_p5) target bundleno = 2 (0x2), region = 61 }

// kernel: _device_forward.83
= control target key start
LH: loop header
LB: loop body
LE: loop exit
PB: predicated region body
PF: predicated region fallthrough
CT: control target
= control target key end

     0   :  { %v762_v1 = vmov 0   ;;  %vm389_vm0 = vcmask 523264   ;;  %s947_s1 = inlined_call_operand.vmem [shape: bf16[576,128], index: 1, kind: input, shape index: {}]   ;;  %s948_s0 = inlined_call_operand.vmem [shape: bf16[32,576], index: 0, kind: input, shape index: {}]   ;;  %s949_s2 = inlined_call_operand.vmem [shape: f32[32,1], index: 2, kind: input, shape index: {}]   ;;  %s950_s3 = inlined_call_operand.vmem [shape: f32[32,128], index: 3, kind: output, shape index: {}]  }
   0x1   :  { %v704_v0 = vld [vmem:[%s947_s1 + $0x78] sm:$0xff]   ;;  %702 = vset.pattern.permute.xlu0 %v762_v1  ;;  %703 = vset.pattern.permute.xlu1 %v762_v1  ;;  %v708_v5 = vld [vmem:[%s947_s1 + $0x70] sm:$0xff]   ;;  %v712_v9 = vld [vmem:[%s947_s1 + $0x68] sm:$0xff]  }
   0x2   :  { %v705_v2 = vld [vmem:[%s947_s1 + $0xf8] sm:$0xff]   ;;  %627 = vmatprep.subr.bf16.mxu0 %v704_v0  ;;  %v709_v6 = vld [vmem:[%s947_s1 + $0xf0] sm:$0xff]   ;;  %v713_v10 = vld [vmem:[%s947_s1 + $0xe8] sm:$0xff]  }
   0x3   :  { %v706_v3 = vld [vmem:[%s947_s1 + $0x38] sm:$0xff]   ;;  %655 = vmatprep.subr.bf16.mxu1 %v705_v2  ;;  %v710_v7 = vld [vmem:[%s947_s1 + $0x30] sm:$0xff]   ;;  %v714_v11 = vld [vmem:[%s947_s1 + $0x28] sm:$0xff]  }
   0x4   :  { %v707_v4 = vld [vmem:[%s947_s1 + $0xb8] sm:$0xff]   ;;  %628 = vmatpush3.bf16.msra.mxu0 %v706_v3  ;;  %v711_v8 = vld [vmem:[%s947_s1 + $0xb0] sm:$0xff]   ;;  %v715_v12 = vld [vmem:[%s947_s1 + $0xa8] sm:$0xff]  }
   0x5   :  { %656 = vmatpush3.bf16.msra.mxu1 %v707_v4  ;;  %629 = vmatprep.subr.bf16.mxu0 %v708_v5  ;;  %v716_v13 = vld [vmem:[%s947_s1 + $0x60] sm:$0xff]   ;;  %v720_v17 = vld [vmem:[%s947_s1 + $0x58] sm:$0xff]   ;;  %v724_v21 = vld [vmem:[%s947_s1 + $0x50] sm:$0xff]  }
   0x6   :  { %657 = vmatprep.subr.bf16.mxu1 %v709_v6  ;;  %v717_v14 = vld [vmem:[%s947_s1 + $0xe0] sm:$0xff]   ;;  %v721_v18 = vld [vmem:[%s947_s1 + $0xd8] sm:$0xff]   ;;  %v725_v22 = vld [vmem:[%s947_s1 + $0xd0] sm:$0xff]  }
   0x7   :  { %v718_v15 = vld [vmem:[%s947_s1 + $0x20] sm:$0xff]   ;;  %v722_v19 = vld [vmem:[%s947_s1 + $0x18] sm:$0xff]   ;;  %v726_v23 = vld [vmem:[%s947_s1 + $0x10] sm:$0xff]  }
   0x8   :  { %630 = vmatpush3.bf16.msra.mxu0 %v710_v7  ;;  %v719_v16 = vld [vmem:[%s947_s1 + $0xa0] sm:$0xff]   ;;  %v723_v20 = vld [vmem:[%s947_s1 + $0x98] sm:$0xff]   ;;  %v727_v24 = vld [vmem:[%s947_s1 + $0x90] sm:$0xff]  }
   0x9   :  { %658 = vmatpush3.bf16.msra.mxu1 %v711_v8  ;;  %631 = vmatprep.subr.bf16.mxu0 %v712_v9  ;;  %v728_v25 = vld [vmem:[%s947_s1 + $0x48] sm:$0xff]   ;;  %v732_v29 = vld [vmem:[%s947_s1 + $0x40] sm:$0xff]   ;;  %v742_v37 = vld [vmem:[%s947_s1 + $0x118] sm:$0xff]  }
   0xa   :  { %659 = vmatprep.subr.bf16.mxu1 %v713_v10  ;;  %v729_v26 = vld [vmem:[%s947_s1 + $0xc8] sm:$0xff]   ;;  %v733_v30 = vld [vmem:[%s947_s1 + $0xc0] sm:$0xff]   ;;  %v743_v38 = vld [vmem:[%s947_s1 + $0x110] sm:$0xff]  }
   0xb   :  { %v730_v27 = vld [vmem:[%s947_s1 + $0x8] sm:$0xff]   ;;  %v734_v31 = vld [vmem:[%s947_s1] sm:$0xff]   ;;  %v101_v47 = vld [vmem:[%s949_s2 + $0x10] sm:$0xff] }
   0xc   :  { %632 = vmatpush3.bf16.msra.mxu0 %v714_v11  ;;  %v731_v28 = vld [vmem:[%s947_s1 + $0x88] sm:$0xff]   ;;  %v735_v32 = vld [vmem:[%s947_s1 + $0x80] sm:$0xff]   ;;  %115 = vperm.xlu1 %703, %v101_v47   ;;  %v102_v49 = vld [vmem:[%s949_s2 + $0x18] sm:$0xff] }
   0xd   :  { %660 = vmatpush3.bf16.msra.mxu1 %v715_v12  ;;  %633 = vmatprep.subr.bf16.mxu0 %v716_v13  ;;  %v736_v33 = vld [vmem:[%s948_s0] ss:$20 sps:$4 sm:$0xff]   ;;  %v738_v34 = vld [vmem:[%s948_s0 + $0x4] ss:$20 sps:$4 sm:$0xff]   ;;  %v739_v35 = vld [vmem:[%s948_s0 + $0x8] ss:$20 sps:$4 sm:$0xff]  }
   0xe   :  { %661 = vmatprep.subr.bf16.mxu1 %v717_v14  ;;  %v741_v36 = vld [vmem:[%s948_s0 + $0xc] ss:$20 sps:$4 sm:$0xff]   ;;  %428 = vmatprep.mubr.bf16.mxu0 %v738_v34  ;;  %v746_v40 = vld [vmem:[%s948_s0 + $0x34] ss:$20 sps:$4 sm:$0xff]   ;;  %v749_v43 = vld [vmem:[%s948_s0 + $0x30] ss:$20 sps:$4 sm:$0xff]  }
   0xf   :  { %477 = vmatprep.mubr.bf16.mxu1 %v741_v36  ;;  %v744_v39 = vld [vmem:[%s948_s0 + $0x2c] ss:$20 sps:$4 sm:$0xff]   ;;  %v748_v41 = vld [vmem:[%s948_s0 + $0x28] ss:$20 sps:$4 sm:$0xff]   ;;  %v752_v44 = vld [vmem:[%s948_s0 + $0x10] ss:$20 sps:$4 sm:$0xff]  }
  0x10   :  { %634 = vmatpush3.bf16.msra.mxu0 %v718_v15  ;;  %v750_v42 = vld [vmem:[%s947_s1 + $0x108] sm:$0xff]   ;;  %v751_v45 = vld [vmem:[%s947_s1 + $0x100] sm:$0xff]   ;;  %120 = vperm.xlu1 %703, %v102_v49  }
  0x11   :  { %662 = vmatpush3.bf16.msra.mxu1 %v719_v16  ;;  %635 = vmatprep.subr.bf16.mxu0 %v720_v17  ;;  %v99_v46 = vld [vmem:[%s949_s2] sm:$0xff]  ;;  %v100_v48 = vld [vmem:[%s949_s2 + $0x8] sm:$0xff] }
  0x12   :  { %663 = vmatprep.subr.bf16.mxu1 %v721_v18  ;;  %105 = vperm.xlu0 %702, %v99_v46   ;;  %v753_v50 = vld [vmem:[%s948_s0 + $0x38] ss:$20 sps:$4 sm:$0xff]  }
  0x14   :  { %636 = vmatpush3.bf16.msra.mxu0 %v722_v19 }
  0x15   :  { %664 = vmatpush3.bf16.msra.mxu1 %v723_v20  ;;  %637 = vmatprep.subr.bf16.mxu0 %v724_v21 }
  0x16   :  { %665 = vmatprep.subr.bf16.mxu1 %v725_v22  ;;  %110 = vperm.xlu0 %702, %v100_v48  }
  0x18   :  { %638 = vmatpush3.bf16.msra.mxu0 %v726_v23 }
  0x19   :  { %666 = vmatpush3.bf16.msra.mxu1 %v727_v24  ;;  %639 = vmatprep.subr.bf16.mxu0 %v728_v25 }
  0x1a   :  { %667 = vmatprep.subr.bf16.mxu1 %v729_v26 }
  0x1c   :  { %640 = vmatpush3.bf16.msra.mxu0 %v730_v27 }
  0x1d   :  { %668 = vmatpush3.bf16.msra.mxu1 %v731_v28  ;;  %641 = vmatprep.subr.bf16.mxu0 %v732_v29 }
  0x1e   :  { %669 = vmatprep.subr.bf16.mxu1 %v733_v30 }
  0x20   :  { %642 = vmatpush3.bf16.msra.mxu0 %v734_v31 }
  0x21   :  { %670 = vmatpush3.bf16.msra.mxu1 %v735_v32  ;;  %689 = vmatprep.subr.bf16.mxu0 %v742_v37 }
  0x23   :  { %429 = vmatmul.mubr.bf16.vlgmr.msra.gmra.mxu0 %v736_v33 }
  0x24   :  { %478 = vmatmul.mubr.bf16.vlgmr.msra.gmra.mxu1 %v739_v35  ;;  %690 = vmatpush3.bf16.msra.mxu0 %v742_v37 }
  0x25   :  { %691 = vmatprep.subr.bf16.mxu0 %v743_v38  ;;  %436 = vmatprep.mubr.bf16.mxu0 %v744_v39 }
  0x26   :  { %485 = vmatprep.mubr.bf16.mxu1 %v746_v40 }
  0x28   :  { %692 = vmatpush3.bf16.msra.mxu0 %v743_v38 }
  0x29   :  { %693 = vmatprep.subr.bf16.mxu0 %v750_v42 }
  0x2b   :  { %437 = vmatmul.mubr.bf16.gmra.mxu0 %v748_v41 }
  0x2c   :  { %486 = vmatmul.mubr.bf16.gmra.mxu1 %v749_v43  ;;  %697 = vmatprep.mubr.msk.bf16.mxu0 %vm389_vm0, %v752_v44 }
  0x2d   :  { %694 = vmatpush3.bf16.msra.mxu0 %v750_v42 }
  0x2e   :  { %695 = vmatprep.subr.bf16.mxu0 %v751_v45 }
  0x31   :  { %696 = vmatpush3.bf16.msra.mxu0 %v751_v45 }
  0x34   :  { %698 = vmatmul.mubr.msk.bf16.vlgmr.msra.gmra.mxu0 %vm389_vm0, %v753_v50 }
  0x87   :  { %v116_v0 = vpop.permute.xlu1 %115 }
  0x8b   :  { %v121_v15 = vpop.permute.xlu1 %120 }
  0x8d   :  { %v106_v60 = vpop.permute.xlu0 %105 }
  0x91   :  { %v111_v14 = vpop.permute.xlu0 %110 }
  0xe3   :  { %v643_v51 = vpop.f32.mrf.mxu0 }
  0xe4   :  { %v671_v52 = vpop.f32.mrf.mxu1 }
  0xe5   :  { %v644_v53 = vpop.f32.mrf.mxu0 }
  0xe6   :  { %v672_v54 = vpop.f32.mrf.mxu1  ;;  %v645_v62 = vadd.f32 %v644_v53, %v643_v51 }
  0xe7   :  { %v646_v55 = vpop.f32.mrf.mxu0  ;;  %v673_v7 = vadd.f32 %v672_v54, %v671_v52 }
  0xe8   :  { %v674_v56 = vpop.f32.mrf.mxu1  ;;  %v431_v8 = vadd.f32 %v645_v62, %v106_v60 }
  0xe9   :  { %v647_v57 = vpop.f32.mrf.mxu0 }
  0xea   :  { %v675_v58 = vpop.f32.mrf.mxu1  ;;  %v648_v10 = vadd.f32 %v647_v57, %v646_v55  ;;  %v480_v20 = vadd.f32 %v673_v7, %v431_v8 }
  0xeb   :  { %v649_v59 = vpop.f32.mrf.mxu0  ;;  %v676_v26 = vadd.f32 %v675_v58, %v674_v56 }
  0xec   :  { %v677_v61 = vpop.f32.mrf.mxu1  ;;  %v434_v21 = vadd.f32 %v648_v10, %v111_v14 }
  0xed   :  { %v650_v63 = vpop.f32.mrf.mxu0 }
  0xee   :  { %v651_v1 = vadd.f32 %v650_v63, %v649_v59  ;;  %v678_v2 = vpop.f32.mrf.mxu1  ;;  %v483_v31 = vadd.f32 %v676_v26, %v434_v21 }
  0xef   :  { %v679_v3 = vadd.f32 %v678_v2, %v677_v61  ;;  %v652_v4 = vpop.f32.mrf.mxu0 }
  0xf0   :  { %v439_v5 = vadd.f32 %v651_v1, %v116_v0  ;;  %v680_v6 = vpop.f32.mrf.mxu1 }
  0xf1   :  { %v653_v9 = vpop.f32.mrf.mxu0 }
  0xf2   :  { %v654_v11 = vadd.f32 %v653_v9, %v652_v4  ;;  %v681_v12 = vpop.f32.mrf.mxu1  ;;  %v488_v13 = vadd.f32 %v679_v3, %v439_v5 }
  0xf3   :  { %v682_v16 = vadd.f32 %v681_v12, %v680_v6 }
  0xf4   :  { %v442_v17 = vadd.f32 %v654_v11, %v121_v15  ;;  %v699_v18 = vpop.f32.mrf.mxu0 }
  0xf5   :  { %v537_v19 = vadd.f32 %v699_v18, %v488_v13 }
  0xf6   :  { %v528_v22 = vpop.f32.mrf.mxu0  ;;  %v491_v23 = vadd.f32 %v682_v16, %v442_v17 }
  0xf7   :  { %v549_v24 = vmin.f32 %v537_v19, 0.0  ;;  %v529_v25 = vadd.f32 %v528_v22, %v480_v20  ;;  %vm545_vm1 = vcmp.gt.f32.partialorder %v537_v19, 0.0 }
  0xf8   :  { %v700_v27 = vpop.f32.mrf.mxu0 }
  0xf9   :  { %v555_v28 = vmul.f32 1.442695, %v549_v24  ;;  %v547_v29 = vmin.f32 %v529_v25, 0.0  ;;  %v540_v30 = vadd.f32 %v700_v27, %v491_v23  ;;  %vm543_vm2 = vcmp.gt.f32.partialorder %v529_v25, 0.0 }
  0xfa   :  { %v531_v32 = vpop.f32.mrf.mxu0 }
  0xfb   :  { %754 = vpow2.f32 %v555_v28  ;;  %v551_v33 = vmul.f32 1.442695, %v547_v29  ;;  %v550_v34 = vmin.f32 %v540_v30, 0.0  ;;  %v532_v35 = vadd.f32 %v531_v32, %v483_v31 }
  0xfc   :  { %vm546_vm3 = vcmp.gt.f32.partialorder %v540_v30, 0.0 }
  0xfd   :  { %756 = vpow2.f32 %v551_v33  ;;  %v557_v36 = vmul.f32 1.442695, %v550_v34  ;;  %v548_v37 = vmin.f32 %v532_v35, 0.0  ;;  %vm544_vm4 = vcmp.gt.f32.partialorder %v532_v35, 0.0 }
  0xff   :  { %758 = vpow2.f32 %v557_v36  ;;  %v553_v38 = vmul.f32 1.442695, %v548_v37 }
 0x101   :  { %760 = vpow2.f32 %v553_v38 }
 0x108   :  { %v755_v39 = vpop.eup %754 }
 0x109   :  { %v625_v40 = vadd.f32 -1.0, %v755_v39 }
 0x10a   :  { %v757_v41 = vpop.eup %756 }
 0x10b   :  { %v565_v42 = vsel %vm545_vm1, %v537_v19, %v625_v40  ;;  %v623_v43 = vadd.f32 -1.0, %v757_v41 }
 0x10c   :  { %v759_v44 = vpop.eup %758  ;;  %569 = vst [vmem:[%s950_s3 + $0x10] sm:$0xff] %v565_v42 }
 0x10d   :  { %v563_v45 = vsel %vm543_vm2, %v529_v25, %v623_v43  ;;  %v626_v46 = vadd.f32 -1.0, %v759_v44 }
 0x10e   :  { %567 = vst [vmem:[%s950_s3] sm:$0xff] %v563_v45  ;;  %v761_v47 = vpop.eup %760 }
 0x10f   :  { %v566_v48 = vsel %vm546_vm3, %v540_v30, %v626_v46  ;;  %v624_v49 = vadd.f32 -1.0, %v761_v47 }
 0x110   :  { %570 = vst [vmem:[%s950_s3 + $0x18] sm:$0xff] %v566_v48 }
 0x111   :  { %v564_v50 = vsel %vm544_vm4, %v532_v35, %v624_v49 }
 0x112   :  { %568 = vst [vmem:[%s950_s3 + $0x8] sm:$0xff] %v564_v50 }

</bundles_post_ra>
